<compile_context>
chip_gen: v5e
topology: v5e:2x2
jax: 0.10.0
libtpu: 0.0.40
codegen_flags: <defaults>
</compile_context>

<pallas_src>
import functools

import jax
import jax.numpy as jnp
from jax.experimental import pallas as pl
from jax.experimental.pallas import tpu as pltpu

K5, STRIDE, PAD = 5, 2, 2
LRELU_SLOPE = 0.2
BN_EPS = 1e-5


# --------------------------- chip-dependent budgets --------------------------- #

def _vmem_budgets():
    """(vmem_limit_bytes, tile_budget_bytes, default_tile_cap) per chip VMEM."""
    try:
        cap = int(getattr(pltpu.get_tpu_info(), "vmem_capacity_bytes"))
    except Exception:
        cap = 64 << 20  # unknown -> assume the smallest (v7x-like) and stay safe
    if cap >= 100 << 20:          # v5e / v6e: 128 MiB physical VMEM
        return 80 << 20, 48 << 20, 1024
    return 44 << 20, 22 << 20, 512  # v7x: 64 MiB per TensorCore -> conservative


_VMEM_LIMIT, _TILE_BUDGET, _DEFAULT_TILE_CAP = _vmem_budgets()

_PARALLEL = pltpu.CompilerParams(
    dimension_semantics=("parallel",), vmem_limit_bytes=_VMEM_LIMIT)
_SPLIT_STATS = pltpu.CompilerParams(
    dimension_semantics=("parallel", "arbitrary"), vmem_limit_bytes=_VMEM_LIMIT)
_SINGLE = pltpu.CompilerParams(
    dimension_semantics=("arbitrary",), vmem_limit_bytes=_VMEM_LIMIT)


# ------------------------------ host-side glue ------------------------------ #

def _round_up(x, m):
    return (x + m - 1) // m * m


def _pad2d(a, rows, cols):
    r, c = a.shape
    return jnp.pad(a, ((0, rows - r), (0, cols - c)))


def _choose_tile_m(m_rows, kd_pad, cout_pad, in_bytes, tile_cap):
    """Largest tile whose working set (all inputs double-buffered) fits budget."""
    m_min = _round_up(m_rows, 16)
    for t in (2048, 1024, 512, 256, 128, 64, 32, 16):
        if t > tile_cap or t > m_min:
            continue
        need = (2 * t * kd_pad * in_bytes          # patch tile, double-buffered
                + 2 * t * cout_pad * in_bytes      # y / act tile (bf16), 2 buffers
                + 2 * kd_pad * cout_pad * in_bytes  # weights (Pallas double-buffers
                                                    # constant-index blocks too)
                + 8 * cout_pad * 4 * 2)            # bias / stat rows
        if need <= _TILE_BUDGET:
            return t
    return 16


def _im2col_gather(x):
    """x: (N, H, W, C) -> patches (N*Ho*Wo, K*K*C) in (kh, kw, c) column order."""
    N, H, W, C = x.shape
    xp = jnp.pad(x, ((0, 0), (PAD, PAD), (PAD, PAD), (0, 0)))
    Ho = (H + 2 * PAD - K5) // STRIDE + 1
    Wo = (W + 2 * PAD - K5) // STRIDE + 1
    i_idx = (jnp.arange(Ho) * STRIDE)[:, None] + jnp.arange(K5)[None, :]  # (Ho, K)
    j_idx = (jnp.arange(Wo) * STRIDE)[:, None] + jnp.arange(K5)[None, :]  # (Wo, K)
    p = xp[:, i_idx, :, :]                       # (N, Ho, K, W+2P, C)
    p = p[:, :, :, j_idx, :]                     # (N, Ho, K, Wo, K, C)
    p = jnp.transpose(p, (0, 1, 3, 2, 4, 5))     # (N, Ho, Wo, Kh, Kw, C)
    return p.reshape(N * Ho * Wo, K5 * K5 * C), Ho, Wo


def conv_w_to_mat(w):
    """PyTorch (Cout, Cin, kh, kw) -> (kh*kw*Cin, Cout) matching _im2col_gather."""
    return jnp.transpose(w, (2, 3, 1, 0)).reshape(-1, w.shape[0])


def _kd_pad(kd):
    # Small K (layer 1): pad only to the bf16 sublane multiple and use a
    # full-extent block; otherwise keep lane-aligned 128 multiples.
    return _round_up(kd, 32) if kd < 128 else _round_up(kd, 128)


# ------------------------------- Pallas kernels ------------------------------ #

def _conv_bias_lrelu_kernel(p_ref, w_ref, b_ref, o_ref):
    y = jnp.dot(p_ref[...], w_ref[...], preferred_element_type=jnp.float32)
    y = y + b_ref[...]
    y = jnp.maximum(y, LRELU_SLOPE * y)
    o_ref[...] = y.astype(o_ref.dtype)


def _conv_stats_kernel(p_ref, w_ref, y_ref, s1_ref, s2_ref):
    # Pass 1 of a BN layer: matmul, store y in bf16, accumulate per-channel
    # sum / sum-of-squares (f32) of the *stored* value.  Grid is
    # (n_split parallel, m-tiles arbitrary); s1/s2 hold one partial per split.
    @pl.when(pl.program_id(1) == 0)
    def _():
        s1_ref[...] = jnp.zeros_like(s1_ref)
        s2_ref[...] = jnp.zeros_like(s2_ref)

    y = jnp.dot(p_ref[...], w_ref[...], preferred_element_type=jnp.float32)
    y_c = y.astype(y_ref.dtype)
    y_ref[...] = y_c
    yf = y_c.astype(jnp.float32)
    s1_ref[...] += jnp.sum(yf, axis=0, keepdims=True)[None]
    s2_ref[...] += jnp.sum(yf * yf, axis=0, keepdims=True)[None]


def _bn_lrelu_kernel(y_ref, s1_ref, s2_ref, g_ref, b_ref, o_ref, *, inv_count):
    # Pass 2: reduce split partials, normalize with batch stats, scale/shift,
    # LeakyReLU.  Note: E[y^2]-E[y]^2 in f32 is fine at these activation scales.
    s1 = jnp.sum(s1_ref[...], axis=0)            # (1, C)
    s2 = jnp.sum(s2_ref[...], axis=0)
    mean = s1 * inv_count
    var = s2 * inv_count - mean * mean
    scale = jax.lax.rsqrt(var + BN_EPS) * g_ref[...]
    y = (y_ref[...].astype(jnp.float32) - mean) * scale + b_ref[...]
    y = jnp.maximum(y, LRELU_SLOPE * y)
    o_ref[...] = y.astype(o_ref.dtype)


def _bn_lrelu_fc_kernel(y_ref, s1_ref, s2_ref, g_ref, b_ref, wfc_ref, bfc_ref,
                        o_ref, *, inv_count, hw):
    # Layer-3 pass 2 with the fc + sigmoid head fused in (single grid step).
    s1 = jnp.sum(s1_ref[...], axis=0)
    s2 = jnp.sum(s2_ref[...], axis=0)
    mean = s1 * inv_count
    var = s2 * inv_count - mean * mean
    scale = jax.lax.rsqrt(var + BN_EPS) * g_ref[...]
    a = (y_ref[...].astype(jnp.float32) - mean) * scale + b_ref[...]
    a = jnp.maximum(a, LRELU_SLOPE * a)          # (M, C_pad), M = N*hw
    m_rows, c_pad = a.shape
    n = m_rows // hw
    a3 = a.reshape(n, hw, c_pad)
    w3 = wfc_ref[...][None, :, :]                # (1, hw, C_pad)
    part = jnp.sum(a3 * w3, axis=2)              # (n, hw)
    logits = jnp.sum(part, axis=1, keepdims=True)        # (n, 1)
    logits = logits + bfc_ref[...]               # (n, o_pad); column 0 is valid
    o_ref[...] = jax.nn.sigmoid(logits).astype(o_ref.dtype)


# ------------------------------ kernel wrappers ------------------------------ #

def _conv_bias_lrelu(p, w, b, tile, out_dtype):
    m_pad, kd_pad = p.shape
    c_pad = w.shape[1]
    return pl.pallas_call(
        _conv_bias_lrelu_kernel,
        grid=(m_pad // tile,),
        in_specs=[pl.BlockSpec((tile, kd_pad), lambda i: (i, 0)),
                  pl.BlockSpec((kd_pad, c_pad), lambda i: (0, 0)),
                  pl.BlockSpec((1, c_pad), lambda i: (0, 0))],
        out_specs=pl.BlockSpec((tile, c_pad), lambda i: (i, 0)),
        out_shape=jax.ShapeDtypeStruct((m_pad, c_pad), out_dtype),
        compiler_params=_PARALLEL,
    )(p, w, b)


def _conv_matmul_stats(p, w, tile, n_split):
    m_pad, kd_pad = p.shape
    c_pad = w.shape[1]
    m_half = m_pad // (tile * n_split)   # m-tiles per split
    return pl.pallas_call(
        _conv_stats_kernel,
        grid=(n_split, m_half),
        in_specs=[pl.BlockSpec((tile, kd_pad), lambda c, i: (c * m_half + i, 0)),
                  pl.BlockSpec((kd_pad, c_pad), lambda c, i: (0, 0))],
        out_specs=(pl.BlockSpec((tile, c_pad), lambda c, i: (c * m_half + i, 0)),
                   pl.BlockSpec((1, 1, c_pad), lambda c, i: (c, 0, 0)),
                   pl.BlockSpec((1, 1, c_pad), lambda c, i: (c, 0, 0))),
        out_shape=(jax.ShapeDtypeStruct((m_pad, c_pad), p.dtype),
                   jax.ShapeDtypeStruct((n_split, 1, c_pad), jnp.float32),
                   jax.ShapeDtypeStruct((n_split, 1, c_pad), jnp.float32)),
        compiler_params=_SPLIT_STATS,
    )(p, w)


def _bn_lrelu(y, s1, s2, g, b, count, tile, out_dtype):
    m_pad, c_pad = y.shape
    n_split = s1.shape[0]
    kern = functools.partial(_bn_lrelu_kernel, inv_count=1.0 / float(count))
    return pl.pallas_call(
        kern,
        grid=(m_pad // tile,),
        in_specs=[pl.BlockSpec((tile, c_pad), lambda i: (i, 0)),
                  pl.BlockSpec((n_split, 1, c_pad), lambda i: (0, 0, 0)),
                  pl.BlockSpec((n_split, 1, c_pad), lambda i: (0, 0, 0)),
                  pl.BlockSpec((1, c_pad), lambda i: (0, 0)),
                  pl.BlockSpec((1, c_pad), lambda i: (0, 0))],
        out_specs=pl.BlockSpec((tile, c_pad), lambda i: (i, 0)),
        out_shape=jax.ShapeDtypeStruct((m_pad, c_pad), out_dtype),
        compiler_params=_PARALLEL,
    )(y, s1, s2, g, b)


def _bn_lrelu_fc(y, s1, s2, g, b, wfc_hw, bfc, *, count, hw):
    m_pad, c_pad = y.shape
    n_split = s1.shape[0]
    n_s = m_pad // hw
    o_pad = bfc.shape[1]
    kern = functools.partial(_bn_lrelu_fc_kernel,
                             inv_count=1.0 / float(count), hw=hw)
    return pl.pallas_call(
        kern,
        grid=(1,),
        in_specs=[pl.BlockSpec((m_pad, c_pad), lambda i: (0, 0)),
                  pl.BlockSpec((n_split, 1, c_pad), lambda i: (0, 0, 0)),
                  pl.BlockSpec((n_split, 1, c_pad), lambda i: (0, 0, 0)),
                  pl.BlockSpec((1, c_pad), lambda i: (0, 0)),
                  pl.BlockSpec((1, c_pad), lambda i: (0, 0)),
                  pl.BlockSpec((hw, c_pad), lambda i: (0, 0)),
                  pl.BlockSpec((1, o_pad), lambda i: (0, 0))],
        out_specs=pl.BlockSpec((n_s, o_pad), lambda i: (0, 0)),
        out_shape=jax.ShapeDtypeStruct((n_s, o_pad), jnp.float32),
        compiler_params=_SINGLE,
    )(y, s1, s2, g, b, wfc_hw, bfc)


# ------------------------------- layer wrappers ------------------------------- #

def _conv_lrelu_layer(x_nhwc, w, b, compute_dtype, tile_cap):
    """Layer 1: conv + bias + LeakyReLU (no BN)."""
    n = x_nhwc.shape[0]
    cout = w.shape[0]
    p_raw, ho, wo = _im2col_gather(x_nhwc.astype(compute_dtype))
    m, kd = p_raw.shape
    kd_p = _kd_pad(kd)
    c_pad = _round_up(cout, 128)
    in_bytes = jnp.dtype(compute_dtype).itemsize
    tile = _choose_tile_m(m, kd_p, c_pad, in_bytes, tile_cap)
    m_pad = _round_up(m, tile)
    p = jnp.pad(p_raw, ((0, m_pad - m), (0, kd_p - kd)))   # single fused pad
    w_mat = _pad2d(conv_w_to_mat(w), kd_p, c_pad).astype(compute_dtype)
    b_row = _pad2d(b.reshape(1, -1), 1, c_pad).astype(jnp.float32)
    act = _conv_bias_lrelu(p, w_mat, b_row, tile, compute_dtype)
    return act[:m, :cout].reshape(n, ho, wo, cout)


def _conv_bn_pass1(x_nhwc, w, compute_dtype, tile_cap):
    """Conv matmul + batch-stat accumulation for BN layers (conv bias dropped:
    it is cancelled exactly by batch-statistics BatchNorm)."""
    cout = w.shape[0]
    p_raw, ho, wo = _im2col_gather(x_nhwc.astype(compute_dtype))
    m, kd = p_raw.shape
    kd_p = _kd_pad(kd)
    c_pad = _round_up(cout, 128)
    in_bytes = jnp.dtype(compute_dtype).itemsize
    tile = _choose_tile_m(m, kd_p, c_pad, in_bytes, tile_cap)
    n_tiles = _round_up(m, tile) // tile
    n_split = 2 if n_tiles >= 2 else 1       # 2-way split -> v7x megacore
    m_pad = _round_up(m, tile * n_split)
    p = jnp.pad(p_raw, ((0, m_pad - m), (0, kd_p - kd)))
    w_mat = _pad2d(conv_w_to_mat(w), kd_p, c_pad).astype(compute_dtype)
    y, s1, s2 = _conv_matmul_stats(p, w_mat, tile, n_split)
    return y, s1, s2, m, m_pad, ho, wo, c_pad, tile


def _conv_bn_lrelu_layer(x_nhwc, w, gamma, beta, compute_dtype, tile_cap):
    n = x_nhwc.shape[0]
    cout = w.shape[0]
    y, s1, s2, m, m_pad, ho, wo, c_pad, tile = _conv_bn_pass1(
        x_nhwc, w, compute_dtype, tile_cap)
    g_pad = _pad2d(gamma.reshape(1, -1), 1, c_pad).astype(jnp.float32)
    be_pad = _pad2d(beta.reshape(1, -1), 1, c_pad).astype(jnp.float32)
    act = _bn_lrelu(y, s1, s2, g_pad, be_pad, m, tile, compute_dtype)
    return act[:m, :cout].reshape(n, ho, wo, cout)


# ------------------------------- full forward -------------------------------- #

def discriminator_forward(x, params, *, compute_dtype=jnp.bfloat16, tile_cap=None):
    if tile_cap is None:
        tile_cap = _DEFAULT_TILE_CAP

    # NCHW -> NHWC once (stay NHWC between layers), cast to compute dtype once.
    a = jnp.transpose(x, (0, 2, 3, 1)).astype(compute_dtype)
    n_batch = a.shape[0]

    a = _conv_lrelu_layer(a, params["w1"], params["b1"], compute_dtype, tile_cap)
    a = _conv_bn_lrelu_layer(a, params["w2"], params["g2"], params["be2"],
                             compute_dtype, tile_cap)

    # Layer 3 + fused BN / LeakyReLU / fc / sigmoid epilogue.
    cout = params["w3"].shape[0]
    y, s1, s2, m, m_pad, ho, wo, c_pad, tile = _conv_bn_pass1(
        a, params["w3"], compute_dtype, tile_cap)
    hw = ho * wo
    g_pad = _pad2d(params["g3"].reshape(1, -1), 1, c_pad).astype(jnp.float32)
    be_pad = _pad2d(params["be3"].reshape(1, -1), 1, c_pad).astype(jnp.float32)

    # fc weight: PyTorch flattens NCHW (c, h, w); rows of y are (n, h, w) and
    # columns are c, so re-order the tiny weight to (h*w, c).
    wfc_hw = params["wfc"].reshape(cout, ho, wo).transpose(1, 2, 0).reshape(hw, cout)
    wfc_hw = _pad2d(wfc_hw, hw, c_pad).astype(jnp.float32)
    bfc_pad = _pad2d(params["bfc"].reshape(1, 1), 1, 128).astype(jnp.float32)

    fused_ok = (m_pad == m) and (m * c_pad * 12 <= _TILE_BUDGET)
    if fused_ok:
        out = _bn_lrelu_fc(y, s1, s2, g_pad, be_pad, wfc_hw, bfc_pad,
                           count=m, hw=hw)
        return out[:n_batch, :1]

    # Fallback (very large batch): plain BN/LeakyReLU pass; the tiny fc GEMM is
    # left to XLA (per perf review — a padded 1-wide Pallas GEMM is pure waste).
    # TODO(synk): extend the fused fc epilogue to multi-tile layer-3 grids.
    act = _bn_lrelu(y, s1, s2, g_pad, be_pad, m, tile, compute_dtype)
    flat = act[:m, :cout].astype(jnp.float32).reshape(n_batch, hw * cout)
    wfc_flat = wfc_hw[:, :cout].reshape(1, hw * cout)
    logits = jnp.sum(flat * wfc_flat, axis=1, keepdims=True) + params["bfc"][None, :]
    return jax.nn.sigmoid(logits)


# ----------------------------- pure-JAX reference ----------------------------- #

def reference_forward(x, params, compute_dtype=jnp.float32):
    """compute_dtype=f32 reproduces the PyTorch module; compute_dtype=bf16
    mirrors the Pallas data path (bf16 matmul operands, bf16 stored y / inter-
    layer activations, f32 accumulation and element-wise math)."""
    cast = lambda a: a.astype(compute_dtype)
    leaky = lambda v: jnp.maximum(v, LRELU_SLOPE * v)

    def conv(a, w, b=None, gamma=None, beta=None):
        p, ho, wo = _im2col_gather(cast(a))
        y = jnp.dot(p, cast(conv_w_to_mat(w)), preferred_element_type=jnp.float32)
        if gamma is None:
            y = y + b[None, :]
        else:
            # Conv bias dropped: cancelled exactly by batch-statistics BN.
            y = cast(y).astype(jnp.float32)          # mirror bf16 y storage
            mu = jnp.mean(y, axis=0, keepdims=True)
            var = jnp.mean(y * y, axis=0, keepdims=True) - mu * mu
            y = (y - mu) * jax.lax.rsqrt(var + BN_EPS) * gamma[None, :] + beta[None, :]
        return leaky(y), ho, wo

    a = jnp.transpose(x, (0, 2, 3, 1))
    n = a.shape[0]
    y1, h1, w1 = conv(a, params["w1"], params["b1"])
    a = cast(y1).reshape(n, h1, w1, params["w1"].shape[0])
    y2, h2, w2 = conv(a, params["w2"], gamma=params["g2"], beta=params["be2"])
    a = cast(y2).reshape(n, h2, w2, params["w2"].shape[0])
    y3, h3, w3 = conv(a, params["w3"], gamma=params["g3"], beta=params["be3"])

    # fc + sigmoid from the f32 post-BN activation (mirrors the fused kernel).
    c3 = params["w3"].shape[0]
    flat = y3.reshape(n, h3 * w3 * c3)               # per-sample (h, w, c) order
    wfc = params["wfc"].reshape(c3, h3, w3).transpose(1, 2, 0).reshape(1, -1)
    logits = jnp.sum(flat * wfc, axis=1, keepdims=True) + params["bfc"][None, :]
    return jax.nn.sigmoid(logits)


# ------------------------------------ main ------------------------------------ #

if __name__ == "__main__":
    # Small config consistent with the module: 32x32 input -> 16 -> 8 -> 4,
    # so fc input = featmap_dim * 4 * 4.
    featmap_dim, n_channel = 32, 1
    N, H, W = 4, 32, 32
    c1, c2, c3 = featmap_dim // 4, featmap_dim // 2, featmap_dim

    key = jax.random.PRNGKey(0)
    ks = jax.random.split(key, 13)
    norm = lambda k, s: 0.05 * jax.random.normal(k, s, jnp.float32)

    params = {
        "w1": norm(ks[0], (c1, n_channel, K5, K5)),
        "b1": norm(ks[1], (c1,)),
        "w2": norm(ks[2], (c2, c1, K5, K5)),
        "b2": norm(ks[3], (c2,)),
        "g2": 1.0 + norm(ks[4], (c2,)),
        "be2": norm(ks[5], (c2,)),
        "w3": norm(ks[6], (c3, c2, K5, K5)),
        "b3": norm(ks[7], (c3,)),
        "g3": 1.0 + norm(ks[8], (c3,)),
        "be3": norm(ks[9], (c3,)),
        "wfc": norm(ks[10], (1, featmap_dim * 4 * 4)),
        "bfc": norm(ks[11], (1,)),
    }
    x = jax.random.normal(ks[12], (N, n_channel, H, W), jnp.float32)

    ref_bf16 = jax.block_until_ready(reference_forward(x, params, jnp.bfloat16))
    ref_f32 = jax.block_until_ready(reference_forward(x, params, jnp.float32))

    # Default (per-chip) tile config.
    fwd = jax.jit(discriminator_forward)
    out = jax.block_until_ready(fwd(x, params))
    assert out.shape == (N, 1), out.shape
    assert jnp.allclose(out, ref_bf16, rtol=3e-3, atol=3e-3), (out, ref_bf16)
    assert jnp.allclose(out, ref_f32, rtol=2e-2, atol=2e-2), (out, ref_f32)

    # Stress config: force small tiles to exercise multi-tile grids, the
    # cross-tile BN statistics accumulation and the 2-way split stats pass.
    fwd_small = jax.jit(functools.partial(discriminator_forward, tile_cap=32))
    out_small = jax.block_until_ready(fwd_small(x, params))
    assert out_small.shape == (N, 1), out_small.shape
    assert jnp.allclose(out_small, ref_bf16, rtol=3e-3, atol=3e-3), (out_small,
                                                                     ref_bf16)

    print("KERNEL_OK")
</pallas_src>

<mosaic_0001>
module attributes {stable_mosaic.version = 11 : i64} {
  func.func @_conv_bias_lrelu_kernel(%arg0: i32, %arg1: memref<512x32xbf16, #tpu.memory_space<vmem>>, %arg2: memref<32x128xbf16, #tpu.memory_space<vmem>>, %arg3: memref<1x128xf32, #tpu.memory_space<vmem>>, %arg4: memref<512x128xbf16, #tpu.memory_space<vmem>>) attributes {dimension_semantics = [#tpu.dimension_semantics<parallel>], iteration_bounds = array<i64: 2>, scalar_prefetch = 0 : i64, scratch_operands = 0 : i64, tpu.core_type = #tpu.core_type<tc>, window_params = [{transform_indices = @transform_0, window_bounds = array<i64: 512, 32>}, {pipeline_mode = #tpu.pipeline_mode<synchronous>, transform_indices = @transform_1, window_bounds = array<i64: 32, 128>}, {pipeline_mode = #tpu.pipeline_mode<synchronous>, transform_indices = @transform_2, window_bounds = array<i64: 1, 128>}, {transform_indices = @transform_3, window_bounds = array<i64: 512, 128>}]} {
    %c0 = arith.constant 0 : index
    %c0_0 = arith.constant 0 : index
    %0 = vector.load %arg1[%c0, %c0_0] : memref<512x32xbf16, #tpu.memory_space<vmem>>, vector<512x32xbf16>
    %c0_1 = arith.constant 0 : index
    %c0_2 = arith.constant 0 : index
    %1 = vector.load %arg2[%c0_1, %c0_2] : memref<32x128xbf16, #tpu.memory_space<vmem>>, vector<32x128xbf16>
    %cst = arith.constant dense<0.000000e+00> : vector<512x128xf32>
    %2 = tpu.matmul %0, %1, %cst {dimension_numbers = #tpu.dot_dimension_numbers<[1], [0], [0], [1], [0, 0, 1, 1], [], []>} : vector<512x32xbf16>, vector<32x128xbf16>, vector<512x128xf32> -> vector<512x128xf32>
    %c0_3 = arith.constant 0 : index
    %c0_4 = arith.constant 0 : index
    %3 = vector.load %arg3[%c0_3, %c0_4] : memref<1x128xf32, #tpu.memory_space<vmem>>, vector<1x128xf32>
    %4 = vector.broadcast %3 : vector<1x128xf32> to vector<512x128xf32>
    %5 = arith.addf %2, %4 : vector<512x128xf32>
    %cst_5 = arith.constant 2.000000e-01 : f32
    %6 = vector.broadcast %cst_5 : f32 to vector<512x128xf32>
    %7 = arith.mulf %6, %5 : vector<512x128xf32>
    %8 = arith.maximumf %5, %7 : vector<512x128xf32>
    %9 = arith.truncf %8 : vector<512x128xf32> to vector<512x128xbf16>
    %c0_6 = arith.constant 0 : index
    %c0_7 = arith.constant 0 : index
    %10 = vector.load %arg4[%c0_6, %c0_7] : memref<512x128xbf16, #tpu.memory_space<vmem>>, vector<512x128xbf16>
    tpu.vector_store %arg4[%c0_6, %c0_7], %9 {strides = array<i32>} : memref<512x128xbf16, #tpu.memory_space<vmem>>, vector<512x128xbf16>,
    return
  }
  func.func @transform_0(%arg0: i32) -> (i32, i32) {
    %c0_i32 = arith.constant 0 : i32
    %c0_i32_0 = arith.constant 0 : i32
    return %arg0, %c0_i32 : i32, i32
  }
  func.func @transform_1(%arg0: i32) -> (i32, i32) {
    %c0_i32 = arith.constant 0 : i32
    %c0_i32_0 = arith.constant 0 : i32
    %c0_i32_1 = arith.constant 0 : i32
    return %c0_i32, %c0_i32_0 : i32, i32
  }
  func.func @transform_2(%arg0: i32) -> (i32, i32) {
    %c0_i32 = arith.constant 0 : i32
    %c0_i32_0 = arith.constant 0 : i32
    %c0_i32_1 = arith.constant 0 : i32
    return %c0_i32, %c0_i32_0 : i32, i32
  }
  func.func @transform_3(%arg0: i32) -> (i32, i32) {
    %c0_i32 = arith.constant 0 : i32
    %c0_i32_0 = arith.constant 0 : i32
    return %arg0, %c0_i32 : i32, i32
  }
}

module attributes {stable_mosaic.version = 11 : i64} {
  func.func @_conv_stats_kernel(%arg0: i32, %arg1: i32, %arg2: memref<256x256xbf16, #tpu.memory_space<vmem>>, %arg3: memref<256x128xbf16, #tpu.memory_space<vmem>>, %arg4: memref<256x128xbf16, #tpu.memory_space<vmem>>, %arg5: memref<1x1x128xf32, #tpu.memory_space<vmem>>, %arg6: memref<1x1x128xf32, #tpu.memory_space<vmem>>) attributes {dimension_semantics = [#tpu.dimension_semantics<parallel>, #tpu.dimension_semantics<arbitrary>], iteration_bounds = array<i64: 1, 1>, scalar_prefetch = 0 : i64, scratch_operands = 0 : i64, tpu.core_type = #tpu.core_type<tc>, window_params = [{transform_indices = @transform_0, window_bounds = array<i64: 256, 256>}, {pipeline_mode = #tpu.pipeline_mode<synchronous>, transform_indices = @transform_1, window_bounds = array<i64: 256, 128>}, {transform_indices = @transform_2, window_bounds = array<i64: 256, 128>}, {transform_indices = @transform_3, window_bounds = array<i64: 1, 1, 128>}, {transform_indices = @transform_4, window_bounds = array<i64: 1, 1, 128>}]} {
    %c0_i32 = arith.constant 0 : i32
    %0 = arith.cmpi eq, %arg1, %c0_i32 : i32
    %1 = arith.extui %0 : i1 to i32
    %c0_i32_0 = arith.constant 0 : i32
    %2 = arith.cmpi ne, %1, %c0_i32_0 : i32
    scf.if %2 {
      %cst_20 = arith.constant 0.000000e+00 : f32
      %22 = vector.broadcast %cst_20 : f32 to vector<1x1x128xf32>
      %c0_21 = arith.constant 0 : index
      %c0_22 = arith.constant 0 : index
      %c0_23 = arith.constant 0 : index
      %23 = vector.load %arg5[%c0_21, %c0_22, %c0_23] : memref<1x1x128xf32, #tpu.memory_space<vmem>>, vector<1x1x128xf32>
      tpu.vector_store %arg5[%c0_21, %c0_22, %c0_23], %22 {strides = array<i32>} : memref<1x1x128xf32, #tpu.memory_space<vmem>>, vector<1x1x128xf32>,
      %cst_24 = arith.constant 0.000000e+00 : f32
      %24 = vector.broadcast %cst_24 : f32 to vector<1x1x128xf32>
      %c0_25 = arith.constant 0 : index
      %c0_26 = arith.constant 0 : index
      %c0_27 = arith.constant 0 : index
      %25 = vector.load %arg6[%c0_25, %c0_26, %c0_27] : memref<1x1x128xf32, #tpu.memory_space<vmem>>, vector<1x1x128xf32>
      tpu.vector_store %arg6[%c0_25, %c0_26, %c0_27], %24 {strides = array<i32>} : memref<1x1x128xf32, #tpu.memory_space<vmem>>, vector<1x1x128xf32>,
    } else {
    }
    %c0 = arith.constant 0 : index
    %c0_1 = arith.constant 0 : index
    %3 = vector.load %arg2[%c0, %c0_1] : memref<256x256xbf16, #tpu.memory_space<vmem>>, vector<256x256xbf16>
    %c0_2 = arith.constant 0 : index
    %c0_3 = arith.constant 0 : index
    %4 = vector.load %arg3[%c0_2, %c0_3] : memref<256x128xbf16, #tpu.memory_space<vmem>>, vector<256x128xbf16>
    %cst = arith.constant dense<0.000000e+00> : vector<256x128xf32>
    %5 = tpu.matmul %3, %4, %cst {dimension_numbers = #tpu.dot_dimension_numbers<[1], [0], [0], [1], [0, 0, 1, 1], [], []>} : vector<256x256xbf16>, vector<256x128xbf16>, vector<256x128xf32> -> vector<256x128xf32>
    %6 = arith.truncf %5 : vector<256x128xf32> to vector<256x128xbf16>
    %c0_4 = arith.constant 0 : index
    %c0_5 = arith.constant 0 : index
    %7 = vector.load %arg4[%c0_4, %c0_5] : memref<256x128xbf16, #tpu.memory_space<vmem>>, vector<256x128xbf16>
    tpu.vector_store %arg4[%c0_4, %c0_5], %6 {strides = array<i32>} : memref<256x128xbf16, #tpu.memory_space<vmem>>, vector<256x128xbf16>,
    %8 = arith.extf %6 : vector<256x128xbf16> to vector<256x128xf32>
    %c0_6 = arith.constant 0 : index
    %c0_7 = arith.constant 0 : index
    %c0_8 = arith.constant 0 : index
    %9 = vector.load %arg5[%c0_6, %c0_7, %c0_8] : memref<1x1x128xf32, #tpu.memory_space<vmem>>, vector<1x1x128xf32>
    %cst_9 = arith.constant dense<0.000000e+00> : vector<128xf32>
    %10 = vector.multi_reduction <add>, %8, %cst_9 [0] : vector<256x128xf32> to vector<128xf32>
    %11 = vector.shape_cast %10 : vector<128xf32> to vector<1x128xf32>
    %12 = vector.shape_cast %11 : vector<1x128xf32> to vector<1x1x128xf32>
    %13 = arith.addf %9, %12 : vector<1x1x128xf32>
    %c0_10 = arith.constant 0 : index
    %c0_11 = arith.constant 0 : index
    %c0_12 = arith.constant 0 : index
    %14 = vector.load %arg5[%c0_10, %c0_11, %c0_12] : memref<1x1x128xf32, #tpu.memory_space<vmem>>, vector<1x1x128xf32>
    tpu.vector_store %arg5[%c0_10, %c0_11, %c0_12], %13 {strides = array<i32>} : memref<1x1x128xf32, #tpu.memory_space<vmem>>, vector<1x1x128xf32>,
    %c0_13 = arith.constant 0 : index
    %c0_14 = arith.constant 0 : index
    %c0_15 = arith.constant 0 : index
    %15 = vector.load %arg6[%c0_13, %c0_14, %c0_15] : memref<1x1x128xf32, #tpu.memory_space<vmem>>, vector<1x1x128xf32>
    %16 = arith.mulf %8, %8 : vector<256x128xf32>
    %cst_16 = arith.constant dense<0.000000e+00> : vector<128xf32>
    %17 = vector.multi_reduction <add>, %16, %cst_16 [0] : vector<256x128xf32> to vector<128xf32>
    %18 = vector.shape_cast %17 : vector<128xf32> to vector<1x128xf32>
    %19 = vector.shape_cast %18 : vector<1x128xf32> to vector<1x1x128xf32>
    %20 = arith.addf %15, %19 : vector<1x1x128xf32>
    %c0_17 = arith.constant 0 : index
    %c0_18 = arith.constant 0 : index
    %c0_19 = arith.constant 0 : index
    %21 = vector.load %arg6[%c0_17, %c0_18, %c0_19] : memref<1x1x128xf32, #tpu.memory_space<vmem>>, vector<1x1x128xf32>
    tpu.vector_store %arg6[%c0_17, %c0_18, %c0_19], %20 {strides = array<i32>} : memref<1x1x128xf32, #tpu.memory_space<vmem>>, vector<1x1x128xf32>,
    return
  }
  func.func @transform_0(%arg0: i32, %arg1: i32) -> (i32, i32) {
    %c1_i32 = arith.constant 1 : i32
    %0 = arith.muli %arg0, %c1_i32 : i32
    %1 = arith.addi %0, %arg1 : i32
    %c0_i32 = arith.constant 0 : i32
    %c0_i32_0 = arith.constant 0 : i32
    return %1, %c0_i32 : i32, i32
  }
  func.func @transform_1(%arg0: i32, %arg1: i32) -> (i32, i32) {
    %c0_i32 = arith.constant 0 : i32
    %c0_i32_0 = arith.constant 0 : i32
    %c0_i32_1 = arith.constant 0 : i32
    return %c0_i32, %c0_i32_0 : i32, i32
  }
  func.func @transform_2(%arg0: i32, %arg1: i32) -> (i32, i32) {
    %c1_i32 = arith.constant 1 : i32
    %0 = arith.muli %arg0, %c1_i32 : i32
    %1 = arith.addi %0, %arg1 : i32
    %c0_i32 = arith.constant 0 : i32
    %c0_i32_0 = arith.constant 0 : i32
    return %1, %c0_i32 : i32, i32
  }
  func.func @transform_3(%arg0: i32, %arg1: i32) -> (i32, i32, i32) {
    %c0_i32 = arith.constant 0 : i32
    %c0_i32_0 = arith.constant 0 : i32
    %c0_i32_1 = arith.constant 0 : i32
    return %arg0, %c0_i32, %c0_i32_0 : i32, i32, i32
  }
  func.func @transform_4(%arg0: i32, %arg1: i32) -> (i32, i32, i32) {
    %c0_i32 = arith.constant 0 : i32
    %c0_i32_0 = arith.constant 0 : i32
    %c0_i32_1 = arith.constant 0 : i32
    return %arg0, %c0_i32, %c0_i32_0 : i32, i32, i32
  }
}

module attributes {stable_mosaic.version = 11 : i64} {
  func.func @_bn_lrelu_kernel(%arg0: i32, %arg1: memref<256x128xbf16, #tpu.memory_space<vmem>>, %arg2: memref<1x1x128xf32, #tpu.memory_space<vmem>>, %arg3: memref<1x1x128xf32, #tpu.memory_space<vmem>>, %arg4: memref<1x128xf32, #tpu.memory_space<vmem>>, %arg5: memref<1x128xf32, #tpu.memory_space<vmem>>, %arg6: memref<256x128xbf16, #tpu.memory_space<vmem>>) attributes {dimension_semantics = [#tpu.dimension_semantics<parallel>], iteration_bounds = array<i64: 1>, scalar_prefetch = 0 : i64, scratch_operands = 0 : i64, tpu.core_type = #tpu.core_type<tc>, window_params = [{transform_indices = @transform_0, window_bounds = array<i64: 256, 128>}, {pipeline_mode = #tpu.pipeline_mode<synchronous>, transform_indices = @transform_1, window_bounds = array<i64: 1, 1, 128>}, {pipeline_mode = #tpu.pipeline_mode<synchronous>, transform_indices = @transform_2, window_bounds = array<i64: 1, 1, 128>}, {pipeline_mode = #tpu.pipeline_mode<synchronous>, transform_indices = @transform_3, window_bounds = array<i64: 1, 128>}, {pipeline_mode = #tpu.pipeline_mode<synchronous>, transform_indices = @transform_4, window_bounds = array<i64: 1, 128>}, {transform_indices = @transform_5, window_bounds = array<i64: 256, 128>}]} {
    %c0 = arith.constant 0 : index
    %c0_0 = arith.constant 0 : index
    %c0_1 = arith.constant 0 : index
    %0 = vector.load %arg2[%c0, %c0_0, %c0_1] : memref<1x1x128xf32, #tpu.memory_space<vmem>>, vector<1x1x128xf32>
    %cst = arith.constant dense<0.000000e+00> : vector<1x128xf32>
    %1 = vector.multi_reduction <add>, %0, %cst [0] : vector<1x1x128xf32> to vector<1x128xf32>
    %c0_2 = arith.constant 0 : index
    %c0_3 = arith.constant 0 : index
    %c0_4 = arith.constant 0 : index
    %2 = vector.load %arg3[%c0_2, %c0_3, %c0_4] : memref<1x1x128xf32, #tpu.memory_space<vmem>>, vector<1x1x128xf32>
    %cst_5 = arith.constant dense<0.000000e+00> : vector<1x128xf32>
    %3 = vector.multi_reduction <add>, %2, %cst_5 [0] : vector<1x1x128xf32> to vector<1x128xf32>
    %cst_6 = arith.constant 3.906250e-03 : f32
    %4 = vector.broadcast %cst_6 : f32 to vector<1x128xf32>
    %5 = arith.mulf %1, %4 : vector<1x128xf32>
    %cst_7 = arith.constant 3.906250e-03 : f32
    %6 = vector.broadcast %cst_7 : f32 to vector<1x128xf32>
    %7 = arith.mulf %3, %6 : vector<1x128xf32>
    %8 = arith.mulf %5, %5 : vector<1x128xf32>
    %9 = arith.subf %7, %8 : vector<1x128xf32>
    %cst_8 = arith.constant 9.99999974E-6 : f32
    %10 = vector.broadcast %cst_8 : f32 to vector<1x128xf32>
    %11 = arith.addf %9, %10 : vector<1x128xf32>
    %12 = math.rsqrt %11 : vector<1x128xf32>
    %c0_9 = arith.constant 0 : index
    %c0_10 = arith.constant 0 : index
    %13 = vector.load %arg4[%c0_9, %c0_10] : memref<1x128xf32, #tpu.memory_space<vmem>>, vector<1x128xf32>
    %14 = arith.mulf %12, %13 : vector<1x128xf32>
    %c0_11 = arith.constant 0 : index
    %c0_12 = arith.constant 0 : index
    %15 = vector.load %arg1[%c0_11, %c0_12] : memref<256x128xbf16, #tpu.memory_space<vmem>>, vector<256x128xbf16>
    %16 = arith.extf %15 : vector<256x128xbf16> to vector<256x128xf32>
    %17 = vector.broadcast %5 : vector<1x128xf32> to vector<256x128xf32>
    %18 = arith.subf %16, %17 : vector<256x128xf32>
    %19 = vector.broadcast %14 : vector<1x128xf32> to vector<256x128xf32>
    %20 = arith.mulf %18, %19 : vector<256x128xf32>
    %c0_13 = arith.constant 0 : index
    %c0_14 = arith.constant 0 : index
    %21 = vector.load %arg5[%c0_13, %c0_14] : memref<1x128xf32, #tpu.memory_space<vmem>>, vector<1x128xf32>
    %22 = vector.broadcast %21 : vector<1x128xf32> to vector<256x128xf32>
    %23 = arith.addf %20, %22 : vector<256x128xf32>
    %cst_15 = arith.constant 2.000000e-01 : f32
    %24 = vector.broadcast %cst_15 : f32 to vector<256x128xf32>
    %25 = arith.mulf %24, %23 : vector<256x128xf32>
    %26 = arith.maximumf %23, %25 : vector<256x128xf32>
    %27 = arith.truncf %26 : vector<256x128xf32> to vector<256x128xbf16>
    %c0_16 = arith.constant 0 : index
    %c0_17 = arith.constant 0 : index
    %28 = vector.load %arg6[%c0_16, %c0_17] : memref<256x128xbf16, #tpu.memory_space<vmem>>, vector<256x128xbf16>
    tpu.vector_store %arg6[%c0_16, %c0_17], %27 {strides = array<i32>} : memref<256x128xbf16, #tpu.memory_space<vmem>>, vector<256x128xbf16>,
    return
  }
  func.func @transform_0(%arg0: i32) -> (i32, i32) {
    %c0_i32 = arith.constant 0 : i32
    %c0_i32_0 = arith.constant 0 : i32
    return %arg0, %c0_i32 : i32, i32
  }
  func.func @transform_1(%arg0: i32) -> (i32, i32, i32) {
    %c0_i32 = arith.constant 0 : i32
    %c0_i32_0 = arith.constant 0 : i32
    %c0_i32_1 = arith.constant 0 : i32
    %c0_i32_2 = arith.constant 0 : i32
    return %c0_i32, %c0_i32_0, %c0_i32_1 : i32, i32, i32
  }
  func.func @transform_2(%arg0: i32) -> (i32, i32, i32) {
    %c0_i32 = arith.constant 0 : i32
    %c0_i32_0 = arith.constant 0 : i32
    %c0_i32_1 = arith.constant 0 : i32
    %c0_i32_2 = arith.constant 0 : i32
    return %c0_i32, %c0_i32_0, %c0_i32_1 : i32, i32, i32
  }
  func.func @transform_3(%arg0: i32) -> (i32, i32) {
    %c0_i32 = arith.constant 0 : i32
    %c0_i32_0 = arith.constant 0 : i32
    %c0_i32_1 = arith.constant 0 : i32
    return %c0_i32, %c0_i32_0 : i32, i32
  }
  func.func @transform_4(%arg0: i32) -> (i32, i32) {
    %c0_i32 = arith.constant 0 : i32
    %c0_i32_0 = arith.constant 0 : i32
    %c0_i32_1 = arith.constant 0 : i32
    return %c0_i32, %c0_i32_0 : i32, i32
  }
  func.func @transform_5(%arg0: i32) -> (i32, i32) {
    %c0_i32 = arith.constant 0 : i32
    %c0_i32_0 = arith.constant 0 : i32
    return %arg0, %c0_i32 : i32, i32
  }
}

module attributes {stable_mosaic.version = 11 : i64} {
  func.func @_conv_stats_kernel(%arg0: i32, %arg1: i32, %arg2: memref<64x512xbf16, #tpu.memory_space<vmem>>, %arg3: memref<512x128xbf16, #tpu.memory_space<vmem>>, %arg4: memref<64x128xbf16, #tpu.memory_space<vmem>>, %arg5: memref<1x1x128xf32, #tpu.memory_space<vmem>>, %arg6: memref<1x1x128xf32, #tpu.memory_space<vmem>>) attributes {dimension_semantics = [#tpu.dimension_semantics<parallel>, #tpu.dimension_semantics<arbitrary>], iteration_bounds = array<i64: 1, 1>, scalar_prefetch = 0 : i64, scratch_operands = 0 : i64, tpu.core_type = #tpu.core_type<tc>, window_params = [{transform_indices = @transform_0, window_bounds = array<i64: 64, 512>}, {pipeline_mode = #tpu.pipeline_mode<synchronous>, transform_indices = @transform_1, window_bounds = array<i64: 512, 128>}, {transform_indices = @transform_2, window_bounds = array<i64: 64, 128>}, {transform_indices = @transform_3, window_bounds = array<i64: 1, 1, 128>}, {transform_indices = @transform_4, window_bounds = array<i64: 1, 1, 128>}]} {
    %c0_i32 = arith.constant 0 : i32
    %0 = arith.cmpi eq, %arg1, %c0_i32 : i32
    %1 = arith.extui %0 : i1 to i32
    %c0_i32_0 = arith.constant 0 : i32
    %2 = arith.cmpi ne, %1, %c0_i32_0 : i32
    scf.if %2 {
      %cst_20 = arith.constant 0.000000e+00 : f32
      %22 = vector.broadcast %cst_20 : f32 to vector<1x1x128xf32>
      %c0_21 = arith.constant 0 : index
      %c0_22 = arith.constant 0 : index
      %c0_23 = arith.constant 0 : index
      %23 = vector.load %arg5[%c0_21, %c0_22, %c0_23] : memref<1x1x128xf32, #tpu.memory_space<vmem>>, vector<1x1x128xf32>
      tpu.vector_store %arg5[%c0_21, %c0_22, %c0_23], %22 {strides = array<i32>} : memref<1x1x128xf32, #tpu.memory_space<vmem>>, vector<1x1x128xf32>,
      %cst_24 = arith.constant 0.000000e+00 : f32
      %24 = vector.broadcast %cst_24 : f32 to vector<1x1x128xf32>
      %c0_25 = arith.constant 0 : index
      %c0_26 = arith.constant 0 : index
      %c0_27 = arith.constant 0 : index
      %25 = vector.load %arg6[%c0_25, %c0_26, %c0_27] : memref<1x1x128xf32, #tpu.memory_space<vmem>>, vector<1x1x128xf32>
      tpu.vector_store %arg6[%c0_25, %c0_26, %c0_27], %24 {strides = array<i32>} : memref<1x1x128xf32, #tpu.memory_space<vmem>>, vector<1x1x128xf32>,
    } else {
    }
    %c0 = arith.constant 0 : index
    %c0_1 = arith.constant 0 : index
    %3 = vector.load %arg2[%c0, %c0_1] : memref<64x512xbf16, #tpu.memory_space<vmem>>, vector<64x512xbf16>
    %c0_2 = arith.constant 0 : index
    %c0_3 = arith.constant 0 : index
    %4 = vector.load %arg3[%c0_2, %c0_3] : memref<512x128xbf16, #tpu.memory_space<vmem>>, vector<512x128xbf16>
    %cst = arith.constant dense<0.000000e+00> : vector<64x128xf32>
    %5 = tpu.matmul %3, %4, %cst {dimension_numbers = #tpu.dot_dimension_numbers<[1], [0], [0], [1], [0, 0, 1, 1], [], []>} : vector<64x512xbf16>, vector<512x128xbf16>, vector<64x128xf32> -> vector<64x128xf32>
    %6 = arith.truncf %5 : vector<64x128xf32> to vector<64x128xbf16>
    %c0_4 = arith.constant 0 : index
    %c0_5 = arith.constant 0 : index
    %7 = vector.load %arg4[%c0_4, %c0_5] : memref<64x128xbf16, #tpu.memory_space<vmem>>, vector<64x128xbf16>
    tpu.vector_store %arg4[%c0_4, %c0_5], %6 {strides = array<i32>} : memref<64x128xbf16, #tpu.memory_space<vmem>>, vector<64x128xbf16>,
    %8 = arith.extf %6 : vector<64x128xbf16> to vector<64x128xf32>
    %c0_6 = arith.constant 0 : index
    %c0_7 = arith.constant 0 : index
    %c0_8 = arith.constant 0 : index
    %9 = vector.load %arg5[%c0_6, %c0_7, %c0_8] : memref<1x1x128xf32, #tpu.memory_space<vmem>>, vector<1x1x128xf32>
    %cst_9 = arith.constant dense<0.000000e+00> : vector<128xf32>
    %10 = vector.multi_reduction <add>, %8, %cst_9 [0] : vector<64x128xf32> to vector<128xf32>
    %11 = vector.shape_cast %10 : vector<128xf32> to vector<1x128xf32>
    %12 = vector.shape_cast %11 : vector<1x128xf32> to vector<1x1x128xf32>
    %13 = arith.addf %9, %12 : vector<1x1x128xf32>
    %c0_10 = arith.constant 0 : index
    %c0_11 = arith.constant 0 : index
    %c0_12 = arith.constant 0 : index
    %14 = vector.load %arg5[%c0_10, %c0_11, %c0_12] : memref<1x1x128xf32, #tpu.memory_space<vmem>>, vector<1x1x128xf32>
    tpu.vector_store %arg5[%c0_10, %c0_11, %c0_12], %13 {strides = array<i32>} : memref<1x1x128xf32, #tpu.memory_space<vmem>>, vector<1x1x128xf32>,
    %c0_13 = arith.constant 0 : index
    %c0_14 = arith.constant 0 : index
    %c0_15 = arith.constant 0 : index
    %15 = vector.load %arg6[%c0_13, %c0_14, %c0_15] : memref<1x1x128xf32, #tpu.memory_space<vmem>>, vector<1x1x128xf32>
    %16 = arith.mulf %8, %8 : vector<64x128xf32>
    %cst_16 = arith.constant dense<0.000000e+00> : vector<128xf32>
    %17 = vector.multi_reduction <add>, %16, %cst_16 [0] : vector<64x128xf32> to vector<128xf32>
    %18 = vector.shape_cast %17 : vector<128xf32> to vector<1x128xf32>
    %19 = vector.shape_cast %18 : vector<1x128xf32> to vector<1x1x128xf32>
    %20 = arith.addf %15, %19 : vector<1x1x128xf32>
    %c0_17 = arith.constant 0 : index
    %c0_18 = arith.constant 0 : index
    %c0_19 = arith.constant 0 : index
    %21 = vector.load %arg6[%c0_17, %c0_18, %c0_19] : memref<1x1x128xf32, #tpu.memory_space<vmem>>, vector<1x1x128xf32>
    tpu.vector_store %arg6[%c0_17, %c0_18, %c0_19], %20 {strides = array<i32>} : memref<1x1x128xf32, #tpu.memory_space<vmem>>, vector<1x1x128xf32>,
    return
  }
  func.func @transform_0(%arg0: i32, %arg1: i32) -> (i32, i32) {
    %c1_i32 = arith.constant 1 : i32
    %0 = arith.muli %arg0, %c1_i32 : i32
    %1 = arith.addi %0, %arg1 : i32
    %c0_i32 = arith.constant 0 : i32
    %c0_i32_0 = arith.constant 0 : i32
    return %1, %c0_i32 : i32, i32
  }
  func.func @transform_1(%arg0: i32, %arg1: i32) -> (i32, i32) {
    %c0_i32 = arith.constant 0 : i32
    %c0_i32_0 = arith.constant 0 : i32
    %c0_i32_1 = arith.constant 0 : i32
    return %c0_i32, %c0_i32_0 : i32, i32
  }
  func.func @transform_2(%arg0: i32, %arg1: i32) -> (i32, i32) {
    %c1_i32 = arith.constant 1 : i32
    %0 = arith.muli %arg0, %c1_i32 : i32
    %1 = arith.addi %0, %arg1 : i32
    %c0_i32 = arith.constant 0 : i32
    %c0_i32_0 = arith.constant 0 : i32
    return %1, %c0_i32 : i32, i32
  }
  func.func @transform_3(%arg0: i32, %arg1: i32) -> (i32, i32, i32) {
    %c0_i32 = arith.constant 0 : i32
    %c0_i32_0 = arith.constant 0 : i32
    %c0_i32_1 = arith.constant 0 : i32
    return %arg0, %c0_i32, %c0_i32_0 : i32, i32, i32
  }
  func.func @transform_4(%arg0: i32, %arg1: i32) -> (i32, i32, i32) {
    %c0_i32 = arith.constant 0 : i32
    %c0_i32_0 = arith.constant 0 : i32
    %c0_i32_1 = arith.constant 0 : i32
    return %arg0, %c0_i32, %c0_i32_0 : i32, i32, i32
  }
}

module attributes {stable_mosaic.version = 11 : i64} {
  func.func @_bn_lrelu_fc_kernel(%arg0: i32, %arg1: memref<64x128xbf16, #tpu.memory_space<vmem>>, %arg2: memref<1x1x128xf32, #tpu.memory_space<vmem>>, %arg3: memref<1x1x128xf32, #tpu.memory_space<vmem>>, %arg4: memref<1x128xf32, #tpu.memory_space<vmem>>, %arg5: memref<1x128xf32, #tpu.memory_space<vmem>>, %arg6: memref<16x128xf32, #tpu.memory_space<vmem>>, %arg7: memref<1x128xf32, #tpu.memory_space<vmem>>, %arg8: memref<4x128xf32, #tpu.memory_space<vmem>>) attributes {dimension_semantics = [#tpu.dimension_semantics<arbitrary>], iteration_bounds = array<i64: 1>, scalar_prefetch = 0 : i64, scratch_operands = 0 : i64, tpu.core_type = #tpu.core_type<tc>, window_params = [{pipeline_mode = #tpu.pipeline_mode<synchronous>, transform_indices = @transform_0, window_bounds = array<i64: 64, 128>}, {pipeline_mode = #tpu.pipeline_mode<synchronous>, transform_indices = @transform_1, window_bounds = array<i64: 1, 1, 128>}, {pipeline_mode = #tpu.pipeline_mode<synchronous>, transform_indices = @transform_2, window_bounds = array<i64: 1, 1, 128>}, {pipeline_mode = #tpu.pipeline_mode<synchronous>, transform_indices = @transform_3, window_bounds = array<i64: 1, 128>}, {pipeline_mode = #tpu.pipeline_mode<synchronous>, transform_indices = @transform_4, window_bounds = array<i64: 1, 128>}, {pipeline_mode = #tpu.pipeline_mode<synchronous>, transform_indices = @transform_5, window_bounds = array<i64: 16, 128>}, {pipeline_mode = #tpu.pipeline_mode<synchronous>, transform_indices = @transform_6, window_bounds = array<i64: 1, 128>}, {pipeline_mode = #tpu.pipeline_mode<synchronous>, transform_indices = @transform_7, window_bounds = array<i64: 4, 128>}]} {
    %c0 = arith.constant 0 : index
    %c0_0 = arith.constant 0 : index
    %c0_1 = arith.constant 0 : index
    %0 = vector.load %arg2[%c0, %c0_0, %c0_1] : memref<1x1x128xf32, #tpu.memory_space<vmem>>, vector<1x1x128xf32>
    %cst = arith.constant dense<0.000000e+00> : vector<1x128xf32>
    %1 = vector.multi_reduction <add>, %0, %cst [0] : vector<1x1x128xf32> to vector<1x128xf32>
    %c0_2 = arith.constant 0 : index
    %c0_3 = arith.constant 0 : index
    %c0_4 = arith.constant 0 : index
    %2 = vector.load %arg3[%c0_2, %c0_3, %c0_4] : memref<1x1x128xf32, #tpu.memory_space<vmem>>, vector<1x1x128xf32>
    %cst_5 = arith.constant dense<0.000000e+00> : vector<1x128xf32>
    %3 = vector.multi_reduction <add>, %2, %cst_5 [0] : vector<1x1x128xf32> to vector<1x128xf32>
    %cst_6 = arith.constant 1.562500e-02 : f32
    %4 = vector.broadcast %cst_6 : f32 to vector<1x128xf32>
    %5 = arith.mulf %1, %4 : vector<1x128xf32>
    %cst_7 = arith.constant 1.562500e-02 : f32
    %6 = vector.broadcast %cst_7 : f32 to vector<1x128xf32>
    %7 = arith.mulf %3, %6 : vector<1x128xf32>
    %8 = arith.mulf %5, %5 : vector<1x128xf32>
    %9 = arith.subf %7, %8 : vector<1x128xf32>
    %cst_8 = arith.constant 9.99999974E-6 : f32
    %10 = vector.broadcast %cst_8 : f32 to vector<1x128xf32>
    %11 = arith.addf %9, %10 : vector<1x128xf32>
    %12 = math.rsqrt %11 : vector<1x128xf32>
    %c0_9 = arith.constant 0 : index
    %c0_10 = arith.constant 0 : index
    %13 = vector.load %arg4[%c0_9, %c0_10] : memref<1x128xf32, #tpu.memory_space<vmem>>, vector<1x128xf32>
    %14 = arith.mulf %12, %13 : vector<1x128xf32>
    %c0_11 = arith.constant 0 : index
    %c0_12 = arith.constant 0 : index
    %15 = vector.load %arg1[%c0_11, %c0_12] : memref<64x128xbf16, #tpu.memory_space<vmem>>, vector<64x128xbf16>
    %16 = arith.extf %15 : vector<64x128xbf16> to vector<64x128xf32>
    %17 = vector.broadcast %5 : vector<1x128xf32> to vector<64x128xf32>
    %18 = arith.subf %16, %17 : vector<64x128xf32>
    %19 = vector.broadcast %14 : vector<1x128xf32> to vector<64x128xf32>
    %20 = arith.mulf %18, %19 : vector<64x128xf32>
    %c0_13 = arith.constant 0 : index
    %c0_14 = arith.constant 0 : index
    %21 = vector.load %arg5[%c0_13, %c0_14] : memref<1x128xf32, #tpu.memory_space<vmem>>, vector<1x128xf32>
    %22 = vector.broadcast %21 : vector<1x128xf32> to vector<64x128xf32>
    %23 = arith.addf %20, %22 : vector<64x128xf32>
    %cst_15 = arith.constant 2.000000e-01 : f32
    %24 = vector.broadcast %cst_15 : f32 to vector<64x128xf32>
    %25 = arith.mulf %24, %23 : vector<64x128xf32>
    %26 = arith.maximumf %23, %25 : vector<64x128xf32>
    %27 = vector.shape_cast %26 : vector<64x128xf32> to vector<4x16x128xf32>
    %c0_16 = arith.constant 0 : index
    %c0_17 = arith.constant 0 : index
    %28 = vector.load %arg6[%c0_16, %c0_17] : memref<16x128xf32, #tpu.memory_space<vmem>>, vector<16x128xf32>
    %29 = vector.shape_cast %28 : vector<16x128xf32> to vector<1x16x128xf32>
    %30 = vector.broadcast %29 : vector<1x16x128xf32> to vector<4x16x128xf32>
    %31 = arith.mulf %27, %30 : vector<4x16x128xf32>
    %cst_18 = arith.constant dense<0.000000e+00> : vector<4x16xf32>
    %32 = vector.multi_reduction <add>, %31, %cst_18 [2] : vector<4x16x128xf32> to vector<4x16xf32>
    %cst_19 = arith.constant dense<0.000000e+00> : vector<4xf32>
    %33 = vector.multi_reduction <add>, %32, %cst_19 [1] : vector<4x16xf32> to vector<4xf32>
    %34 = vector.shape_cast %33 : vector<4xf32> to vector<4x1xf32>
    %c0_20 = arith.constant 0 : index
    %c0_21 = arith.constant 0 : index
    %35 = vector.load %arg7[%c0_20, %c0_21] : memref<1x128xf32, #tpu.memory_space<vmem>>, vector<1x128xf32>
    %36 = vector.broadcast %34 : vector<4x1xf32> to vector<4x128xf32>
    %37 = vector.broadcast %35 : vector<1x128xf32> to vector<4x128xf32>
    %38 = arith.addf %36, %37 : vector<4x128xf32>
    %39 = arith.negf %38 : vector<4x128xf32>
    %40 = math.exp %39 : vector<4x128xf32>
    %cst_22 = arith.constant 1.000000e+00 : f32
    %41 = vector.broadcast %cst_22 : f32 to vector<4x128xf32>
    %42 = arith.addf %41, %40 : vector<4x128xf32>
    %43 = arith.divf %41, %42 : vector<4x128xf32>
    %c0_23 = arith.constant 0 : index
    %c0_24 = arith.constant 0 : index
    %44 = vector.load %arg8[%c0_23, %c0_24] : memref<4x128xf32, #tpu.memory_space<vmem>>, vector<4x128xf32>
    tpu.vector_store %arg8[%c0_23, %c0_24], %43 {strides = array<i32>} : memref<4x128xf32, #tpu.memory_space<vmem>>, vector<4x128xf32>,
    return
  }
  func.func @transform_0(%arg0: i32) -> (i32, i32) {
    %c0_i32 = arith.constant 0 : i32
    %c0_i32_0 = arith.constant 0 : i32
    %c0_i32_1 = arith.constant 0 : i32
    return %c0_i32, %c0_i32_0 : i32, i32
  }
  func.func @transform_1(%arg0: i32) -> (i32, i32, i32) {
    %c0_i32 = arith.constant 0 : i32
    %c0_i32_0 = arith.constant 0 : i32
    %c0_i32_1 = arith.constant 0 : i32
    %c0_i32_2 = arith.constant 0 : i32
    return %c0_i32, %c0_i32_0, %c0_i32_1 : i32, i32, i32
  }
  func.func @transform_2(%arg0: i32) -> (i32, i32, i32) {
    %c0_i32 = arith.constant 0 : i32
    %c0_i32_0 = arith.constant 0 : i32
    %c0_i32_1 = arith.constant 0 : i32
    %c0_i32_2 = arith.constant 0 : i32
    return %c0_i32, %c0_i32_0, %c0_i32_1 : i32, i32, i32
  }
  func.func @transform_3(%arg0: i32) -> (i32, i32) {
    %c0_i32 = arith.constant 0 : i32
    %c0_i32_0 = arith.constant 0 : i32
    %c0_i32_1 = arith.constant 0 : i32
    return %c0_i32, %c0_i32_0 : i32, i32
  }
  func.func @transform_4(%arg0: i32) -> (i32, i32) {
    %c0_i32 = arith.constant 0 : i32
    %c0_i32_0 = arith.constant 0 : i32
    %c0_i32_1 = arith.constant 0 : i32
    return %c0_i32, %c0_i32_0 : i32, i32
  }
  func.func @transform_5(%arg0: i32) -> (i32, i32) {
    %c0_i32 = arith.constant 0 : i32
    %c0_i32_0 = arith.constant 0 : i32
    %c0_i32_1 = arith.constant 0 : i32
    return %c0_i32, %c0_i32_0 : i32, i32
  }
  func.func @transform_6(%arg0: i32) -> (i32, i32) {
    %c0_i32 = arith.constant 0 : i32
    %c0_i32_0 = arith.constant 0 : i32
    %c0_i32_1 = arith.constant 0 : i32
    return %c0_i32, %c0_i32_0 : i32, i32
  }
  func.func @transform_7(%arg0: i32) -> (i32, i32) {
    %c0_i32 = arith.constant 0 : i32
    %c0_i32_0 = arith.constant 0 : i32
    %c0_i32_1 = arith.constant 0 : i32
    return %c0_i32, %c0_i32_0 : i32, i32
  }
}

</mosaic_0001>

<bundles_post_ra>
// kernel: discriminator_forward.5
= control target key start
LH: loop header
LB: loop body
LE: loop exit
PB: predicated region body
PF: predicated region fallthrough
CT: control target
= control target key end

     0   :  { %s1444_s12 = smov 0   ;;  %s1643_s0 = inlined_call_operand.vmem [shape: bf16[1024,32], index: 0, kind: input, shape index: {}]   ;;  %s1644_s1 = inlined_call_operand.vmem [shape: bf16[32,128], index: 1, kind: input, shape index: {}]   ;;  %s1645_s2 = inlined_call_operand.vmem [shape: f32[1,128], index: 2, kind: input, shape index: {}]   ;;  %s1646_s3 = inlined_call_operand.vmem [shape: bf16[1024,128], index: 3, kind: output, shape index: {}]  }
   0x1 LB: > { %s997_s13 = sadd.s32 4294967295, %s1422_s12   ;;  %p1001_p0 = scmp.ge.s32.totalorder %s1422_s12, 1  ;;  %s1422_s12 = sphi %s1444_s12, %s13_s12  }
   0x2   : > { %p138_p1 = scmp.lt.s32.totalorder %s1422_s12, 3 }
   0x4   : > { %p139_p2 = pnand %p1001_p0, %p138_p1 }
   0x5   : > { %s1002_s16 = sshll.u32 (!%p139_p2), %s997_s13, 6 }
   0x6   : > { %142 = sbr.rel (%p139_p2) target bundleno = 282 (0x11a), region = 32  ;;  %p163_p3 = scmp.lt.s32.totalorder (!%p139_p2), %s1002_s16, 127 }
   0xb   : > { %v1209_v0 = vld [vmem:[%s1644_s1 + $0x8] sm:$0xff]  ;;  %v1208_v1 = vld [vmem:[%s1644_s1] sm:$0xff]  ;;  %s1648_s16 = smov (!%p163_p3, %s1002_s16), 127  ;;  %vm419_vm0 = vcmask 261120  }
   0xc   : > { %522 = vmatpush.bf16.msra.mxu0 %v1209_v0  ;;  %1401 = vmatpush.bf16.msra.mxu1 %v1209_v0  ;;  %s1003_s19 = sshll.u32 %s1648_s16, 2  ;;  %v1535_v36 = vld [vmem:[%s1645_s2] ss:$0 sm:$0xff] }
   0xd   : > { %1402 = vmatpush.bf16.msra.mxu2 %v1209_v0  ;;  %1403 = vmatpush.bf16.msra.mxu3 %v1209_v0  ;;  %s1466_s22 = scalar_lea.vmem %s1643_s0, %s1003_s19  ;;  %s1548_s27 = scalar_lea.vmem %s1646_s3, %s1003_s19 }
   0xe   : > { %v1176_v2 = vld [vmem:[%s1466_s22] sm:$0xff]  ;;  %v1177_v6 = vld [vmem:[%s1466_s22 + $0x8] sm:$0xff]  ;;  %v1178_v10 = vld [vmem:[%s1466_s22 + $0x10] sm:$0xff] }
   0xf   : > { %v1184_v3 = vld [vmem:[%s1466_s22 + $0x40] sm:$0xff]  ;;  %v1185_v7 = vld [vmem:[%s1466_s22 + $0x48] sm:$0xff]  ;;  %v1186_v11 = vld [vmem:[%s1466_s22 + $0x50] sm:$0xff] }
  0x10   : > { %523 = vmatpush.bf16.msra.mxu0 %v1208_v1  ;;  %1404 = vmatpush.bf16.msra.mxu1 %v1208_v1  ;;  %v1192_v4 = vld [vmem:[%s1466_s22 + $0x80] sm:$0xff]  ;;  %v1193_v8 = vld [vmem:[%s1466_s22 + $0x88] sm:$0xff]  ;;  %v1194_v12 = vld [vmem:[%s1466_s22 + $0x90] sm:$0xff] }
  0x11   : > { %1405 = vmatpush.bf16.msra.mxu2 %v1208_v1  ;;  %1406 = vmatpush.bf16.msra.mxu3 %v1208_v1  ;;  %v1200_v5 = vld [vmem:[%s1466_s22 + $0xc0] sm:$0xff]  ;;  %v1201_v9 = vld [vmem:[%s1466_s22 + $0xc8] sm:$0xff]  ;;  %v1202_v13 = vld [vmem:[%s1466_s22 + $0xd0] sm:$0xff] }
  0x12   : > { %v1179_v14 = vld [vmem:[%s1466_s22 + $0x18] sm:$0xff]  ;;  %v1180_v18 = vld [vmem:[%s1466_s22 + $0x20] sm:$0xff]  ;;  %v1181_v22 = vld [vmem:[%s1466_s22 + $0x28] sm:$0xff] }
  0x13   : > { %1142 = vmatmul.msk.bf16.vlgmr.msra.gmra.mxu0 %vm419_vm0, %v1176_v2  ;;  %1150 = vmatmul.msk.bf16.vlgmr.msra.gmra.mxu1 %vm419_vm0, %v1184_v3  ;;  %v1187_v15 = vld [vmem:[%s1466_s22 + $0x58] sm:$0xff]  ;;  %v1188_v19 = vld [vmem:[%s1466_s22 + $0x60] sm:$0xff]  ;;  %v1189_v23 = vld [vmem:[%s1466_s22 + $0x68] sm:$0xff] }
  0x14   : > { %1158 = vmatmul.msk.bf16.vlgmr.msra.gmra.mxu2 %vm419_vm0, %v1192_v4  ;;  %1166 = vmatmul.msk.bf16.vlgmr.msra.gmra.mxu3 %vm419_vm0, %v1200_v5  ;;  %v1195_v16 = vld [vmem:[%s1466_s22 + $0x98] sm:$0xff]  ;;  %v1196_v20 = vld [vmem:[%s1466_s22 + $0xa0] sm:$0xff]  ;;  %v1197_v24 = vld [vmem:[%s1466_s22 + $0xa8] sm:$0xff] }
  0x15   : > { %v1203_v17 = vld [vmem:[%s1466_s22 + $0xd8] sm:$0xff]  ;;  %v1204_v21 = vld [vmem:[%s1466_s22 + $0xe0] sm:$0xff]  ;;  %v1205_v25 = vld [vmem:[%s1466_s22 + $0xe8] sm:$0xff] }
  0x16   : > { %v1182_v26 = vld [vmem:[%s1466_s22 + $0x30] sm:$0xff]  ;;  %v1183_v30 = vld [vmem:[%s1466_s22 + $0x38] sm:$0xff] }
  0x17   : > { %v1190_v27 = vld [vmem:[%s1466_s22 + $0x70] sm:$0xff]  ;;  %v1191_v31 = vld [vmem:[%s1466_s22 + $0x78] sm:$0xff] }
  0x18   : > { %v1198_v28 = vld [vmem:[%s1466_s22 + $0xb0] sm:$0xff]  ;;  %v1199_v32 = vld [vmem:[%s1466_s22 + $0xb8] sm:$0xff] }
  0x19   : > { %v1206_v29 = vld [vmem:[%s1466_s22 + $0xf0] sm:$0xff]  ;;  %v1207_v33 = vld [vmem:[%s1466_s22 + $0xf8] sm:$0xff] }
  0x23   : > { %1143 = vmatmul.msk.bf16.gmra.mxu0 %vm419_vm0, %v1177_v6  ;;  %1151 = vmatmul.msk.bf16.gmra.mxu1 %vm419_vm0, %v1185_v7 }
  0x24   : > { %1159 = vmatmul.msk.bf16.gmra.mxu2 %vm419_vm0, %v1193_v8  ;;  %1167 = vmatmul.msk.bf16.gmra.mxu3 %vm419_vm0, %v1201_v9 }
  0x33   : > { %1144 = vmatmul.msk.bf16.gmra.mxu0 %vm419_vm0, %v1178_v10  ;;  %1152 = vmatmul.msk.bf16.gmra.mxu1 %vm419_vm0, %v1186_v11 }
  0x34   : > { %1160 = vmatmul.msk.bf16.gmra.mxu2 %vm419_vm0, %v1194_v12  ;;  %1168 = vmatmul.msk.bf16.gmra.mxu3 %vm419_vm0, %v1202_v13 }
  0x43   : > { %1145 = vmatmul.msk.bf16.gmra.mxu0 %vm419_vm0, %v1179_v14  ;;  %1153 = vmatmul.msk.bf16.gmra.mxu1 %vm419_vm0, %v1187_v15 }
  0x44   : > { %1161 = vmatmul.msk.bf16.gmra.mxu2 %vm419_vm0, %v1195_v16  ;;  %1169 = vmatmul.msk.bf16.gmra.mxu3 %vm419_vm0, %v1203_v17 }
  0x53   : > { %1146 = vmatmul.msk.bf16.gmra.mxu0 %vm419_vm0, %v1180_v18  ;;  %1154 = vmatmul.msk.bf16.gmra.mxu1 %vm419_vm0, %v1188_v19 }
  0x54   : > { %1162 = vmatmul.msk.bf16.gmra.mxu2 %vm419_vm0, %v1196_v20  ;;  %1170 = vmatmul.msk.bf16.gmra.mxu3 %vm419_vm0, %v1204_v21 }
  0x63   : > { %1147 = vmatmul.msk.bf16.gmra.mxu0 %vm419_vm0, %v1181_v22  ;;  %1155 = vmatmul.msk.bf16.gmra.mxu1 %vm419_vm0, %v1189_v23 }
  0x64   : > { %1163 = vmatmul.msk.bf16.gmra.mxu2 %vm419_vm0, %v1197_v24  ;;  %1171 = vmatmul.msk.bf16.gmra.mxu3 %vm419_vm0, %v1205_v25 }
  0x73   : > { %1148 = vmatmul.msk.bf16.gmra.mxu0 %vm419_vm0, %v1182_v26  ;;  %1156 = vmatmul.msk.bf16.gmra.mxu1 %vm419_vm0, %v1190_v27 }
  0x74   : > { %1164 = vmatmul.msk.bf16.gmra.mxu2 %vm419_vm0, %v1198_v28  ;;  %1172 = vmatmul.msk.bf16.gmra.mxu3 %vm419_vm0, %v1206_v29 }
  0x83   : > { %1149 = vmatmul.msk.bf16.gmra.mxu0 %vm419_vm0, %v1183_v30  ;;  %1157 = vmatmul.msk.bf16.gmra.mxu1 %vm419_vm0, %v1191_v31 }
  0x84   : > { %1165 = vmatmul.msk.bf16.gmra.mxu2 %vm419_vm0, %v1199_v32  ;;  %1173 = vmatmul.msk.bf16.gmra.mxu3 %vm419_vm0, %v1207_v33 }
  0x90   : > { %v525_v34 = vpop.f32.mrf.mxu0  ;;  %v565_v35 = vpop.f32.mrf.mxu1 }
  0x91   : > { %v526_v37 = vadd.f32 %v1535_v36, %v525_v34  ;;  %v566_v38 = vadd.f32 %v1535_v36, %v565_v35 }
  0x93   : > { %v685_v43 = vmul.f32 0.2, %v526_v37  ;;  %v701_v44 = vmul.f32 0.2, %v566_v38 }
  0x95   : > { %v749_v51 = vmax.f32 %v526_v37, %v685_v43  ;;  %v765_v52 = vmax.f32 %v566_v38, %v701_v44 }
  0x97   : > { %v605_v39 = vpop.f32.mrf.mxu2  ;;  %v645_v40 = vpop.f32.mrf.mxu3 }
  0x98   : > { %v527_v41 = vpop.f32.mrf.mxu0  ;;  %v567_v42 = vpop.f32.mrf.mxu1  ;;  %v606_v49 = vadd.f32 %v1535_v36, %v605_v39  ;;  %v646_v50 = vadd.f32 %v1535_v36, %v645_v40 }
  0x99   : > { %v528_v45 = vadd.f32 %v1535_v36, %v527_v41  ;;  %v568_v46 = vadd.f32 %v1535_v36, %v567_v42 }
  0x9a   : > { %v717_v59 = vmul.f32 0.2, %v606_v49  ;;  %v733_v60 = vmul.f32 0.2, %v646_v50 }
  0x9b   : > { %v686_v47 = vmul.f32 0.2, %v528_v45  ;;  %v702_v48 = vmul.f32 0.2, %v568_v46 }
  0x9c   : > { %v781_v3 = vmax.f32 %v606_v49, %v717_v59  ;;  %v797_v4 = vmax.f32 %v646_v50, %v733_v60 }
  0x9d   : > { %v750_v53 = vmax.f32 %v528_v45, %v686_v47  ;;  %v766_v54 = vmax.f32 %v568_v46, %v702_v48 }
  0x9f   : > { %v1213_v55 = vpack.c.bf16 %v750_v53, %v749_v51  ;;  %v1253_v56 = vpack.c.bf16 %v766_v54, %v765_v52  ;;  %v607_v57 = vpop.f32.mrf.mxu2  ;;  %v647_v58 = vpop.f32.mrf.mxu3 }
  0xa0   : > { %v608_v61 = vadd.f32 %v1535_v36, %v607_v57  ;;  %v648_v62 = vadd.f32 %v1535_v36, %v647_v58  ;;  %v530_v63 = vpop.f32.mrf.mxu0  ;;  %v570_v0 = vpop.f32.mrf.mxu1 }
  0xa1   : > { %1214 = vst [vmem:[%s1548_s27] sm:$0xff] %v1213_v55   ;;  %v531_v7 = vadd.f32 %v1535_v36, %v530_v63  ;;  %v571_v8 = vadd.f32 %v1535_v36, %v570_v0 }
  0xa2   : > { %1377 = vst [vmem:[%s1548_s27 + $0x40] sm:$0xff] %v1253_v56   ;;  %v718_v1 = vmul.f32 0.2, %v608_v61  ;;  %v734_v2 = vmul.f32 0.2, %v648_v62 }
  0xa3   : > { %v687_v15 = vmul.f32 0.2, %v531_v7  ;;  %v703_v16 = vmul.f32 0.2, %v571_v8 }
  0xa4   : > { %v782_v5 = vmax.f32 %v608_v61, %v718_v1  ;;  %v798_v6 = vmax.f32 %v648_v62, %v734_v2 }
  0xa5   : > { %v751_v23 = vmax.f32 %v531_v7, %v687_v15  ;;  %v767_v24 = vmax.f32 %v571_v8, %v703_v16 }
  0xa6   : > { %v1293_v9 = vpack.c.bf16 %v782_v5, %v781_v3  ;;  %v1333_v10 = vpack.c.bf16 %v798_v6, %v797_v4 }
  0xa7   : > { %v610_v11 = vpop.f32.mrf.mxu2  ;;  %v650_v12 = vpop.f32.mrf.mxu3 }
  0xa8   : > { %1385 = vst [vmem:[%s1548_s27 + $0x80] sm:$0xff] %v1293_v9   ;;  %v532_v13 = vpop.f32.mrf.mxu0  ;;  %v572_v14 = vpop.f32.mrf.mxu1  ;;  %v611_v21 = vadd.f32 %v1535_v36, %v610_v11  ;;  %v651_v22 = vadd.f32 %v1535_v36, %v650_v12 }
  0xa9   : > { %1393 = vst [vmem:[%s1548_s27 + $0xc0] sm:$0xff] %v1333_v10   ;;  %v533_v17 = vadd.f32 %v1535_v36, %v532_v13  ;;  %v573_v18 = vadd.f32 %v1535_v36, %v572_v14 }
  0xaa   : > { %v719_v31 = vmul.f32 0.2, %v611_v21  ;;  %v735_v32 = vmul.f32 0.2, %v651_v22 }
  0xab   : > { %v688_v19 = vmul.f32 0.2, %v533_v17  ;;  %v704_v20 = vmul.f32 0.2, %v573_v18 }
  0xac   : > { %v783_v40 = vmax.f32 %v611_v21, %v719_v31  ;;  %v799_v41 = vmax.f32 %v651_v22, %v735_v32 }
  0xad   : > { %v752_v25 = vmax.f32 %v533_v17, %v688_v19  ;;  %v768_v26 = vmax.f32 %v573_v18, %v704_v20 }
  0xaf   : > { %v1218_v27 = vpack.c.bf16 %v752_v25, %v751_v23  ;;  %v1258_v28 = vpack.c.bf16 %v768_v26, %v767_v24  ;;  %v612_v29 = vpop.f32.mrf.mxu2  ;;  %v652_v30 = vpop.f32.mrf.mxu3 }
  0xb0   : > { %v613_v33 = vadd.f32 %v1535_v36, %v612_v29  ;;  %v653_v34 = vadd.f32 %v1535_v36, %v652_v30  ;;  %v535_v35 = vpop.f32.mrf.mxu0  ;;  %v575_v37 = vpop.f32.mrf.mxu1 }
  0xb1   : > { %1370 = vst [vmem:[%s1548_s27 + $0x8] sm:$0xff] %v1218_v27   ;;  %v536_v44 = vadd.f32 %v1535_v36, %v535_v35  ;;  %v576_v45 = vadd.f32 %v1535_v36, %v575_v37 }
  0xb2   : > { %1378 = vst [vmem:[%s1548_s27 + $0x48] sm:$0xff] %v1258_v28   ;;  %v720_v38 = vmul.f32 0.2, %v613_v33  ;;  %v736_v39 = vmul.f32 0.2, %v653_v34 }
  0xb3   : > { %v689_v52 = vmul.f32 0.2, %v536_v44  ;;  %v705_v53 = vmul.f32 0.2, %v576_v45 }
  0xb4   : > { %v784_v42 = vmax.f32 %v613_v33, %v720_v38  ;;  %v800_v43 = vmax.f32 %v653_v34, %v736_v39 }
  0xb5   : > { %v753_v60 = vmax.f32 %v536_v44, %v689_v52  ;;  %v769_v61 = vmax.f32 %v576_v45, %v705_v53 }
  0xb6   : > { %v1298_v46 = vpack.c.bf16 %v784_v42, %v783_v40  ;;  %v1338_v47 = vpack.c.bf16 %v800_v43, %v799_v41 }
  0xb7   : > { %v615_v48 = vpop.f32.mrf.mxu2  ;;  %v655_v49 = vpop.f32.mrf.mxu3 }
  0xb8   : > { %1386 = vst [vmem:[%s1548_s27 + $0x88] sm:$0xff] %v1298_v46   ;;  %v537_v50 = vpop.f32.mrf.mxu0  ;;  %v577_v51 = vpop.f32.mrf.mxu1  ;;  %v616_v58 = vadd.f32 %v1535_v36, %v615_v48  ;;  %v656_v59 = vadd.f32 %v1535_v36, %v655_v49 }
  0xb9   : > { %1394 = vst [vmem:[%s1548_s27 + $0xc8] sm:$0xff] %v1338_v47   ;;  %v538_v54 = vadd.f32 %v1535_v36, %v537_v50  ;;  %v578_v55 = vadd.f32 %v1535_v36, %v577_v51 }
  0xba   : > { %v721_v4 = vmul.f32 0.2, %v616_v58  ;;  %v737_v5 = vmul.f32 0.2, %v656_v59 }
  0xbb   : > { %v690_v56 = vmul.f32 0.2, %v538_v54  ;;  %v706_v57 = vmul.f32 0.2, %v578_v55 }
  0xbc   : > { %v785_v12 = vmax.f32 %v616_v58, %v721_v4  ;;  %v801_v13 = vmax.f32 %v656_v59, %v737_v5 }
  0xbd   : > { %v754_v62 = vmax.f32 %v538_v54, %v690_v56  ;;  %v770_v63 = vmax.f32 %v578_v55, %v706_v57 }
  0xbf   : > { %v1223_v0 = vpack.c.bf16 %v754_v62, %v753_v60  ;;  %v1263_v1 = vpack.c.bf16 %v770_v63, %v769_v61  ;;  %v617_v2 = vpop.f32.mrf.mxu2  ;;  %v657_v3 = vpop.f32.mrf.mxu3 }
  0xc0   : > { %v618_v6 = vadd.f32 %v1535_v36, %v617_v2  ;;  %v658_v7 = vadd.f32 %v1535_v36, %v657_v3  ;;  %v540_v8 = vpop.f32.mrf.mxu0  ;;  %v580_v9 = vpop.f32.mrf.mxu1 }
  0xc1   : > { %1371 = vst [vmem:[%s1548_s27 + $0x10] sm:$0xff] %v1223_v0   ;;  %v541_v16 = vadd.f32 %v1535_v36, %v540_v8  ;;  %v581_v17 = vadd.f32 %v1535_v36, %v580_v9 }
  0xc2   : > { %1379 = vst [vmem:[%s1548_s27 + $0x50] sm:$0xff] %v1263_v1   ;;  %v722_v10 = vmul.f32 0.2, %v618_v6  ;;  %v738_v11 = vmul.f32 0.2, %v658_v7 }
  0xc3   : > { %v691_v24 = vmul.f32 0.2, %v541_v16  ;;  %v707_v25 = vmul.f32 0.2, %v581_v17 }
  0xc4   : > { %v786_v14 = vmax.f32 %v618_v6, %v722_v10  ;;  %v802_v15 = vmax.f32 %v658_v7, %v738_v11 }
  0xc5   : > { %v755_v32 = vmax.f32 %v541_v16, %v691_v24  ;;  %v771_v33 = vmax.f32 %v581_v17, %v707_v25 }
  0xc6   : > { %v1303_v18 = vpack.c.bf16 %v786_v14, %v785_v12  ;;  %v1343_v19 = vpack.c.bf16 %v802_v15, %v801_v13 }
  0xc7   : > { %v620_v20 = vpop.f32.mrf.mxu2  ;;  %v660_v21 = vpop.f32.mrf.mxu3 }
  0xc8   : > { %1387 = vst [vmem:[%s1548_s27 + $0x90] sm:$0xff] %v1303_v18   ;;  %v542_v22 = vpop.f32.mrf.mxu0  ;;  %v582_v23 = vpop.f32.mrf.mxu1  ;;  %v621_v30 = vadd.f32 %v1535_v36, %v620_v20  ;;  %v661_v31 = vadd.f32 %v1535_v36, %v660_v21 }
  0xc9   : > { %1395 = vst [vmem:[%s1548_s27 + $0xd0] sm:$0xff] %v1343_v19   ;;  %v543_v26 = vadd.f32 %v1535_v36, %v542_v22  ;;  %v583_v27 = vadd.f32 %v1535_v36, %v582_v23 }
  0xca   : > { %v723_v41 = vmul.f32 0.2, %v621_v30  ;;  %v739_v42 = vmul.f32 0.2, %v661_v31 }
  0xcb   : > { %v692_v28 = vmul.f32 0.2, %v543_v26  ;;  %v708_v29 = vmul.f32 0.2, %v583_v27 }
  0xcc   : > { %v787_v49 = vmax.f32 %v621_v30, %v723_v41  ;;  %v803_v50 = vmax.f32 %v661_v31, %v739_v42 }
  0xcd   : > { %v756_v34 = vmax.f32 %v543_v26, %v692_v28  ;;  %v772_v35 = vmax.f32 %v583_v27, %v708_v29 }
  0xcf   : > { %v1228_v37 = vpack.c.bf16 %v756_v34, %v755_v32  ;;  %v1268_v38 = vpack.c.bf16 %v772_v35, %v771_v33  ;;  %v622_v39 = vpop.f32.mrf.mxu2  ;;  %v662_v40 = vpop.f32.mrf.mxu3 }
  0xd0   : > { %v623_v43 = vadd.f32 %v1535_v36, %v622_v39  ;;  %v663_v44 = vadd.f32 %v1535_v36, %v662_v40  ;;  %v545_v45 = vpop.f32.mrf.mxu0  ;;  %v585_v46 = vpop.f32.mrf.mxu1 }
  0xd1   : > { %1372 = vst [vmem:[%s1548_s27 + $0x18] sm:$0xff] %v1228_v37   ;;  %v546_v53 = vadd.f32 %v1535_v36, %v545_v45  ;;  %v586_v54 = vadd.f32 %v1535_v36, %v585_v46 }
  0xd2   : > { %1380 = vst [vmem:[%s1548_s27 + $0x58] sm:$0xff] %v1268_v38   ;;  %v724_v47 = vmul.f32 0.2, %v623_v43  ;;  %v740_v48 = vmul.f32 0.2, %v663_v44 }
  0xd3   : > { %v693_v61 = vmul.f32 0.2, %v546_v53  ;;  %v709_v62 = vmul.f32 0.2, %v586_v54 }
  0xd4   : > { %v788_v51 = vmax.f32 %v623_v43, %v724_v47  ;;  %v804_v52 = vmax.f32 %v663_v44, %v740_v48 }
  0xd5   : > { %v757_v5 = vmax.f32 %v546_v53, %v693_v61  ;;  %v773_v6 = vmax.f32 %v586_v54, %v709_v62 }
  0xd6   : > { %v1308_v55 = vpack.c.bf16 %v788_v51, %v787_v49  ;;  %v1348_v56 = vpack.c.bf16 %v804_v52, %v803_v50 }
  0xd7   : > { %v625_v57 = vpop.f32.mrf.mxu2  ;;  %v665_v58 = vpop.f32.mrf.mxu3 }
  0xd8   : > { %1388 = vst [vmem:[%s1548_s27 + $0x98] sm:$0xff] %v1308_v55   ;;  %v547_v59 = vpop.f32.mrf.mxu0  ;;  %v587_v60 = vpop.f32.mrf.mxu1  ;;  %v626_v3 = vadd.f32 %v1535_v36, %v625_v57  ;;  %v666_v4 = vadd.f32 %v1535_v36, %v665_v58 }
  0xd9   : > { %1396 = vst [vmem:[%s1548_s27 + $0xd8] sm:$0xff] %v1348_v56   ;;  %v548_v63 = vadd.f32 %v1535_v36, %v547_v59  ;;  %v588_v0 = vadd.f32 %v1535_v36, %v587_v60 }
  0xda   : > { %v725_v13 = vmul.f32 0.2, %v626_v3  ;;  %v741_v14 = vmul.f32 0.2, %v666_v4 }
  0xdb   : > { %v694_v1 = vmul.f32 0.2, %v548_v63  ;;  %v710_v2 = vmul.f32 0.2, %v588_v0 }
  0xdc   : > { %v789_v21 = vmax.f32 %v626_v3, %v725_v13  ;;  %v805_v22 = vmax.f32 %v666_v4, %v741_v14 }
  0xdd   : > { %v758_v7 = vmax.f32 %v548_v63, %v694_v1  ;;  %v774_v8 = vmax.f32 %v588_v0, %v710_v2 }
  0xdf   : > { %v1233_v9 = vpack.c.bf16 %v758_v7, %v757_v5  ;;  %v1273_v10 = vpack.c.bf16 %v774_v8, %v773_v6  ;;  %v627_v11 = vpop.f32.mrf.mxu2  ;;  %v667_v12 = vpop.f32.mrf.mxu3 }
  0xe0   : > { %v628_v15 = vadd.f32 %v1535_v36, %v627_v11  ;;  %v668_v16 = vadd.f32 %v1535_v36, %v667_v12  ;;  %v550_v17 = vpop.f32.mrf.mxu0  ;;  %v590_v18 = vpop.f32.mrf.mxu1 }
  0xe1   : > { %1373 = vst [vmem:[%s1548_s27 + $0x20] sm:$0xff] %v1233_v9   ;;  %v551_v25 = vadd.f32 %v1535_v36, %v550_v17  ;;  %v591_v26 = vadd.f32 %v1535_v36, %v590_v18 }
  0xe2   : > { %1381 = vst [vmem:[%s1548_s27 + $0x60] sm:$0xff] %v1273_v10   ;;  %v726_v19 = vmul.f32 0.2, %v628_v15  ;;  %v742_v20 = vmul.f32 0.2, %v668_v16 }
  0xe3   : > { %v695_v33 = vmul.f32 0.2, %v551_v25  ;;  %v711_v34 = vmul.f32 0.2, %v591_v26 }
  0xe4   : > { %v790_v23 = vmax.f32 %v628_v15, %v726_v19  ;;  %v806_v24 = vmax.f32 %v668_v16, %v742_v20 }
  0xe5   : > { %v759_v42 = vmax.f32 %v551_v25, %v695_v33  ;;  %v775_v43 = vmax.f32 %v591_v26, %v711_v34 }
  0xe6   : > { %v1313_v27 = vpack.c.bf16 %v790_v23, %v789_v21  ;;  %v1353_v28 = vpack.c.bf16 %v806_v24, %v805_v22 }
  0xe7   : > { %v630_v29 = vpop.f32.mrf.mxu2  ;;  %v670_v30 = vpop.f32.mrf.mxu3 }
  0xe8   : > { %1389 = vst [vmem:[%s1548_s27 + $0xa0] sm:$0xff] %v1313_v27   ;;  %v552_v31 = vpop.f32.mrf.mxu0  ;;  %v592_v32 = vpop.f32.mrf.mxu1  ;;  %v631_v40 = vadd.f32 %v1535_v36, %v630_v29  ;;  %v671_v41 = vadd.f32 %v1535_v36, %v670_v30 }
  0xe9   : > { %1397 = vst [vmem:[%s1548_s27 + $0xe0] sm:$0xff] %v1353_v28   ;;  %v553_v35 = vadd.f32 %v1535_v36, %v552_v31  ;;  %v593_v37 = vadd.f32 %v1535_v36, %v592_v32 }
  0xea   : > { %v727_v50 = vmul.f32 0.2, %v631_v40  ;;  %v743_v51 = vmul.f32 0.2, %v671_v41 }
  0xeb   : > { %v696_v38 = vmul.f32 0.2, %v553_v35  ;;  %v712_v39 = vmul.f32 0.2, %v593_v37 }
  0xec   : > { %v791_v58 = vmax.f32 %v631_v40, %v727_v50  ;;  %v807_v59 = vmax.f32 %v671_v41, %v743_v51 }
  0xed   : > { %v760_v44 = vmax.f32 %v553_v35, %v696_v38  ;;  %v776_v45 = vmax.f32 %v593_v37, %v712_v39 }
  0xef   : > { %v1238_v46 = vpack.c.bf16 %v760_v44, %v759_v42  ;;  %v1278_v47 = vpack.c.bf16 %v776_v45, %v775_v43  ;;  %v632_v48 = vpop.f32.mrf.mxu2  ;;  %v672_v49 = vpop.f32.mrf.mxu3 }
  0xf0   : > { %v633_v52 = vadd.f32 %v1535_v36, %v632_v48  ;;  %v673_v53 = vadd.f32 %v1535_v36, %v672_v49  ;;  %v555_v54 = vpop.f32.mrf.mxu0  ;;  %v595_v55 = vpop.f32.mrf.mxu1 }
  0xf1   : > { %1374 = vst [vmem:[%s1548_s27 + $0x28] sm:$0xff] %v1238_v46   ;;  %v556_v62 = vadd.f32 %v1535_v36, %v555_v54  ;;  %v596_v63 = vadd.f32 %v1535_v36, %v595_v55 }
  0xf2   : > { %1382 = vst [vmem:[%s1548_s27 + $0x68] sm:$0xff] %v1278_v47   ;;  %v728_v56 = vmul.f32 0.2, %v633_v52  ;;  %v744_v57 = vmul.f32 0.2, %v673_v53 }
  0xf3   : > { %v697_v6 = vmul.f32 0.2, %v556_v62  ;;  %v713_v7 = vmul.f32 0.2, %v596_v63 }
  0xf4   : > { %v792_v60 = vmax.f32 %v633_v52, %v728_v56  ;;  %v808_v61 = vmax.f32 %v673_v53, %v744_v57 }
  0xf5   : > { %v761_v14 = vmax.f32 %v556_v62, %v697_v6  ;;  %v777_v15 = vmax.f32 %v596_v63, %v713_v7 }
  0xf6   : > { %v1318_v0 = vpack.c.bf16 %v792_v60, %v791_v58  ;;  %v1358_v1 = vpack.c.bf16 %v808_v61, %v807_v59 }
  0xf7   : > { %v635_v2 = vpop.f32.mrf.mxu2  ;;  %v675_v3 = vpop.f32.mrf.mxu3 }
  0xf8   : > { %1390 = vst [vmem:[%s1548_s27 + $0xa8] sm:$0xff] %v1318_v0   ;;  %v557_v4 = vpop.f32.mrf.mxu0  ;;  %v597_v5 = vpop.f32.mrf.mxu1  ;;  %v636_v12 = vadd.f32 %v1535_v36, %v635_v2  ;;  %v676_v13 = vadd.f32 %v1535_v36, %v675_v3 }
  0xf9   : > { %1398 = vst [vmem:[%s1548_s27 + $0xe8] sm:$0xff] %v1358_v1   ;;  %v558_v8 = vadd.f32 %v1535_v36, %v557_v4  ;;  %v598_v9 = vadd.f32 %v1535_v36, %v597_v5 }
  0xfa   : > { %v729_v22 = vmul.f32 0.2, %v636_v12  ;;  %v745_v23 = vmul.f32 0.2, %v676_v13 }
  0xfb   : > { %v698_v10 = vmul.f32 0.2, %v558_v8  ;;  %v714_v11 = vmul.f32 0.2, %v598_v9 }
  0xfc   : > { %v793_v30 = vmax.f32 %v636_v12, %v729_v22  ;;  %v809_v31 = vmax.f32 %v676_v13, %v745_v23 }
  0xfd   : > { %v762_v16 = vmax.f32 %v558_v8, %v698_v10  ;;  %v778_v17 = vmax.f32 %v598_v9, %v714_v11 }
  0xff   : > { %v1243_v18 = vpack.c.bf16 %v762_v16, %v761_v14  ;;  %v1283_v19 = vpack.c.bf16 %v778_v17, %v777_v15  ;;  %v637_v20 = vpop.f32.mrf.mxu2  ;;  %v677_v21 = vpop.f32.mrf.mxu3 }
 0x100   : > { %v638_v24 = vadd.f32 %v1535_v36, %v637_v20  ;;  %v678_v25 = vadd.f32 %v1535_v36, %v677_v21  ;;  %v560_v26 = vpop.f32.mrf.mxu0  ;;  %v600_v27 = vpop.f32.mrf.mxu1 }
 0x101   : > { %1375 = vst [vmem:[%s1548_s27 + $0x30] sm:$0xff] %v1243_v18   ;;  %v561_v34 = vadd.f32 %v1535_v36, %v560_v26  ;;  %v601_v35 = vadd.f32 %v1535_v36, %v600_v27 }
 0x102   : > { %1383 = vst [vmem:[%s1548_s27 + $0x70] sm:$0xff] %v1283_v19   ;;  %v730_v28 = vmul.f32 0.2, %v638_v24  ;;  %v746_v29 = vmul.f32 0.2, %v678_v25 }
 0x103   : > { %v699_v43 = vmul.f32 0.2, %v561_v34  ;;  %v715_v44 = vmul.f32 0.2, %v601_v35 }
 0x104   : > { %v794_v32 = vmax.f32 %v638_v24, %v730_v28  ;;  %v810_v33 = vmax.f32 %v678_v25, %v746_v29 }
 0x105   : > { %v763_v51 = vmax.f32 %v561_v34, %v699_v43  ;;  %v779_v52 = vmax.f32 %v601_v35, %v715_v44 }
 0x106   : > { %v1323_v37 = vpack.c.bf16 %v794_v32, %v793_v30  ;;  %v1363_v38 = vpack.c.bf16 %v810_v33, %v809_v31 }
 0x107   : > { %v640_v39 = vpop.f32.mrf.mxu2  ;;  %v680_v40 = vpop.f32.mrf.mxu3 }
 0x108   : > { %1391 = vst [vmem:[%s1548_s27 + $0xb0] sm:$0xff] %v1323_v37   ;;  %v562_v41 = vpop.f32.mrf.mxu0  ;;  %v602_v42 = vpop.f32.mrf.mxu1  ;;  %v641_v49 = vadd.f32 %v1535_v36, %v640_v39  ;;  %v681_v50 = vadd.f32 %v1535_v36, %v680_v40 }
 0x109   : > { %1399 = vst [vmem:[%s1548_s27 + $0xf0] sm:$0xff] %v1363_v38   ;;  %v563_v45 = vadd.f32 %v1535_v36, %v562_v41  ;;  %v603_v46 = vadd.f32 %v1535_v36, %v602_v42 }
 0x10a   : > { %v731_v59 = vmul.f32 0.2, %v641_v49  ;;  %v747_v60 = vmul.f32 0.2, %v681_v50 }
 0x10b   : > { %v700_v47 = vmul.f32 0.2, %v563_v45  ;;  %v716_v48 = vmul.f32 0.2, %v603_v46 }
 0x10c   : > { %v795_v1 = vmax.f32 %v641_v49, %v731_v59  ;;  %v811_v2 = vmax.f32 %v681_v50, %v747_v60 }
 0x10d   : > { %v764_v53 = vmax.f32 %v563_v45, %v700_v47  ;;  %v780_v54 = vmax.f32 %v603_v46, %v716_v48 }
 0x10f   : > { %v1248_v55 = vpack.c.bf16 %v764_v53, %v763_v51  ;;  %v1288_v56 = vpack.c.bf16 %v780_v54, %v779_v52  ;;  %v642_v57 = vpop.f32.mrf.mxu2  ;;  %v682_v58 = vpop.f32.mrf.mxu3 }
 0x110   : > { %v643_v61 = vadd.f32 %v1535_v36, %v642_v57  ;;  %v683_v62 = vadd.f32 %v1535_v36, %v682_v58 }
 0x111   : > { %1376 = vst [vmem:[%s1548_s27 + $0x38] sm:$0xff] %v1248_v55  }
 0x112   : > { %1384 = vst [vmem:[%s1548_s27 + $0x78] sm:$0xff] %v1288_v56   ;;  %v732_v63 = vmul.f32 0.2, %v643_v61  ;;  %v748_v0 = vmul.f32 0.2, %v683_v62 }
 0x114   : > { %v796_v3 = vmax.f32 %v643_v61, %v732_v63  ;;  %v812_v4 = vmax.f32 %v683_v62, %v748_v0 }
 0x116   : > { %v1328_v5 = vpack.c.bf16 %v796_v3, %v795_v1  ;;  %v1368_v6 = vpack.c.bf16 %v812_v4, %v811_v2 }
 0x118   : > { %1392 = vst [vmem:[%s1548_s27 + $0xb8] sm:$0xff] %v1328_v5  }
 0x119   : > { %1400 = vst [vmem:[%s1548_s27 + $0xf8] sm:$0xff] %v1368_v6  }
 0x11a PF: > { %s13_s12 = sadd.s32 1, %s1422_s12  }
 0x11b   : > { %p10_p4 = scmp.ge.s32.totalorder %s13_s12, 4  }
 0x11d   :  { %12 = sbr.rel (!%p10_p4) target bundleno = 1 (0x1), region = 62 }

// kernel: discriminator_forward.6
= control target key start
LH: loop header
LB: loop body
LE: loop exit
PB: predicated region body
PF: predicated region fallthrough
CT: control target
= control target key end

     0   :  { %s1575_s1 = inlined_call_operand.vmem [shape: bf16[256,128], index: 1, kind: input, shape index: {}]   ;;  %s1576_s0 = inlined_call_operand.vmem [shape: bf16[256,256], index: 0, kind: input, shape index: {}]   ;;  %s1577_s2 = inlined_call_operand.vmem [shape: bf16[256,128], index: 2, kind: output, shape index: {0}]   ;;  %s1578_s3 = inlined_call_operand.vmem [shape: f32[1,1,128], index: 3, kind: output, shape index: {1}]   ;;  %s1579_s4 = inlined_call_operand.vmem [shape: f32[1,1,128], index: 4, kind: output, shape index: {2}]  }
   0x1   :  { %v1036_v0 = vld [vmem:[%s1575_s1 + $0x38] sm:$0xff]  ;;  %v1035_v2 = vld [vmem:[%s1575_s1 + $0x30] sm:$0xff]  ;;  %v1034_v4 = vld [vmem:[%s1575_s1 + $0x28] sm:$0xff] }
   0x2   :  { %v1044_v1 = vld [vmem:[%s1575_s1 + $0x78] sm:$0xff]  ;;  %379 = vmatpush.bf16.msra.mxu0 %v1036_v0  ;;  %v1043_v3 = vld [vmem:[%s1575_s1 + $0x70] sm:$0xff]  ;;  %1140 = vmatpush.bf16.msra.mxu2 %v1036_v0  ;;  %v1042_v5 = vld [vmem:[%s1575_s1 + $0x68] sm:$0xff] }
   0x3   :  { %468 = vmatpush.bf16.msra.mxu1 %v1044_v1  ;;  %1148 = vmatpush.bf16.msra.mxu3 %v1044_v1  ;;  %v1033_v6 = vld [vmem:[%s1575_s1 + $0x20] sm:$0xff]  ;;  %v1032_v8 = vld [vmem:[%s1575_s1 + $0x18] sm:$0xff]  ;;  %v1031_v10 = vld [vmem:[%s1575_s1 + $0x10] sm:$0xff] }
   0x4   :  { %v1041_v7 = vld [vmem:[%s1575_s1 + $0x60] sm:$0xff]  ;;  %v1040_v9 = vld [vmem:[%s1575_s1 + $0x58] sm:$0xff]  ;;  %v1039_v11 = vld [vmem:[%s1575_s1 + $0x50] sm:$0xff] }
   0x5   :  { %v1030_v12 = vld [vmem:[%s1575_s1 + $0x8] sm:$0xff]  ;;  %v1029_v14 = vld [vmem:[%s1575_s1] sm:$0xff]  ;;  %v815_v28 = vld [vmem:[%s1576_s0 + $0x10] sm:$0xf] }
   0x6   :  { %380 = vmatpush.bf16.msra.mxu0 %v1035_v2  ;;  %1141 = vmatpush.bf16.msra.mxu2 %v1035_v2  ;;  %v1038_v13 = vld [vmem:[%s1575_s1 + $0x48] sm:$0xff]  ;;  %v1037_v15 = vld [vmem:[%s1575_s1 + $0x40] sm:$0xff]  ;;  %v1000_v29 = vld [vmem:[%s1576_s0 + $0x14] sm:$0xf0] }
   0x7   :  { %469 = vmatpush.bf16.msra.mxu1 %v1043_v3  ;;  %1149 = vmatpush.bf16.msra.mxu3 %v1043_v3  ;;  %v807_v16 = vld [vmem:[%s1576_s0] sm:$0xf]  ;;  %v998_v17 = vld [vmem:[%s1576_s0 + $0x4] sm:$0xf0]  ;;  %v997_v18 = vld [vmem:[%s1576_s0 + $0x4] sm:$0xf]  ;;  %v816_v36 = vor.u32 %v1000_v29, %v815_v28 }
   0x8   :  { %v809_v19 = vld [vmem:[%s1576_s0 + $0x8] sm:$0xf0]  ;;  %v871_v20 = vld [vmem:[%s1576_s0 + $0x80] sm:$0xf]  ;;  %v1014_v21 = vld [vmem:[%s1576_s0 + $0x84] sm:$0xf0]  ;;  %v808_v24 = vor.u32 %v998_v17, %v807_v16 }
   0x9   :  { %v1013_v22 = vld [vmem:[%s1576_s0 + $0x84] sm:$0xf]  ;;  %v873_v23 = vld [vmem:[%s1576_s0 + $0x88] sm:$0xf0]  ;;  %v812_v25 = vor.u32 %v997_v18, %v809_v19  ;;  %v872_v26 = vor.u32 %v1014_v21, %v871_v20  ;;  %v999_v30 = vld [vmem:[%s1576_s0 + $0x14] sm:$0xf] }
   0xa   :  { %381 = vmatpush.bf16.msra.mxu0 %v1034_v4  ;;  %1142 = vmatpush.bf16.msra.mxu2 %v1034_v4  ;;  %v876_v27 = vor.u32 %v1013_v22, %v873_v23  ;;  %v817_v31 = vld [vmem:[%s1576_s0 + $0x18] sm:$0xf0]  ;;  %v879_v32 = vld [vmem:[%s1576_s0 + $0x90] sm:$0xf]  ;;  %v1016_v33 = vld [vmem:[%s1576_s0 + $0x94] sm:$0xf0] }
   0xb   :  { %470 = vmatpush.bf16.msra.mxu1 %v1042_v5  ;;  %1150 = vmatpush.bf16.msra.mxu3 %v1042_v5  ;;  %v1015_v34 = vld [vmem:[%s1576_s0 + $0x94] sm:$0xf]  ;;  %v881_v35 = vld [vmem:[%s1576_s0 + $0x98] sm:$0xf0]  ;;  %v820_v37 = vor.u32 %v999_v30, %v817_v31  ;;  %v880_v38 = vor.u32 %v1016_v33, %v879_v32  ;;  %v823_v40 = vld [vmem:[%s1576_s0 + $0x20] sm:$0xf] }
   0xc   :  { %v884_v39 = vor.u32 %v1015_v34, %v881_v35  ;;  %v1002_v41 = vld [vmem:[%s1576_s0 + $0x24] sm:$0xf0]  ;;  %v1001_v42 = vld [vmem:[%s1576_s0 + $0x24] sm:$0xf]  ;;  %v825_v43 = vld [vmem:[%s1576_s0 + $0x28] sm:$0xf0] }
   0xd   :  { %v887_v44 = vld [vmem:[%s1576_s0 + $0xa0] sm:$0xf]  ;;  %v1018_v45 = vld [vmem:[%s1576_s0 + $0xa4] sm:$0xf0]  ;;  %v1017_v46 = vld [vmem:[%s1576_s0 + $0xa4] sm:$0xf]  ;;  %v824_v48 = vor.u32 %v1002_v41, %v823_v40  ;;  %v828_v49 = vor.u32 %v1001_v42, %v825_v43 }
   0xe   :  { %382 = vmatpush.bf16.msra.mxu0 %v1033_v6  ;;  %1143 = vmatpush.bf16.msra.mxu2 %v1033_v6  ;;  %v889_v47 = vld [vmem:[%s1576_s0 + $0xa8] sm:$0xf0]  ;;  %v888_v50 = vor.u32 %v1018_v45, %v887_v44  ;;  %v831_v52 = vld [vmem:[%s1576_s0 + $0x30] sm:$0xf]  ;;  %v1004_v53 = vld [vmem:[%s1576_s0 + $0x34] sm:$0xf0] }
   0xf   :  { %471 = vmatpush.bf16.msra.mxu1 %v1041_v7  ;;  %1151 = vmatpush.bf16.msra.mxu3 %v1041_v7  ;;  %v892_v51 = vor.u32 %v1017_v46, %v889_v47  ;;  %v1003_v54 = vld [vmem:[%s1576_s0 + $0x34] sm:$0xf]  ;;  %v833_v55 = vld [vmem:[%s1576_s0 + $0x38] sm:$0xf0]  ;;  %v895_v56 = vld [vmem:[%s1576_s0 + $0xb0] sm:$0xf]  ;;  %v832_v60 = vor.u32 %v1004_v53, %v831_v52 }
  0x10   :  { %v1020_v57 = vld [vmem:[%s1576_s0 + $0xb4] sm:$0xf0]  ;;  %v1019_v58 = vld [vmem:[%s1576_s0 + $0xb4] sm:$0xf]  ;;  %v897_v59 = vld [vmem:[%s1576_s0 + $0xb8] sm:$0xf0]  ;;  %v836_v61 = vor.u32 %v1003_v54, %v833_v55 }
  0x11   :  { %v896_v62 = vor.u32 %v1020_v57, %v895_v56  ;;  %v900_v63 = vor.u32 %v1019_v58, %v897_v59  ;;  %v839_v0 = vld [vmem:[%s1576_s0 + $0x40] sm:$0xf]  ;;  %v1006_v1 = vld [vmem:[%s1576_s0 + $0x44] sm:$0xf0]  ;;  %v1005_v2 = vld [vmem:[%s1576_s0 + $0x44] sm:$0xf] }
  0x12   :  { %383 = vmatpush.bf16.msra.mxu0 %v1032_v8  ;;  %1144 = vmatpush.bf16.msra.mxu2 %v1032_v8  ;;  %v841_v3 = vld [vmem:[%s1576_s0 + $0x48] sm:$0xf0]  ;;  %v903_v4 = vld [vmem:[%s1576_s0 + $0xc0] sm:$0xf]  ;;  %v1022_v5 = vld [vmem:[%s1576_s0 + $0xc4] sm:$0xf0]  ;;  %v840_v8 = vor.u32 %v1006_v1, %v839_v0 }
  0x13   :  { %472 = vmatpush.bf16.msra.mxu1 %v1040_v9  ;;  %1152 = vmatpush.bf16.msra.mxu3 %v1040_v9  ;;  %v1021_v6 = vld [vmem:[%s1576_s0 + $0xc4] sm:$0xf]  ;;  %v905_v7 = vld [vmem:[%s1576_s0 + $0xc8] sm:$0xf0]  ;;  %v844_v9 = vor.u32 %v1005_v2, %v841_v3  ;;  %v911_v16 = vld [vmem:[%s1576_s0 + $0xd0] sm:$0xf] }
  0x14   :  { %v1024_v17 = vld [vmem:[%s1576_s0 + $0xd4] sm:$0xf0]  ;;  %v1023_v18 = vld [vmem:[%s1576_s0 + $0xd4] sm:$0xf]  ;;  %v913_v19 = vld [vmem:[%s1576_s0 + $0xd8] sm:$0xf0] }
  0x15   :  { %v912_v22 = vor.u32 %v1024_v17, %v911_v16  ;;  %v916_v23 = vor.u32 %v1023_v18, %v913_v19  ;;  %v919_v28 = vld [vmem:[%s1576_s0 + $0xe0] sm:$0xf]  ;;  %v1026_v29 = vld [vmem:[%s1576_s0 + $0xe4] sm:$0xf0]  ;;  %v1025_v30 = vld [vmem:[%s1576_s0 + $0xe4] sm:$0xf] }
  0x16   :  { %384 = vmatpush.bf16.msra.mxu0 %v1031_v10  ;;  %1145 = vmatpush.bf16.msra.mxu2 %v1031_v10  ;;  %v904_v10 = vor.u32 %v1022_v5, %v903_v4  ;;  %v921_v31 = vld [vmem:[%s1576_s0 + $0xe8] sm:$0xf0]  ;;  %v920_v34 = vor.u32 %v1026_v29, %v919_v28  ;;  %v927_v40 = vld [vmem:[%s1576_s0 + $0xf0] sm:$0xf]  ;;  %v1028_v41 = vld [vmem:[%s1576_s0 + $0xf4] sm:$0xf0] }
  0x17   :  { %473 = vmatpush.bf16.msra.mxu1 %v1039_v11  ;;  %1153 = vmatpush.bf16.msra.mxu3 %v1039_v11  ;;  %v908_v11 = vor.u32 %v1021_v6, %v905_v7  ;;  %v924_v35 = vor.u32 %v1025_v30, %v921_v31  ;;  %v1027_v42 = vld [vmem:[%s1576_s0 + $0xf4] sm:$0xf]  ;;  %v929_v43 = vld [vmem:[%s1576_s0 + $0xf8] sm:$0xf0]  ;;  %v928_v46 = vor.u32 %v1028_v41, %v927_v40 }
  0x18   :  { %v932_v47 = vor.u32 %v1027_v42, %v929_v43 }
  0x1a   :  { %385 = vmatpush.bf16.msra.mxu0 %v1030_v12  ;;  %1146 = vmatpush.bf16.msra.mxu2 %v1030_v12  ;;  %v847_v12 = vld [vmem:[%s1576_s0 + $0x50] sm:$0xf] }
  0x1b   :  { %474 = vmatpush.bf16.msra.mxu1 %v1038_v13  ;;  %1154 = vmatpush.bf16.msra.mxu3 %v1038_v13  ;;  %v1008_v13 = vld [vmem:[%s1576_s0 + $0x54] sm:$0xf0] }
  0x1c   :  { %v848_v20 = vor.u32 %v1008_v13, %v847_v12 }
  0x1e   :  { %386 = vmatpush.bf16.msra.mxu0 %v1029_v14  ;;  %1147 = vmatpush.bf16.msra.mxu2 %v1029_v14  ;;  %v1007_v14 = vld [vmem:[%s1576_s0 + $0x54] sm:$0xf] }
  0x1f   :  { %475 = vmatpush.bf16.msra.mxu1 %v1037_v15  ;;  %1155 = vmatpush.bf16.msra.mxu3 %v1037_v15  ;;  %v849_v15 = vld [vmem:[%s1576_s0 + $0x58] sm:$0xf0] }
  0x20   :  { %v852_v21 = vor.u32 %v1007_v14, %v849_v15 }
  0x21   :  { %387 = vmatmul.bf16.vlgmr.msra.gmra.mxu0 %v808_v24  ;;  %427 = vmatmul.bf16.vlgmr.msra.gmra.mxu2 %v872_v26  ;;  %v855_v24 = vld [vmem:[%s1576_s0 + $0x60] sm:$0xf]  ;;  %v1009_v26 = vld [vmem:[%s1576_s0 + $0x64] sm:$0xf] }
  0x22   :  { %476 = vmatmul.bf16.vlgmr.msra.gmra.mxu1 %v812_v25  ;;  %516 = vmatmul.bf16.vlgmr.msra.gmra.mxu3 %v876_v27  ;;  %v1010_v25 = vld [vmem:[%s1576_s0 + $0x64] sm:$0xf0]  ;;  %v857_v27 = vld [vmem:[%s1576_s0 + $0x68] sm:$0xf0] }
  0x23   :  { %v856_v32 = vor.u32 %v1010_v25, %v855_v24  ;;  %v860_v33 = vor.u32 %v1009_v26, %v857_v27 }
  0x31   :  { %392 = vmatmul.bf16.gmra.mxu0 %v816_v36  ;;  %432 = vmatmul.bf16.gmra.mxu2 %v880_v38  ;;  %v863_v36 = vld [vmem:[%s1576_s0 + $0x70] sm:$0xf]  ;;  %v1011_v38 = vld [vmem:[%s1576_s0 + $0x74] sm:$0xf] }
  0x32   :  { %481 = vmatmul.bf16.gmra.mxu1 %v820_v37  ;;  %521 = vmatmul.bf16.gmra.mxu3 %v884_v39  ;;  %v1012_v37 = vld [vmem:[%s1576_s0 + $0x74] sm:$0xf0]  ;;  %v865_v39 = vld [vmem:[%s1576_s0 + $0x78] sm:$0xf0] }
  0x33   :  { %v864_v44 = vor.u32 %v1012_v37, %v863_v36  ;;  %v868_v45 = vor.u32 %v1011_v38, %v865_v39 }
  0x41   :  { %397 = vmatmul.bf16.gmra.mxu0 %v824_v48  ;;  %437 = vmatmul.bf16.gmra.mxu2 %v888_v50 }
  0x42   :  { %486 = vmatmul.bf16.gmra.mxu1 %v828_v49  ;;  %526 = vmatmul.bf16.gmra.mxu3 %v892_v51 }
  0x51   :  { %402 = vmatmul.bf16.gmra.mxu0 %v832_v60  ;;  %442 = vmatmul.bf16.gmra.mxu2 %v896_v62 }
  0x52   :  { %491 = vmatmul.bf16.gmra.mxu1 %v836_v61  ;;  %531 = vmatmul.bf16.gmra.mxu3 %v900_v63 }
  0x61   :  { %407 = vmatmul.bf16.gmra.mxu0 %v840_v8  ;;  %447 = vmatmul.bf16.gmra.mxu2 %v904_v10 }
  0x62   :  { %496 = vmatmul.bf16.gmra.mxu1 %v844_v9  ;;  %536 = vmatmul.bf16.gmra.mxu3 %v908_v11 }
  0x71   :  { %412 = vmatmul.bf16.gmra.mxu0 %v848_v20  ;;  %452 = vmatmul.bf16.gmra.mxu2 %v912_v22 }
  0x72   :  { %501 = vmatmul.bf16.gmra.mxu1 %v852_v21  ;;  %541 = vmatmul.bf16.gmra.mxu3 %v916_v23 }
  0x81   :  { %417 = vmatmul.bf16.gmra.mxu0 %v856_v32  ;;  %457 = vmatmul.bf16.gmra.mxu2 %v920_v34 }
  0x82   :  { %506 = vmatmul.bf16.gmra.mxu1 %v860_v33  ;;  %546 = vmatmul.bf16.gmra.mxu3 %v924_v35 }
  0x91   :  { %422 = vmatmul.bf16.gmra.mxu0 %v864_v44  ;;  %462 = vmatmul.bf16.gmra.mxu2 %v928_v46 }
  0x92   :  { %511 = vmatmul.bf16.gmra.mxu1 %v868_v45  ;;  %551 = vmatmul.bf16.gmra.mxu3 %v932_v47 }
  0x9e   :  { %v388_v48 = vpop.f32.mrf.mxu0 }
  0x9f   :  { %v477_v49 = vpop.f32.mrf.mxu1 }
  0xa0   :  { %v478_v50 = vadd.f32 %v477_v49, %v388_v48 }
  0xa2   :  { %v557_v51 = vpack.c.bf16 %v478_v50, %v478_v50 }
  0xa4   :  { %v428_v52 = vpop.f32.mrf.mxu2  ;;  %v621_v57 = vunpack.c.l.bf16 %v557_v51 }
  0xa5   :  { %v517_v53 = vpop.f32.mrf.mxu3 }
  0xa6   :  { %v390_v54 = vpop.f32.mrf.mxu0  ;;  %v1426_v61 = vadd.f32 %v517_v53, %v428_v52  ;;  %v694_v62 = vmul.f32 %v621_v57, %v621_v57 }
  0xa7   :  { %v479_v55 = vpop.f32.mrf.mxu1 }
  0xa8   :  { %v480_v56 = vadd.f32 %v479_v55, %v390_v54 }
  0xaa   :  { %v558_v58 = vpack.c.bf16 %v480_v56, %v480_v56  ;;  %v1048_v59 = vpack.c.bf16 %v480_v56, %v478_v50 }
  0xac   :  { %1049 = vst [vmem:[%s1577_s2] sm:$0xff] %v1048_v59   ;;  %v622_v60 = vunpack.c.l.bf16 %v558_v58  ;;  %v430_v1 = vpop.f32.mrf.mxu2 }
  0xad   :  { %v519_v2 = vpop.f32.mrf.mxu3 }
  0xae   :  { %v654_v63 = vadd.f32 %v622_v60, %v621_v57  ;;  %v695_v0 = vmul.f32 %v622_v60, %v622_v60  ;;  %v393_v3 = vpop.f32.mrf.mxu0  ;;  %v1428_v5 = vadd.f32 %v519_v2, %v430_v1 }
  0xaf   :  { %v482_v4 = vpop.f32.mrf.mxu1 }
  0xb0   :  { %v726_v6 = vadd.f32 %v695_v0, %v694_v62  ;;  %v483_v7 = vadd.f32 %v482_v4, %v393_v3  ;;  %v1088_v8 = vpack.c.bf16 %v1428_v5, %v1426_v61 }
  0xb2   :  { %v559_v9 = vpack.c.bf16 %v483_v7, %v483_v7  ;;  %1132 = vst [vmem:[%s1577_s2 + $0x40] sm:$0xff] %v1088_v8  }
  0xb4   :  { %v623_v10 = vunpack.c.l.bf16 %v559_v9  ;;  %v433_v13 = vpop.f32.mrf.mxu2 }
  0xb5   :  { %v522_v14 = vpop.f32.mrf.mxu3 }
  0xb6   :  { %v655_v11 = vadd.f32 %v654_v63, %v623_v10  ;;  %v696_v12 = vmul.f32 %v623_v10, %v623_v10  ;;  %v395_v15 = vpop.f32.mrf.mxu0  ;;  %v1438_v22 = vadd.f32 %v522_v14, %v433_v13 }
  0xb7   :  { %v484_v16 = vpop.f32.mrf.mxu1 }
  0xb8   :  { %v727_v17 = vadd.f32 %v726_v6, %v696_v12  ;;  %v485_v18 = vadd.f32 %v484_v16, %v395_v15 }
  0xba   :  { %v560_v19 = vpack.c.bf16 %v485_v18, %v485_v18  ;;  %v1053_v20 = vpack.c.bf16 %v485_v18, %v483_v7 }
  0xbc   :  { %1125 = vst [vmem:[%s1577_s2 + $0x8] sm:$0xff] %v1053_v20   ;;  %v624_v21 = vunpack.c.l.bf16 %v560_v19  ;;  %v435_v25 = vpop.f32.mrf.mxu2 }
  0xbd   :  { %v524_v26 = vpop.f32.mrf.mxu3 }
  0xbe   :  { %v1440_v23 = vadd.f32 %v655_v11, %v624_v21  ;;  %v697_v24 = vmul.f32 %v624_v21, %v624_v21  ;;  %v398_v27 = vpop.f32.mrf.mxu0  ;;  %v1442_v29 = vadd.f32 %v524_v26, %v435_v25 }
  0xbf   :  { %v487_v28 = vpop.f32.mrf.mxu1 }
  0xc0   :  { %v1444_v30 = vadd.f32 %v727_v17, %v697_v24  ;;  %v1093_v31 = vpack.c.bf16 %v1442_v29, %v1438_v22  ;;  %v488_v36 = vadd.f32 %v487_v28, %v398_v27 }
  0xc2   :  { %1133 = vst [vmem:[%s1577_s2 + $0x48] sm:$0xff] %v1093_v31   ;;  %v561_v19 = vpack.c.bf16 %v488_v36, %v488_v36 }
  0xc4   :  { %v438_v32 = vpop.f32.mrf.mxu2  ;;  %v625_v31 = vunpack.c.l.bf16 %v561_v19 }
  0xc5   :  { %v527_v33 = vpop.f32.mrf.mxu3 }
  0xc6   :  { %v400_v34 = vpop.f32.mrf.mxu0  ;;  %v1454_v39 = vadd.f32 %v527_v33, %v438_v32 }
  0xc7   :  { %v489_v35 = vpop.f32.mrf.mxu1 }
  0xc8   :  { %v490_v37 = vadd.f32 %v489_v35, %v400_v34 }
  0xca   :  { %v1058_v38 = vpack.c.bf16 %v490_v37, %v488_v36  ;;  %v562_v21 = vpack.c.bf16 %v490_v37, %v490_v37  ;;  %v698_v36 = vmul.f32 %v625_v31, %v625_v31 }
  0xcc   :  { %1126 = vst [vmem:[%s1577_s2 + $0x10] sm:$0xff] %v1058_v38   ;;  %v440_v40 = vpop.f32.mrf.mxu2  ;;  %v626_v34 = vunpack.c.l.bf16 %v562_v21 }
  0xcd   :  { %v529_v41 = vpop.f32.mrf.mxu3 }
  0xce   :  { %v403_v42 = vpop.f32.mrf.mxu0  ;;  %v1456_v44 = vadd.f32 %v529_v41, %v440_v40  ;;  %v699_v40 = vmul.f32 %v626_v34, %v626_v34 }
  0xcf   :  { %v492_v43 = vpop.f32.mrf.mxu1 }
  0xd0   :  { %v1098_v45 = vpack.c.bf16 %v1456_v44, %v1454_v39  ;;  %v493_v50 = vadd.f32 %v492_v43, %v403_v42  ;;  %v657_v43 = vadd.f32 %v1440_v23, %v625_v31 }
  0xd2   :  { %1134 = vst [vmem:[%s1577_s2 + $0x50] sm:$0xff] %v1098_v45   ;;  %v563_v32 = vpack.c.bf16 %v493_v50, %v493_v50 }
  0xd4   :  { %v443_v46 = vpop.f32.mrf.mxu2  ;;  %v627_v38 = vunpack.c.l.bf16 %v563_v32 }
  0xd5   :  { %v532_v47 = vpop.f32.mrf.mxu3 }
  0xd6   :  { %v405_v48 = vpop.f32.mrf.mxu0  ;;  %v1466_v53 = vadd.f32 %v532_v47, %v443_v46 }
  0xd7   :  { %v494_v49 = vpop.f32.mrf.mxu1 }
  0xd8   :  { %v495_v51 = vadd.f32 %v494_v49, %v405_v48  ;;  %v729_v49 = vadd.f32 %v1444_v30, %v698_v36 }
  0xda   :  { %v1063_v52 = vpack.c.bf16 %v495_v51, %v493_v50  ;;  %v564_v35 = vpack.c.bf16 %v495_v51, %v495_v51  ;;  %v700_v50 = vmul.f32 %v627_v38, %v627_v38 }
  0xdc   :  { %1127 = vst [vmem:[%s1577_s2 + $0x18] sm:$0xff] %v1063_v52   ;;  %v445_v54 = vpop.f32.mrf.mxu2  ;;  %v628_v45 = vunpack.c.l.bf16 %v564_v35 }
  0xdd   :  { %v534_v55 = vpop.f32.mrf.mxu3 }
  0xde   :  { %v408_v56 = vpop.f32.mrf.mxu0  ;;  %v1468_v58 = vadd.f32 %v534_v55, %v445_v54 }
  0xdf   :  { %v497_v57 = vpop.f32.mrf.mxu1 }
  0xe0   :  { %v1103_v59 = vpack.c.bf16 %v1468_v58, %v1466_v53  ;;  %v498_v1 = vadd.f32 %v497_v57, %v408_v56  ;;  %v658_v56 = vadd.f32 %v657_v43, %v626_v34  ;;  %v730_v57 = vadd.f32 %v729_v49, %v699_v40 }
  0xe2   :  { %1135 = vst [vmem:[%s1577_s2 + $0x58] sm:$0xff] %v1103_v59   ;;  %v565_v37 = vpack.c.bf16 %v498_v1, %v498_v1 }
  0xe4   :  { %v448_v60 = vpop.f32.mrf.mxu2  ;;  %v629_v54 = vunpack.c.l.bf16 %v565_v37 }
  0xe5   :  { %v537_v62 = vpop.f32.mrf.mxu3 }
  0xe6   :  { %v410_v63 = vpop.f32.mrf.mxu0  ;;  %v1478_v4 = vadd.f32 %v537_v62, %v448_v60  ;;  %v701_v60 = vmul.f32 %v628_v45, %v628_v45  ;;  %v702_v23 = vmul.f32 %v629_v54, %v629_v54 }
  0xe7   :  { %v499_v0 = vpop.f32.mrf.mxu1 }
  0xe8   :  { %v500_v2 = vadd.f32 %v499_v0, %v410_v63  ;;  %v659_v0 = vadd.f32 %v658_v56, %v627_v38 }
  0xea   :  { %v1068_v3 = vpack.c.bf16 %v500_v2, %v498_v1  ;;  %v566_v46 = vpack.c.bf16 %v500_v2, %v500_v2  ;;  %v731_v1 = vadd.f32 %v730_v57, %v700_v50  ;;  %v574_v50 = vpack.c.bf16 %v1428_v5, %v1428_v5 }
  0xeb   :  { %v576_v5 = vpack.c.bf16 %v1442_v29, %v1442_v29 }
  0xec   :  { %1128 = vst [vmem:[%s1577_s2 + $0x20] sm:$0xff] %v1068_v3   ;;  %v450_v6 = vpop.f32.mrf.mxu2  ;;  %v630_v62 = vunpack.c.l.bf16 %v566_v46 }
  0xed   :  { %v539_v7 = vpop.f32.mrf.mxu3 }
  0xee   :  { %v413_v8 = vpop.f32.mrf.mxu0  ;;  %v1480_v10 = vadd.f32 %v539_v7, %v450_v6  ;;  %v660_v6 = vadd.f32 %v659_v0, %v628_v45 }
  0xef   :  { %v502_v9 = vpop.f32.mrf.mxu1 }
  0xf0   :  { %v1108_v11 = vpack.c.bf16 %v1480_v10, %v1478_v4  ;;  %v503_v16 = vadd.f32 %v502_v9, %v413_v8  ;;  %v732_v9 = vadd.f32 %v731_v1, %v701_v60 }
  0xf2   :  { %1136 = vst [vmem:[%s1577_s2 + $0x60] sm:$0xff] %v1108_v11   ;;  %v567_v55 = vpack.c.bf16 %v503_v16, %v503_v16  ;;  %v703_v11 = vmul.f32 %v630_v62, %v630_v62  ;;  %v733_v19 = vadd.f32 %v732_v9, %v702_v23 }
  0xf4   :  { %v453_v12 = vpop.f32.mrf.mxu2  ;;  %v631_v2 = vunpack.c.l.bf16 %v567_v55  ;;  %v734_v31 = vadd.f32 %v733_v19, %v703_v11 }
  0xf5   :  { %v542_v13 = vpop.f32.mrf.mxu3 }
  0xf6   :  { %v415_v14 = vpop.f32.mrf.mxu0  ;;  %v1490_v20 = vadd.f32 %v542_v13, %v453_v12  ;;  %v704_v21 = vmul.f32 %v631_v2, %v631_v2 }
  0xf7   :  { %v504_v15 = vpop.f32.mrf.mxu1 }
  0xf8   :  { %v505_v17 = vadd.f32 %v504_v15, %v415_v14  ;;  %v735_v35 = vadd.f32 %v734_v31, %v704_v21  ;;  %v580_v31 = vpack.c.bf16 %v1468_v58, %v1468_v58 }
  0xfa   :  { %v1073_v18 = vpack.c.bf16 %v505_v17, %v503_v16  ;;  %v568_v63 = vpack.c.bf16 %v505_v17, %v505_v17  ;;  %v661_v16 = vadd.f32 %v660_v6, %v629_v54 }
  0xfc   :  { %1129 = vst [vmem:[%s1577_s2 + $0x28] sm:$0xff] %v1073_v18   ;;  %v455_v24 = vpop.f32.mrf.mxu2  ;;  %v632_v12 = vunpack.c.l.bf16 %v568_v63  ;;  %v638_v63 = vunpack.c.l.bf16 %v574_v50 }
  0xfd   :  { %v544_v25 = vpop.f32.mrf.mxu3 }
  0xfe   :  { %v418_v26 = vpop.f32.mrf.mxu0  ;;  %v1492_v28 = vadd.f32 %v544_v25, %v455_v24  ;;  %v705_v32 = vmul.f32 %v632_v12, %v632_v12 }
  0xff   :  { %v507_v27 = vpop.f32.mrf.mxu1 }
 0x100   :  { %v1113_v33 = vpack.c.bf16 %v1492_v28, %v1490_v20  ;;  %v508_v51 = vadd.f32 %v507_v27, %v418_v26  ;;  %v662_v26 = vadd.f32 %v661_v16, %v630_v62  ;;  %v736_v43 = vadd.f32 %v735_v35, %v705_v32 }
 0x101   :  { %v640_v16 = vunpack.c.l.bf16 %v576_v5 }
 0x102   :  { %1137 = vst [vmem:[%s1577_s2 + $0x68] sm:$0xff] %v1113_v33   ;;  %v569_v30 = vpack.c.bf16 %v508_v51, %v508_v51  ;;  %v663_v33 = vadd.f32 %v662_v26, %v631_v2 }
 0x104   :  { %v458_v41 = vpop.f32.mrf.mxu2  ;;  %v633_v24 = vunpack.c.l.bf16 %v569_v30  ;;  %v664_v38 = vadd.f32 %v663_v33, %v632_v12 }
 0x105   :  { %v547_v42 = vpop.f32.mrf.mxu3 }
 0x106   :  { %v420_v47 = vpop.f32.mrf.mxu0  ;;  %v1504_v3 = vadd.f32 %v547_v42, %v458_v41  ;;  %v706_v36 = vmul.f32 %v633_v24, %v633_v24  ;;  %v573_v42 = vpack.c.bf16 %v1426_v61, %v1426_v61 }
 0x107   :  { %v509_v48 = vpop.f32.mrf.mxu1 }
 0x108   :  { %v510_v52 = vadd.f32 %v509_v48, %v420_v47  ;;  %v665_v47 = vadd.f32 %v664_v38, %v633_v24  ;;  %v637_v57 = vunpack.c.l.bf16 %v573_v42  ;;  %v579_v24 = vpack.c.bf16 %v1466_v53, %v1466_v53 }
 0x109   :  { %v582_v53 = vpack.c.bf16 %v1480_v10, %v1480_v10  ;;  %v585_v10 = vpack.c.bf16 %v1504_v3, %v1504_v3 }
 0x10a   :  { %v1078_v59 = vpack.c.bf16 %v510_v52, %v508_v51  ;;  %v570_v17 = vpack.c.bf16 %v510_v52, %v510_v52  ;;  %v737_v51 = vadd.f32 %v736_v43, %v706_v36  ;;  %v710_v9 = vmul.f32 %v637_v57, %v637_v57 }
 0x10b   :  { %v643_v35 = vunpack.c.l.bf16 %v579_v24  ;;  %v581_v36 = vpack.c.bf16 %v1478_v4, %v1478_v4  ;;  %v646_v50 = vunpack.c.l.bf16 %v582_v53 }
 0x10c   :  { %1130 = vst [vmem:[%s1577_s2 + $0x30] sm:$0xff] %v1078_v59   ;;  %v460_v7 = vpop.f32.mrf.mxu2  ;;  %v634_v34 = vunpack.c.l.bf16 %v570_v17  ;;  %v575_v59 = vpack.c.bf16 %v1438_v22, %v1438_v22  ;;  %v577_v22 = vpack.c.bf16 %v1454_v39, %v1454_v39 }
 0x10d   :  { %v549_v8 = vpop.f32.mrf.mxu3  ;;  %v716_v58 = vmul.f32 %v643_v35, %v643_v35 }
 0x10e   :  { %v423_v13 = vpop.f32.mrf.mxu0  ;;  %v1506_v15 = vadd.f32 %v549_v8, %v460_v7  ;;  %v707_v48 = vmul.f32 %v634_v34, %v634_v34  ;;  %v666_v52 = vadd.f32 %v665_v47, %v634_v34  ;;  %v1157_v7 = vmov 0.0  }
 0x10f   :  { %v512_v14 = vpop.f32.mrf.mxu1  ;;  %57 = vst [vmem:[%s1578_s3] sm:$0x1] %v1157_v7  ;;  %v639_v11 = vunpack.c.l.bf16 %v575_v59  ;;  %v641_v19 = vunpack.c.l.bf16 %v577_v22 }
 0x110   :  { %v513_v18 = vadd.f32 %v512_v14, %v423_v13  ;;  %v1118_v25 = vpack.c.bf16 %v1506_v15, %v1504_v3  ;;  %v738_v60 = vadd.f32 %v737_v51, %v707_v48  ;;  %58 = vst [vmem:[%s1579_s4] sm:$0x1] %v1157_v7  ;;  %v578_v13 = vpack.c.bf16 %v1456_v44, %v1456_v44 }
 0x111   :  { %v711_v14 = vmul.f32 %v638_v63, %v638_v63  ;;  %v712_v21 = vmul.f32 %v639_v11, %v639_v11  ;;  %v713_v44 = vmul.f32 %v640_v16, %v640_v16  ;;  %v714_v34 = vmul.f32 %v641_v19, %v641_v19 }
 0x112   :  { %v571_v27 = vpack.c.bf16 %v513_v18, %v513_v18  ;;  %1138 = vst [vmem:[%s1577_s2 + $0x70] sm:$0xff] %v1118_v25  }
 0x114   :  { %v635_v37 = vunpack.c.l.bf16 %v571_v27  ;;  %v463_v40 = vpop.f32.mrf.mxu2  ;;  %v642_v27 = vunpack.c.l.bf16 %v578_v13 }
 0x115   :  { %v552_v41 = vpop.f32.mrf.mxu3 }
 0x116   :  { %v425_v45 = vpop.f32.mrf.mxu0  ;;  %v708_v54 = vmul.f32 %v635_v37, %v635_v37  ;;  %v667_v61 = vadd.f32 %v666_v52, %v635_v37  ;;  %v1524_v0 = vadd.f32 %v552_v41, %v463_v40  ;;  %v715_v40 = vmul.f32 %v642_v27, %v642_v27 }
 0x117   :  { %v514_v46 = vpop.f32.mrf.mxu1  ;;  %v644_v41 = vunpack.c.l.bf16 %v580_v31 }
 0x118   :  { %v515_v49 = vadd.f32 %v514_v46, %v425_v45  ;;  %v739_v1 = vadd.f32 %v738_v60, %v708_v54  ;;  %v583_v45 = vpack.c.bf16 %v1490_v20, %v1490_v20  ;;  %v645_v46 = vunpack.c.l.bf16 %v581_v36 }
 0x119   :  { %v717_v4 = vmul.f32 %v644_v41, %v644_v41  ;;  %v719_v20 = vmul.f32 %v646_v50, %v646_v50 }
 0x11a   :  { %v572_v55 = vpack.c.bf16 %v515_v49, %v515_v49  ;;  %v1083_v56 = vpack.c.bf16 %v515_v49, %v513_v18  ;;  %v584_v49 = vpack.c.bf16 %v1492_v28, %v1492_v28  ;;  %v647_v54 = vunpack.c.l.bf16 %v583_v45 }
 0x11b   :  { %v649_v28 = vunpack.c.l.bf16 %v585_v10 }
 0x11c   :  { %1131 = vst [vmem:[%s1577_s2 + $0x38] sm:$0xff] %v1083_v56   ;;  %v636_v62 = vunpack.c.l.bf16 %v572_v55  ;;  %v465_v30 = vpop.f32.mrf.mxu2  ;;  %v718_v55 = vmul.f32 %v645_v46, %v645_v46  ;;  %v648_v59 = vunpack.c.l.bf16 %v584_v49 }
 0x11d   :  { %v554_v6 = vpop.f32.mrf.mxu3 }
 0x11e   :  { %v668_v23 = vadd.f32 %v667_v61, %v636_v62  ;;  %v709_v2 = vmul.f32 %v636_v62, %v636_v62  ;;  %v1531_v8 = vadd.f32 %v554_v6, %v465_v30  ;;  %v586_v62 = vpack.c.bf16 %v1506_v15, %v1506_v15 }
 0x120   :  { %v669_v29 = vadd.f32 %v668_v23, %v637_v57  ;;  %v740_v12 = vadd.f32 %v739_v1, %v709_v2  ;;  %v1123_v39 = vpack.c.bf16 %v1531_v8, %v1524_v0  ;;  %v587_v23 = vpack.c.bf16 %v1524_v0, %v1524_v0 }
 0x121   :  { %v721_v2 = vmul.f32 %v648_v59, %v648_v59  ;;  %v650_v3 = vunpack.c.l.bf16 %v586_v62  ;;  %v588_v22 = vpack.c.bf16 %v1531_v8, %v1531_v8 }
 0x122   :  { %v670_v17 = vadd.f32 %v669_v29, %v638_v63  ;;  %v741_v18 = vadd.f32 %v740_v12, %v710_v9  ;;  %1139 = vst [vmem:[%s1577_s2 + $0x78] sm:$0xff] %v1123_v39   ;;  %v720_v63 = vmul.f32 %v647_v54, %v647_v54  ;;  %v722_v9 = vmul.f32 %v649_v28, %v649_v28 }
 0x123   :  { %v651_v29 = vunpack.c.l.bf16 %v587_v23  ;;  %v723_v13 = vmul.f32 %v650_v3, %v650_v3  ;;  %v652_v39 = vunpack.c.l.bf16 %v588_v22 }
 0x124   :  { %v671_v25 = vadd.f32 %v670_v17, %v639_v11  ;;  %v742_v26 = vadd.f32 %v741_v18, %v711_v14 }
 0x125   :  { %v724_v17 = vmul.f32 %v651_v29, %v651_v29 }
 0x126   :  { %v672_v32 = vadd.f32 %v671_v25, %v640_v16  ;;  %v743_v33 = vadd.f32 %v742_v26, %v712_v21 }
 0x128   :  { %v673_v38 = vadd.f32 %v672_v32, %v641_v19  ;;  %v744_v37 = vadd.f32 %v743_v33, %v713_v44  ;;  %v725_v19 = vmul.f32 %v652_v39, %v652_v39 }
 0x12a   :  { %v674_v42 = vadd.f32 %v673_v38, %v642_v27  ;;  %v745_v43 = vadd.f32 %v744_v37, %v714_v34  ;;  %v653_v34 = vld [vmem:[%s1578_s3] sm:$0x1] }
 0x12b   :  { %v693_v38 = vld [vmem:[%s1579_s4] sm:$0x1] }
 0x12c   :  { %v746_v47 = vadd.f32 %v745_v43, %v715_v40  ;;  %v675_v48 = vadd.f32 %v674_v42, %v643_v35 }
 0x12e   :  { %v676_v51 = vadd.f32 %v675_v48, %v644_v41  ;;  %v747_v52 = vadd.f32 %v746_v47, %v716_v58 }
 0x130   :  { %v677_v56 = vadd.f32 %v676_v51, %v645_v46  ;;  %v748_v57 = vadd.f32 %v747_v52, %v717_v4 }
 0x132   :  { %v678_v60 = vadd.f32 %v677_v56, %v646_v50  ;;  %v749_v61 = vadd.f32 %v748_v57, %v718_v55 }
 0x134   :  { %v679_v5 = vadd.f32 %v678_v60, %v647_v54  ;;  %v750_v1 = vadd.f32 %v749_v61, %v719_v20 }
 0x136   :  { %v680_v30 = vadd.f32 %v679_v5, %v648_v59  ;;  %v751_v6 = vadd.f32 %v750_v1, %v720_v63 }
 0x138   :  { %v681_v7 = vadd.f32 %v680_v30, %v649_v28  ;;  %v752_v11 = vadd.f32 %v751_v6, %v721_v2 }
 0x13a   :  { %v753_v12 = vadd.f32 %v752_v11, %v722_v9  ;;  %v682_v15 = vadd.f32 %v681_v7, %v650_v3 }
 0x13c   :  { %v754_v14 = vadd.f32 %v753_v12, %v723_v13  ;;  %v683_v16 = vadd.f32 %v682_v15, %v651_v29 }
 0x13e   :  { %v755_v18 = vadd.f32 %v754_v14, %v724_v17  ;;  %v684_v0 = vadd.f32 %v683_v16, %v652_v39 }
 0x140   :  { %v685_v21 = vrot.slane %v684_v0, 4  ;;  %v756_v24 = vadd.f32 %v755_v18, %v725_v19 }
 0x142   :  { %v686_v25 = vadd.f32 %v685_v21, %v684_v0  ;;  %v757_v26 = vrot.slane %v756_v24, 4 }
 0x144   :  { %v687_v27 = vrot.slane %v686_v25, 2  ;;  %v758_v8 = vadd.f32 %v757_v26, %v756_v24 }
 0x146   :  { %v688_v44 = vadd.f32 %v687_v27, %v686_v25  ;;  %v759_v31 = vrot.slane %v758_v8, 2 }
 0x148   :  { %v689_v32 = vrot.slane %v688_v44, 1  ;;  %v760_v33 = vadd.f32 %v759_v31, %v758_v8 }
 0x14a   :  { %v690_v35 = vadd.f32 %v689_v32, %v688_v44  ;;  %v761_v36 = vrot.slane %v760_v33, 1 }
 0x14c   :  { %v691_v37 = vadd.f32 %v690_v35, %v653_v34  ;;  %v762_v40 = vadd.f32 %v761_v36, %v760_v33 }
 0x14e   :  { %692 = vst [vmem:[%s1578_s3] sm:$0x1] %v691_v37  ;;  %v763_v41 = vadd.f32 %v762_v40, %v693_v38 }
 0x150   :  { %764 = vst [vmem:[%s1579_s4] sm:$0x1] %v763_v41 }

// kernel: discriminator_forward.7
= control target key start
LH: loop header
LB: loop body
LE: loop exit
PB: predicated region body
PF: predicated region fallthrough
CT: control target
= control target key end

     0   :  { %s864_s1 = inlined_call_operand.vmem [shape: f32[1,1,128], index: 1, kind: input, shape index: {}]   ;;  %s865_s2 = inlined_call_operand.vmem [shape: f32[1,1,128], index: 2, kind: input, shape index: {}]   ;;  %s866_s4 = inlined_call_operand.vmem [shape: f32[1,128], index: 4, kind: input, shape index: {}]   ;;  %s867_s0 = inlined_call_operand.vmem [shape: bf16[256,128], index: 0, kind: input, shape index: {}]   ;;  %s868_s3 = inlined_call_operand.vmem [shape: f32[1,128], index: 3, kind: input, shape index: {}]   ;;  %s869_s5 = inlined_call_operand.vmem [shape: bf16[256,128], index: 5, kind: output, shape index: {}]  }
   0x1   :  { %v20_v0 = vld [vmem:[%s864_s1] sm:$0x1]  ;;  %v487_v8 = vld [vmem:[%s867_s0 + $0x8] sm:$0xff]   ;;  %v488_v9 = vld [vmem:[%s867_s0 + $0x10] sm:$0xff]  }
   0x2   :  { %v22_v1 = vld [vmem:[%s865_s2] sm:$0x1]  ;;  %v24_v2 = vmul.f32 0.00390625, %v20_v0  ;;  %v349_v13 = vunpack.c.l.bf16 %v487_v8  ;;  %v350_v14 = vunpack.c.h.bf16 %v487_v8  ;;  %v489_v15 = vld [vmem:[%s867_s0 + $0x18] sm:$0xff]   ;;  %v353_v17 = vunpack.c.l.bf16 %v488_v9  ;;  %v491_v19 = vld [vmem:[%s867_s0 + $0x28] sm:$0xff]  }
   0x3   :  { %v25_v3 = vmul.f32 0.00390625, %v22_v1  ;;  %v344_v7 = vld [vmem:[%s867_s0] sm:$0xff]   ;;  %v354_v18 = vunpack.c.h.bf16 %v488_v9  ;;  %v357_v20 = vunpack.c.l.bf16 %v489_v15  ;;  %v358_v21 = vunpack.c.h.bf16 %v489_v15  ;;  %v492_v24 = vld [vmem:[%s867_s0 + $0x30] sm:$0xff]   ;;  %v493_v25 = vld [vmem:[%s867_s0 + $0x38] sm:$0xff]  }
   0x4   :  { %v26_v4 = vmul.f32 %v24_v2, %v24_v2  ;;  %v345_v10 = vunpack.c.l.bf16 %v344_v7  ;;  %v346_v11 = vunpack.c.h.bf16 %v344_v7  ;;  %v565_v12 = vperm.slane %v24_v2, 0  ;;  %v490_v16 = vld [vmem:[%s867_s0 + $0x20] sm:$0xff]   ;;  %v495_v48 = vld [vmem:[%s867_s0 + $0x48] sm:$0xff]   ;;  %v496_v51 = vld [vmem:[%s867_s0 + $0x50] sm:$0xff]  }
   0x5   :  { %v361_v22 = vunpack.c.l.bf16 %v490_v16  ;;  %v362_v23 = vunpack.c.h.bf16 %v490_v16  ;;  %v365_v34 = vunpack.c.l.bf16 %v491_v19  ;;  %v494_v35 = vld [vmem:[%s867_s0 + $0x40] sm:$0xff]   ;;  %v366_v36 = vunpack.c.h.bf16 %v491_v19  ;;  %v497_v56 = vld [vmem:[%s867_s0 + $0x58] sm:$0xff]   ;;  %v499_v62 = vld [vmem:[%s867_s0 + $0x68] sm:$0xff]  }
   0x6   :  { %v27_v5 = vsub.f32 %v25_v3, %v26_v4  ;;  %v583_v27 = vsub.f32 %v345_v10, %v565_v12  ;;  %v586_v28 = vsub.f32 %v346_v11, %v565_v12  ;;  %v589_v29 = vsub.f32 %v349_v13, %v565_v12  ;;  %v498_v57 = vld [vmem:[%s867_s0 + $0x60] sm:$0xff]   ;;  %v500_v63 = vld [vmem:[%s867_s0 + $0x70] sm:$0xff]  }
   0x7   :  { %v592_v30 = vsub.f32 %v350_v14, %v565_v12  ;;  %v595_v32 = vsub.f32 %v353_v17, %v565_v12  ;;  %v598_v33 = vsub.f32 %v354_v18, %v565_v12  ;;  %v369_v37 = vunpack.c.l.bf16 %v492_v24 }
   0x8   :  { %v28_v6 = vadd.f32 1e-05, %v27_v5  ;;  %v370_v38 = vunpack.c.h.bf16 %v492_v24  ;;  %v373_v39 = vunpack.c.l.bf16 %v493_v25  ;;  %v604_v41 = vsub.f32 %v357_v20, %v565_v12  ;;  %v501_v5 = vld [vmem:[%s867_s0 + $0x78] sm:$0xff]  }
   0x9   :  { %v607_v42 = vsub.f32 %v358_v21, %v565_v12  ;;  %v374_v43 = vunpack.c.h.bf16 %v493_v25  ;;  %v610_v44 = vsub.f32 %v361_v22, %v565_v12  ;;  %v613_v45 = vsub.f32 %v362_v23, %v565_v12 }
   0xa   :  { %518 = vrsqrt.f32 %v28_v6  ;;  %v377_v46 = vunpack.c.l.bf16 %v494_v35  ;;  %v378_v47 = vunpack.c.h.bf16 %v494_v35  ;;  %vm35_vm0 = vweird.f32 %v28_v6  ;;  %v697_v35 = vld [vmem:[%s866_s4] ss:$0 sm:$0xff] }
   0xb   :  { %v619_v50 = vsub.f32 %v365_v34, %v565_v12  ;;  %v625_v52 = vsub.f32 %v366_v36, %v565_v12  ;;  %v628_v53 = vsub.f32 %v369_v37, %v565_v12  ;;  %v631_v54 = vsub.f32 %v370_v38, %v565_v12 }
   0xc   :  { %v634_v55 = vsub.f32 %v373_v39, %v565_v12  ;;  %v643_v59 = vsub.f32 %v374_v43, %v565_v12  ;;  %v381_v60 = vunpack.c.l.bf16 %v495_v48  ;;  %v382_v61 = vunpack.c.h.bf16 %v495_v48 }
   0xd   :  { %v658_v1 = vsub.f32 %v377_v46, %v565_v12  ;;  %v661_v2 = vsub.f32 %v378_v47, %v565_v12  ;;  %v385_v3 = vunpack.c.l.bf16 %v496_v51  ;;  %v386_v4 = vunpack.c.h.bf16 %v496_v51 }
   0xe   :  { %v389_v8 = vunpack.c.l.bf16 %v497_v56  ;;  %v390_v9 = vunpack.c.h.bf16 %v497_v56  ;;  %v393_v10 = vunpack.c.l.bf16 %v498_v57  ;;  %v394_v11 = vunpack.c.h.bf16 %v498_v57 }
   0xf   :  { %v397_v13 = vunpack.c.l.bf16 %v499_v62  ;;  %v398_v14 = vunpack.c.h.bf16 %v499_v62  ;;  %v401_v15 = vunpack.c.l.bf16 %v500_v63  ;;  %v402_v17 = vunpack.c.h.bf16 %v500_v63 }
  0x10   :  { %v519_v26 = vpop.eup %518  ;;  %v405_v18 = vunpack.c.l.bf16 %v501_v5  ;;  %v406_v19 = vunpack.c.h.bf16 %v501_v5  ;;  %v672_v21 = vsub.f32 %v381_v60, %v565_v12  ;;  %v675_v22 = vsub.f32 %v382_v61, %v565_v12 }
  0x11   :  { %v30_v31 = vmul.f32 %v519_v26, %v28_v6  ;;  %vm36_vm1 = vweird.f32 %v519_v26  ;;  %v39_v6 = vld [vmem:[%s868_s3] sm:$0x1]  ;;  %v678_v23 = vsub.f32 %v385_v3, %v565_v12  ;;  %v681_v24 = vsub.f32 %v386_v4, %v565_v12 }
  0x12   :  { %vm653_vm2 = vmor %vm35_vm0, %vm36_vm1  ;;  %v684_v25 = vsub.f32 %v389_v8, %v565_v12  ;;  %v700_v36 = vsub.f32 %v394_v11, %v565_v12  ;;  %v703_v37 = vsub.f32 %v397_v13, %v565_v12  ;;  %v706_v38 = vsub.f32 %v398_v14, %v565_v12 }
  0x13   :  { %v31_v40 = vmul.f32 %v519_v26, %v30_v31  ;;  %v690_v31 = vsub.f32 %v393_v10, %v565_v12  ;;  %v709_v39 = vsub.f32 %v401_v15, %v565_v12  ;;  %v715_v43 = vsub.f32 %v405_v18, %v565_v12 }
  0x14   :  { %v718_v46 = vsub.f32 %v406_v19, %v565_v12 }
  0x15   :  { %v32_v49 = vmul.f32 0.5, %v31_v40  ;;  %v712_v40 = vsub.f32 %v402_v17, %v565_v12 }
  0x17   :  { %v33_v58 = vsub.f32 1.5, %v32_v49 }
  0x19   :  { %v34_v7 = vmul.f32 %v519_v26, %v33_v58 }
  0x1b   :  { %v38_v16 = vsel %vm653_vm2, %v519_v26, %v34_v7  ;;  %v687_v26 = vsub.f32 %v390_v9, %v565_v12 }
  0x1c   :  { %v40_v20 = vmul.f32 %v39_v6, %v38_v16 }
  0x1e   :  { %v692_v34 = vperm.slane %v40_v20, 0 }
  0x20   :  { %v143_v47 = vmul.f32 %v692_v34, %v583_v27  ;;  %v144_v48 = vmul.f32 %v692_v34, %v586_v28  ;;  %v145_v49 = vmul.f32 %v692_v34, %v589_v29  ;;  %v146_v51 = vmul.f32 %v692_v34, %v592_v30 }
  0x21   :  { %v147_v56 = vmul.f32 %v692_v34, %v595_v32  ;;  %v148_v57 = vmul.f32 %v692_v34, %v598_v33  ;;  %v149_v12 = vmul.f32 %v692_v34, %v604_v41  ;;  %v150_v27 = vmul.f32 %v692_v34, %v607_v42 }
  0x22   :  { %v179_v28 = vadd.f32 %v697_v35, %v143_v47  ;;  %v180_v58 = vadd.f32 %v697_v35, %v144_v48  ;;  %v181_v29 = vadd.f32 %v697_v35, %v145_v49  ;;  %v182_v30 = vadd.f32 %v697_v35, %v146_v51 }
  0x23   :  { %v183_v60 = vadd.f32 %v697_v35, %v147_v56  ;;  %v184_v32 = vadd.f32 %v697_v35, %v148_v57  ;;  %v185_v33 = vadd.f32 %v697_v35, %v149_v12  ;;  %v186_v61 = vadd.f32 %v697_v35, %v150_v27 }
  0x24   :  { %v211_v41 = vmul.f32 0.2, %v179_v28  ;;  %v212_v62 = vmul.f32 0.2, %v180_v58  ;;  %v213_v63 = vmul.f32 0.2, %v181_v29  ;;  %v151_v42 = vmul.f32 %v692_v34, %v610_v44 }
  0x25   :  { %v214_v0 = vmul.f32 0.2, %v182_v30  ;;  %v215_v3 = vmul.f32 0.2, %v183_v60  ;;  %v216_v4 = vmul.f32 0.2, %v184_v32  ;;  %v152_v5 = vmul.f32 %v692_v34, %v613_v45 }
  0x26   :  { %v243_v7 = vmax.f32 %v179_v28, %v211_v41  ;;  %v244_v6 = vmax.f32 %v180_v58, %v212_v62  ;;  %v245_v8 = vmax.f32 %v181_v29, %v213_v63  ;;  %v217_v9 = vmul.f32 0.2, %v185_v33 }
  0x27   :  { %v246_v10 = vmax.f32 %v182_v30, %v214_v0  ;;  %v247_v11 = vmax.f32 %v183_v60, %v215_v3  ;;  %v248_v13 = vmax.f32 %v184_v32, %v216_v4  ;;  %v218_v14 = vmul.f32 0.2, %v186_v61 }
  0x28   :  { %v410_v15 = vpack.c.bf16 %v244_v6, %v243_v7  ;;  %v249_v16 = vmax.f32 %v185_v33, %v217_v9  ;;  %v187_v17 = vadd.f32 %v697_v35, %v151_v42  ;;  %v188_v44 = vadd.f32 %v697_v35, %v152_v5 }
  0x29   :  { %v415_v18 = vpack.c.bf16 %v246_v10, %v245_v8  ;;  %v420_v19 = vpack.c.bf16 %v248_v13, %v247_v11  ;;  %v250_v20 = vmax.f32 %v186_v61, %v218_v14  ;;  %v153_v45 = vmul.f32 %v692_v34, %v619_v50 }
  0x2a   :  { %411 = vst [vmem:[%s869_s5] sm:$0xff] %v410_v15   ;;  %v219_v47 = vmul.f32 0.2, %v187_v17  ;;  %v220_v48 = vmul.f32 0.2, %v188_v44  ;;  %v154_v49 = vmul.f32 %v692_v34, %v625_v52  ;;  %v155_v51 = vmul.f32 %v692_v34, %v628_v53 }
  0x2b   :  { %502 = vst [vmem:[%s869_s5 + $0x8] sm:$0xff] %v415_v18   ;;  %v425_v56 = vpack.c.bf16 %v250_v20, %v249_v16  ;;  %v189_v57 = vadd.f32 %v697_v35, %v153_v45  ;;  %v156_v50 = vmul.f32 %v692_v34, %v631_v54  ;;  %v157_v12 = vmul.f32 %v692_v34, %v634_v55 }
  0x2c   :  { %503 = vst [vmem:[%s869_s5 + $0x10] sm:$0xff] %v420_v19   ;;  %v251_v52 = vmax.f32 %v187_v17, %v219_v47  ;;  %v252_v27 = vmax.f32 %v188_v44, %v220_v48  ;;  %v190_v53 = vadd.f32 %v697_v35, %v154_v49  ;;  %v191_v28 = vadd.f32 %v697_v35, %v155_v51 }
  0x2d   :  { %504 = vst [vmem:[%s869_s5 + $0x18] sm:$0xff] %v425_v56   ;;  %v221_v58 = vmul.f32 0.2, %v189_v57  ;;  %v192_v54 = vadd.f32 %v697_v35, %v156_v50  ;;  %v158_v55 = vmul.f32 %v692_v34, %v643_v59  ;;  %v193_v29 = vadd.f32 %v697_v35, %v157_v12 }
  0x2e   :  { %v430_v30 = vpack.c.bf16 %v252_v27, %v251_v52  ;;  %v222_v60 = vmul.f32 0.2, %v190_v53  ;;  %v223_v32 = vmul.f32 0.2, %v191_v28  ;;  %v159_v33 = vmul.f32 %v692_v34, %v658_v1 }
  0x2f   :  { %v253_v61 = vmax.f32 %v189_v57, %v221_v58  ;;  %v224_v41 = vmul.f32 0.2, %v192_v54  ;;  %v194_v62 = vadd.f32 %v697_v35, %v158_v55  ;;  %v225_v63 = vmul.f32 0.2, %v193_v29 }
  0x30   :  { %505 = vst [vmem:[%s869_s5 + $0x20] sm:$0xff] %v430_v30   ;;  %v254_v42 = vmax.f32 %v190_v53, %v222_v60  ;;  %v255_v0 = vmax.f32 %v191_v28, %v223_v32  ;;  %v160_v59 = vmul.f32 %v692_v34, %v661_v2  ;;  %v195_v3 = vadd.f32 %v697_v35, %v159_v33 }
  0x31   :  { %v256_v4 = vmax.f32 %v192_v54, %v224_v41  ;;  %v226_v5 = vmul.f32 0.2, %v194_v62  ;;  %v257_v7 = vmax.f32 %v193_v29, %v225_v63  ;;  %v161_v1 = vmul.f32 %v692_v34, %v672_v21 }
  0x32   :  { %v435_v6 = vpack.c.bf16 %v254_v42, %v253_v61  ;;  %v196_v8 = vadd.f32 %v697_v35, %v160_v59  ;;  %v227_v9 = vmul.f32 0.2, %v195_v3  ;;  %v162_v10 = vmul.f32 %v692_v34, %v675_v22 }
  0x33   :  { %v440_v11 = vpack.c.bf16 %v256_v4, %v255_v0  ;;  %v258_v13 = vmax.f32 %v194_v62, %v226_v5  ;;  %v197_v14 = vadd.f32 %v697_v35, %v161_v1  ;;  %v163_v2 = vmul.f32 %v692_v34, %v678_v23 }
  0x34   :  { %506 = vst [vmem:[%s869_s5 + $0x28] sm:$0xff] %v435_v6   ;;  %v228_v15 = vmul.f32 0.2, %v196_v8  ;;  %v259_v21 = vmax.f32 %v195_v3, %v227_v9  ;;  %v198_v16 = vadd.f32 %v697_v35, %v162_v10  ;;  %v164_v17 = vmul.f32 %v692_v34, %v681_v24 }
  0x35   :  { %507 = vst [vmem:[%s869_s5 + $0x30] sm:$0xff] %v440_v11   ;;  %v445_v22 = vpack.c.bf16 %v258_v13, %v257_v7  ;;  %v229_v44 = vmul.f32 0.2, %v197_v14  ;;  %v199_v18 = vadd.f32 %v697_v35, %v163_v2  ;;  %v165_v23 = vmul.f32 %v692_v34, %v684_v25 }
  0x36   :  { %v260_v19 = vmax.f32 %v196_v8, %v228_v15  ;;  %v230_v20 = vmul.f32 0.2, %v198_v16  ;;  %v200_v45 = vadd.f32 %v697_v35, %v164_v17  ;;  %v166_v47 = vmul.f32 %v692_v34, %v687_v26 }
  0x37   :  { %508 = vst [vmem:[%s869_s5 + $0x38] sm:$0xff] %v445_v22   ;;  %v261_v24 = vmax.f32 %v197_v14, %v229_v44  ;;  %v231_v48 = vmul.f32 0.2, %v199_v18  ;;  %v201_v49 = vadd.f32 %v697_v35, %v165_v23  ;;  %v167_v51 = vmul.f32 %v692_v34, %v690_v31 }
  0x38   :  { %v450_v56 = vpack.c.bf16 %v260_v19, %v259_v21  ;;  %v262_v25 = vmax.f32 %v198_v16, %v230_v20  ;;  %v232_v57 = vmul.f32 0.2, %v200_v45  ;;  %v202_v50 = vadd.f32 %v697_v35, %v166_v47 }
  0x39   :  { %v263_v12 = vmax.f32 %v199_v18, %v231_v48  ;;  %v233_v52 = vmul.f32 0.2, %v201_v49  ;;  %v168_v26 = vmul.f32 %v692_v34, %v700_v36  ;;  %v203_v27 = vadd.f32 %v697_v35, %v167_v51 }
  0x3a   :  { %509 = vst [vmem:[%s869_s5 + $0x40] sm:$0xff] %v450_v56   ;;  %v455_v53 = vpack.c.bf16 %v262_v25, %v261_v24  ;;  %v264_v28 = vmax.f32 %v200_v45, %v232_v57  ;;  %v234_v58 = vmul.f32 0.2, %v202_v50  ;;  %v169_v31 = vmul.f32 %v692_v34, %v703_v37 }
  0x3b   :  { %v265_v54 = vmax.f32 %v201_v49, %v233_v52  ;;  %v204_v55 = vadd.f32 %v697_v35, %v168_v26  ;;  %v235_v29 = vmul.f32 0.2, %v203_v27  ;;  %v170_v30 = vmul.f32 %v692_v34, %v706_v38 }
  0x3c   :  { %510 = vst [vmem:[%s869_s5 + $0x48] sm:$0xff] %v455_v53   ;;  %v460_v36 = vpack.c.bf16 %v264_v28, %v263_v12  ;;  %v266_v60 = vmax.f32 %v202_v50, %v234_v58  ;;  %v205_v32 = vadd.f32 %v697_v35, %v169_v31  ;;  %v171_v33 = vmul.f32 %v692_v34, %v709_v39 }
  0x3d   :  { %v236_v61 = vmul.f32 0.2, %v204_v55  ;;  %v267_v37 = vmax.f32 %v203_v27, %v235_v29  ;;  %v206_v41 = vadd.f32 %v697_v35, %v170_v30  ;;  %v172_v62 = vmul.f32 %v692_v34, %v712_v40 }
  0x3e   :  { %511 = vst [vmem:[%s869_s5 + $0x50] sm:$0xff] %v460_v36   ;;  %v465_v38 = vpack.c.bf16 %v266_v60, %v265_v54  ;;  %v237_v63 = vmul.f32 0.2, %v205_v32  ;;  %v207_v42 = vadd.f32 %v697_v35, %v171_v33  ;;  %v173_v0 = vmul.f32 %v692_v34, %v715_v43 }
  0x3f   :  { %v268_v59 = vmax.f32 %v204_v55, %v236_v61  ;;  %v238_v39 = vmul.f32 0.2, %v206_v41  ;;  %v208_v3 = vadd.f32 %v697_v35, %v172_v62  ;;  %v174_v4 = vmul.f32 %v692_v34, %v718_v46 }
  0x40   :  { %512 = vst [vmem:[%s869_s5 + $0x58] sm:$0xff] %v465_v38   ;;  %v269_v40 = vmax.f32 %v205_v32, %v237_v63  ;;  %v239_v5 = vmul.f32 0.2, %v207_v42  ;;  %v209_v7 = vadd.f32 %v697_v35, %v173_v0 }
  0x41   :  { %v470_v1 = vpack.c.bf16 %v268_v59, %v267_v37  ;;  %v270_v6 = vmax.f32 %v206_v41, %v238_v39  ;;  %v240_v8 = vmul.f32 0.2, %v208_v3  ;;  %v210_v43 = vadd.f32 %v697_v35, %v174_v4 }
  0x42   :  { %v271_v9 = vmax.f32 %v207_v42, %v239_v5  ;;  %v241_v10 = vmul.f32 0.2, %v209_v7 }
  0x43   :  { %513 = vst [vmem:[%s869_s5 + $0x60] sm:$0xff] %v470_v1   ;;  %v475_v34 = vpack.c.bf16 %v270_v6, %v269_v40  ;;  %v272_v46 = vmax.f32 %v208_v3, %v240_v8  ;;  %v242_v11 = vmul.f32 0.2, %v210_v43 }
  0x44   :  { %v273_v13 = vmax.f32 %v209_v7, %v241_v10 }
  0x45   :  { %514 = vst [vmem:[%s869_s5 + $0x68] sm:$0xff] %v475_v34   ;;  %v480_v14 = vpack.c.bf16 %v272_v46, %v271_v9  ;;  %v274_v2 = vmax.f32 %v210_v43, %v242_v11 }
  0x47   :  { %515 = vst [vmem:[%s869_s5 + $0x70] sm:$0xff] %v480_v14   ;;  %v485_v35 = vpack.c.bf16 %v274_v2, %v273_v13 }
  0x49   :  { %516 = vst [vmem:[%s869_s5 + $0x78] sm:$0xff] %v485_v35  }

// kernel: discriminator_forward.8
= control target key start
LH: loop header
LB: loop body
LE: loop exit
PB: predicated region body
PF: predicated region fallthrough
CT: control target
= control target key end

     0   :  { %s1143_s1 = inlined_call_operand.vmem [shape: bf16[512,128], index: 1, kind: input, shape index: {}]   ;;  %s1144_s0 = inlined_call_operand.vmem [shape: bf16[64,512], index: 0, kind: input, shape index: {}]   ;;  %s1145_s2 = inlined_call_operand.vmem [shape: bf16[64,128], index: 2, kind: output, shape index: {0}]   ;;  %s1146_s3 = inlined_call_operand.vmem [shape: f32[1,1,128], index: 3, kind: output, shape index: {1}]   ;;  %s1147_s4 = inlined_call_operand.vmem [shape: f32[1,1,128], index: 4, kind: output, shape index: {2}]  }
   0x1   :  { %v846_v0 = vld [vmem:[%s1143_s1 + $0x38] sm:$0xff]  ;;  %v845_v4 = vld [vmem:[%s1143_s1 + $0x30] sm:$0xff]  ;;  %v844_v8 = vld [vmem:[%s1143_s1 + $0x28] sm:$0xff] }
   0x2   :  { %v854_v1 = vld [vmem:[%s1143_s1 + $0x78] sm:$0xff]  ;;  %411 = vmatpush.bf16.msra.mxu0 %v846_v0  ;;  %v853_v5 = vld [vmem:[%s1143_s1 + $0x70] sm:$0xff]  ;;  %v852_v9 = vld [vmem:[%s1143_s1 + $0x68] sm:$0xff] }
   0x3   :  { %v862_v2 = vld [vmem:[%s1143_s1 + $0xb8] sm:$0xff]  ;;  %440 = vmatpush.bf16.msra.mxu1 %v854_v1  ;;  %v861_v6 = vld [vmem:[%s1143_s1 + $0xb0] sm:$0xff]  ;;  %v860_v10 = vld [vmem:[%s1143_s1 + $0xa8] sm:$0xff] }
   0x4   :  { %v870_v3 = vld [vmem:[%s1143_s1 + $0xf8] sm:$0xff]  ;;  %469 = vmatpush.bf16.msra.mxu2 %v862_v2  ;;  %v869_v7 = vld [vmem:[%s1143_s1 + $0xf0] sm:$0xff]  ;;  %v868_v11 = vld [vmem:[%s1143_s1 + $0xe8] sm:$0xff] }
   0x5   :  { %498 = vmatpush.bf16.msra.mxu3 %v870_v3  ;;  %v843_v12 = vld [vmem:[%s1143_s1 + $0x20] sm:$0xff]  ;;  %v842_v16 = vld [vmem:[%s1143_s1 + $0x18] sm:$0xff]  ;;  %v841_v20 = vld [vmem:[%s1143_s1 + $0x10] sm:$0xff] }
   0x6   :  { %412 = vmatpush.bf16.msra.mxu0 %v845_v4  ;;  %v851_v13 = vld [vmem:[%s1143_s1 + $0x60] sm:$0xff]  ;;  %v850_v17 = vld [vmem:[%s1143_s1 + $0x58] sm:$0xff]  ;;  %v849_v21 = vld [vmem:[%s1143_s1 + $0x50] sm:$0xff] }
   0x7   :  { %441 = vmatpush.bf16.msra.mxu1 %v853_v5  ;;  %v859_v14 = vld [vmem:[%s1143_s1 + $0xa0] sm:$0xff]  ;;  %v858_v18 = vld [vmem:[%s1143_s1 + $0x98] sm:$0xff]  ;;  %v857_v22 = vld [vmem:[%s1143_s1 + $0x90] sm:$0xff] }
   0x8   :  { %470 = vmatpush.bf16.msra.mxu2 %v861_v6  ;;  %v867_v15 = vld [vmem:[%s1143_s1 + $0xe0] sm:$0xff]  ;;  %v866_v19 = vld [vmem:[%s1143_s1 + $0xd8] sm:$0xff]  ;;  %v865_v23 = vld [vmem:[%s1143_s1 + $0xd0] sm:$0xff] }
   0x9   :  { %499 = vmatpush.bf16.msra.mxu3 %v869_v7  ;;  %v840_v24 = vld [vmem:[%s1143_s1 + $0x8] sm:$0xff]  ;;  %v839_v28 = vld [vmem:[%s1143_s1] sm:$0xff]  ;;  %v825_v33 = vld [vmem:[%s1144_s0 + $0xc] sm:$0xf0] }
   0xa   :  { %413 = vmatpush.bf16.msra.mxu0 %v844_v8  ;;  %v848_v25 = vld [vmem:[%s1143_s1 + $0x48] sm:$0xff]  ;;  %v847_v29 = vld [vmem:[%s1143_s1 + $0x40] sm:$0xff]  ;;  %v635_v35 = vld [vmem:[%s1144_s0 + $0x10] sm:$0xf0] }
   0xb   :  { %442 = vmatpush.bf16.msra.mxu1 %v852_v9  ;;  %v856_v26 = vld [vmem:[%s1143_s1 + $0x88] sm:$0xff]  ;;  %v855_v30 = vld [vmem:[%s1143_s1 + $0x80] sm:$0xff]  ;;  %v826_v37 = vld [vmem:[%s1144_s0 + $0x14] sm:$0xf0] }
   0xc   :  { %471 = vmatpush.bf16.msra.mxu2 %v860_v10  ;;  %v864_v27 = vld [vmem:[%s1143_s1 + $0xc8] sm:$0xff]  ;;  %v863_v31 = vld [vmem:[%s1143_s1 + $0xc0] sm:$0xff]  ;;  %v643_v39 = vld [vmem:[%s1144_s0 + $0x18] sm:$0xf0] }
   0xd   :  { %500 = vmatpush.bf16.msra.mxu3 %v868_v11  ;;  %v633_v32 = vld [vmem:[%s1144_s0] sm:$0xf]  ;;  %v823_v34 = vld [vmem:[%s1144_s0 + $0x4] sm:$0xf]  ;;  %v641_v36 = vld [vmem:[%s1144_s0 + $0x8] sm:$0xf] }
   0xe   :  { %414 = vmatpush.bf16.msra.mxu0 %v843_v12  ;;  %v824_v38 = vld [vmem:[%s1144_s0 + $0xc] sm:$0xf]  ;;  %v634_v40 = vor.u32 %v825_v33, %v633_v32  ;;  %v638_v41 = vor.u32 %v823_v34, %v635_v35  ;;  %v642_v42 = vor.u32 %v826_v37, %v641_v36  ;;  %v649_v44 = vld [vmem:[%s1144_s0 + $0x20] sm:$0xf]  ;;  %v829_v45 = vld [vmem:[%s1144_s0 + $0x2c] sm:$0xf0] }
   0xf   :  { %443 = vmatpush.bf16.msra.mxu1 %v851_v13  ;;  %v646_v43 = vor.u32 %v824_v38, %v643_v39  ;;  %v827_v46 = vld [vmem:[%s1144_s0 + $0x24] sm:$0xf]  ;;  %v651_v47 = vld [vmem:[%s1144_s0 + $0x30] sm:$0xf0]  ;;  %v657_v48 = vld [vmem:[%s1144_s0 + $0x28] sm:$0xf]  ;;  %v650_v52 = vor.u32 %v829_v45, %v649_v44 }
  0x10   :  { %472 = vmatpush.bf16.msra.mxu2 %v859_v14  ;;  %v830_v49 = vld [vmem:[%s1144_s0 + $0x34] sm:$0xf0]  ;;  %v828_v50 = vld [vmem:[%s1144_s0 + $0x2c] sm:$0xf]  ;;  %v659_v51 = vld [vmem:[%s1144_s0 + $0x38] sm:$0xf0]  ;;  %v654_v53 = vor.u32 %v827_v46, %v651_v47 }
  0x11   :  { %501 = vmatpush.bf16.msra.mxu3 %v867_v15  ;;  %v658_v54 = vor.u32 %v830_v49, %v657_v48  ;;  %v662_v55 = vor.u32 %v828_v50, %v659_v51  ;;  %v665_v56 = vld [vmem:[%s1144_s0 + $0x40] sm:$0xf]  ;;  %v833_v57 = vld [vmem:[%s1144_s0 + $0x4c] sm:$0xf0]  ;;  %v831_v58 = vld [vmem:[%s1144_s0 + $0x44] sm:$0xf] }
  0x12   :  { %415 = vmatpush.bf16.msra.mxu0 %v842_v16  ;;  %v667_v59 = vld [vmem:[%s1144_s0 + $0x50] sm:$0xf0]  ;;  %v673_v60 = vld [vmem:[%s1144_s0 + $0x48] sm:$0xf]  ;;  %v834_v61 = vld [vmem:[%s1144_s0 + $0x54] sm:$0xf0]  ;;  %v666_v0 = vor.u32 %v833_v57, %v665_v56 }
  0x13   :  { %444 = vmatpush.bf16.msra.mxu1 %v850_v17  ;;  %v832_v62 = vld [vmem:[%s1144_s0 + $0x4c] sm:$0xf]  ;;  %v675_v63 = vld [vmem:[%s1144_s0 + $0x58] sm:$0xf0]  ;;  %v670_v1 = vor.u32 %v831_v58, %v667_v59  ;;  %v674_v2 = vor.u32 %v834_v61, %v673_v60  ;;  %v681_v4 = vld [vmem:[%s1144_s0 + $0x60] sm:$0xf] }
  0x14   :  { %473 = vmatpush.bf16.msra.mxu2 %v858_v18  ;;  %v678_v3 = vor.u32 %v832_v62, %v675_v63  ;;  %v837_v5 = vld [vmem:[%s1144_s0 + $0x6c] sm:$0xf0]  ;;  %v835_v6 = vld [vmem:[%s1144_s0 + $0x64] sm:$0xf]  ;;  %v683_v7 = vld [vmem:[%s1144_s0 + $0x70] sm:$0xf0] }
  0x15   :  { %502 = vmatpush.bf16.msra.mxu3 %v866_v19  ;;  %v689_v8 = vld [vmem:[%s1144_s0 + $0x68] sm:$0xf]  ;;  %v838_v9 = vld [vmem:[%s1144_s0 + $0x74] sm:$0xf0]  ;;  %v836_v10 = vld [vmem:[%s1144_s0 + $0x6c] sm:$0xf]  ;;  %v682_v12 = vor.u32 %v837_v5, %v681_v4  ;;  %v686_v13 = vor.u32 %v835_v6, %v683_v7 }
  0x16   :  { %416 = vmatpush.bf16.msra.mxu0 %v841_v20  ;;  %v691_v11 = vld [vmem:[%s1144_s0 + $0x78] sm:$0xf0]  ;;  %v690_v14 = vor.u32 %v838_v9, %v689_v8  ;;  %v895_v47 = vmov 0.0  }
  0x17   :  { %445 = vmatpush.bf16.msra.mxu1 %v849_v21  ;;  %v694_v15 = vor.u32 %v836_v10, %v691_v11  ;;  %57 = vst [vmem:[%s1146_s3] sm:$0x1] %v895_v47 }
  0x18   :  { %474 = vmatpush.bf16.msra.mxu2 %v857_v22  ;;  %58 = vst [vmem:[%s1147_s4] sm:$0x1] %v895_v47 }
  0x19   :  { %503 = vmatpush.bf16.msra.mxu3 %v865_v23 }
  0x1a   :  { %417 = vmatpush.bf16.msra.mxu0 %v840_v24 }
  0x1b   :  { %446 = vmatpush.bf16.msra.mxu1 %v848_v25 }
  0x1c   :  { %475 = vmatpush.bf16.msra.mxu2 %v856_v26 }
  0x1d   :  { %504 = vmatpush.bf16.msra.mxu3 %v864_v27 }
  0x1e   :  { %418 = vmatpush.bf16.msra.mxu0 %v839_v28 }
  0x1f   :  { %447 = vmatpush.bf16.msra.mxu1 %v847_v29 }
  0x20   :  { %476 = vmatpush.bf16.msra.mxu2 %v855_v30 }
  0x21   :  { %505 = vmatpush.bf16.msra.mxu3 %v863_v31  ;;  %419 = vmatmul.bf16.vlgmr.msra.gmra.mxu0 %v634_v40 }
  0x22   :  { %448 = vmatmul.bf16.vlgmr.msra.gmra.mxu1 %v638_v41 }
  0x23   :  { %477 = vmatmul.bf16.vlgmr.msra.gmra.mxu2 %v642_v42 }
  0x24   :  { %506 = vmatmul.bf16.vlgmr.msra.gmra.mxu3 %v646_v43 }
  0x31   :  { %424 = vmatmul.bf16.gmra.mxu0 %v650_v52 }
  0x32   :  { %453 = vmatmul.bf16.gmra.mxu1 %v654_v53 }
  0x33   :  { %482 = vmatmul.bf16.gmra.mxu2 %v658_v54 }
  0x34   :  { %511 = vmatmul.bf16.gmra.mxu3 %v662_v55 }
  0x41   :  { %429 = vmatmul.bf16.gmra.mxu0 %v666_v0 }
  0x42   :  { %458 = vmatmul.bf16.gmra.mxu1 %v670_v1 }
  0x43   :  { %487 = vmatmul.bf16.gmra.mxu2 %v674_v2 }
  0x44   :  { %516 = vmatmul.bf16.gmra.mxu3 %v678_v3 }
  0x51   :  { %434 = vmatmul.bf16.gmra.mxu0 %v682_v12 }
  0x52   :  { %463 = vmatmul.bf16.gmra.mxu1 %v686_v13 }
  0x53   :  { %492 = vmatmul.bf16.gmra.mxu2 %v690_v14 }
  0x54   :  { %521 = vmatmul.bf16.gmra.mxu3 %v694_v15 }
  0x9e   :  { %v420_v16 = vpop.f32.mrf.mxu0 }
  0x9f   :  { %v449_v17 = vpop.f32.mrf.mxu1 }
  0xa0   :  { %v450_v22 = vadd.f32 %v449_v17, %v420_v16 }
  0xa6   :  { %v478_v18 = vpop.f32.mrf.mxu2  ;;  %v422_v20 = vpop.f32.mrf.mxu0 }
  0xa7   :  { %v507_v19 = vpop.f32.mrf.mxu3  ;;  %v451_v21 = vpop.f32.mrf.mxu1  ;;  %v479_v23 = vadd.f32 %v478_v18, %v450_v22 }
  0xa8   :  { %v452_v24 = vadd.f32 %v451_v21, %v422_v20 }
  0xa9   :  { %v508_v30 = vadd.f32 %v507_v19, %v479_v23 }
  0xab   :  { %v527_v0 = vpack.c.bf16 %v508_v30, %v508_v30 }
  0xad   :  { %v543_v6 = vunpack.c.l.bf16 %v527_v0 }
  0xae   :  { %v480_v25 = vpop.f32.mrf.mxu2  ;;  %v425_v28 = vpop.f32.mrf.mxu0 }
  0xaf   :  { %v509_v26 = vpop.f32.mrf.mxu3  ;;  %v481_v27 = vadd.f32 %v480_v25, %v452_v24  ;;  %v454_v29 = vpop.f32.mrf.mxu1  ;;  %v568_v16 = vmul.f32 %v543_v6, %v543_v6 }
  0xb0   :  { %v455_v37 = vadd.f32 %v454_v29, %v425_v28 }
  0xb1   :  { %v510_v31 = vadd.f32 %v509_v26, %v481_v27 }
  0xb3   :  { %v874_v32 = vpack.c.bf16 %v510_v31, %v508_v30  ;;  %v528_v59 = vpack.c.bf16 %v510_v31, %v510_v31 }
  0xb5   :  { %875 = vst [vmem:[%s1145_s2] sm:$0xff] %v874_v32   ;;  %v544_v4 = vunpack.c.l.bf16 %v528_v59 }
  0xb6   :  { %v483_v33 = vpop.f32.mrf.mxu2  ;;  %v427_v35 = vpop.f32.mrf.mxu0 }
  0xb7   :  { %v512_v34 = vpop.f32.mrf.mxu3  ;;  %v456_v36 = vpop.f32.mrf.mxu1  ;;  %v484_v38 = vadd.f32 %v483_v33, %v455_v37  ;;  %v569_v12 = vmul.f32 %v544_v4, %v544_v4  ;;  %v552_v21 = vadd.f32 %v544_v4, %v543_v6 }
  0xb8   :  { %v457_v39 = vadd.f32 %v456_v36, %v427_v35 }
  0xb9   :  { %v513_v45 = vadd.f32 %v512_v34, %v484_v38  ;;  %v576_v23 = vadd.f32 %v569_v12, %v568_v16 }
  0xbb   :  { %v529_v1 = vpack.c.bf16 %v513_v45, %v513_v45 }
  0xbd   :  { %v545_v7 = vunpack.c.l.bf16 %v529_v1 }
  0xbe   :  { %v485_v40 = vpop.f32.mrf.mxu2  ;;  %v430_v43 = vpop.f32.mrf.mxu0 }
  0xbf   :  { %v514_v41 = vpop.f32.mrf.mxu3  ;;  %v486_v42 = vadd.f32 %v485_v40, %v457_v39  ;;  %v459_v44 = vpop.f32.mrf.mxu1  ;;  %v570_v17 = vmul.f32 %v545_v7, %v545_v7  ;;  %v553_v25 = vadd.f32 %v552_v21, %v545_v7 }
  0xc0   :  { %v460_v53 = vadd.f32 %v459_v44, %v430_v43 }
  0xc1   :  { %v515_v46 = vadd.f32 %v514_v41, %v486_v42  ;;  %v577_v28 = vadd.f32 %v576_v23, %v570_v17 }
  0xc3   :  { %v879_v48 = vpack.c.bf16 %v515_v46, %v513_v45  ;;  %v530_v5 = vpack.c.bf16 %v515_v46, %v515_v46 }
  0xc5   :  { %891 = vst [vmem:[%s1145_s2 + $0x8] sm:$0xff] %v879_v48   ;;  %v546_v13 = vunpack.c.l.bf16 %v530_v5 }
  0xc6   :  { %v488_v49 = vpop.f32.mrf.mxu2  ;;  %v432_v51 = vpop.f32.mrf.mxu0 }
  0xc7   :  { %v517_v50 = vpop.f32.mrf.mxu3  ;;  %v461_v52 = vpop.f32.mrf.mxu1  ;;  %v489_v54 = vadd.f32 %v488_v49, %v460_v53  ;;  %v571_v24 = vmul.f32 %v546_v13, %v546_v13  ;;  %v554_v31 = vadd.f32 %v553_v25, %v546_v13 }
  0xc8   :  { %v462_v55 = vadd.f32 %v461_v52, %v432_v51 }
  0xc9   :  { %v518_v62 = vadd.f32 %v517_v50, %v489_v54  ;;  %v578_v34 = vadd.f32 %v577_v28, %v571_v24 }
  0xcb   :  { %v531_v8 = vpack.c.bf16 %v518_v62, %v518_v62 }
  0xcd   :  { %v547_v18 = vunpack.c.l.bf16 %v531_v8 }
  0xce   :  { %v490_v56 = vpop.f32.mrf.mxu2  ;;  %v435_v60 = vpop.f32.mrf.mxu0 }
  0xcf   :  { %v519_v57 = vpop.f32.mrf.mxu3  ;;  %v491_v58 = vadd.f32 %v490_v56, %v462_v55  ;;  %v464_v61 = vpop.f32.mrf.mxu1  ;;  %v572_v29 = vmul.f32 %v547_v18, %v547_v18  ;;  %v555_v36 = vadd.f32 %v554_v31, %v547_v18 }
  0xd0   :  { %v465_v3 = vadd.f32 %v464_v61, %v435_v60  ;;  %v551_v60 = vld [vmem:[%s1146_s3] sm:$0x1] }
  0xd1   :  { %v520_v63 = vadd.f32 %v519_v57, %v491_v58  ;;  %v579_v39 = vadd.f32 %v578_v34, %v572_v29 }
  0xd3   :  { %v884_v2 = vpack.c.bf16 %v520_v63, %v518_v62  ;;  %v532_v14 = vpack.c.bf16 %v520_v63, %v520_v63  ;;  %v567_v63 = vld [vmem:[%s1147_s4] sm:$0x1] }
  0xd5   :  { %892 = vst [vmem:[%s1145_s2 + $0x10] sm:$0xff] %v884_v2   ;;  %v548_v26 = vunpack.c.l.bf16 %v532_v14 }
  0xd6   :  { %v493_v9 = vpop.f32.mrf.mxu2  ;;  %v437_v19 = vpop.f32.mrf.mxu0 }
  0xd7   :  { %v522_v10 = vpop.f32.mrf.mxu3  ;;  %v494_v11 = vadd.f32 %v493_v9, %v465_v3  ;;  %v466_v20 = vpop.f32.mrf.mxu1  ;;  %v573_v37 = vmul.f32 %v548_v26, %v548_v26  ;;  %v556_v40 = vadd.f32 %v555_v36, %v548_v26 }
  0xd8   :  { %v467_v27 = vadd.f32 %v466_v20, %v437_v19 }
  0xd9   :  { %v523_v15 = vadd.f32 %v522_v10, %v494_v11  ;;  %v580_v44 = vadd.f32 %v579_v39, %v573_v37 }
  0xdb   :  { %v533_v22 = vpack.c.bf16 %v523_v15, %v523_v15 }
  0xdd   :  { %v549_v32 = vunpack.c.l.bf16 %v533_v22 }
  0xde   :  { %v495_v30 = vpop.f32.mrf.mxu2 }
  0xdf   :  { %v496_v33 = vadd.f32 %v495_v30, %v467_v27  ;;  %v524_v35 = vpop.f32.mrf.mxu3  ;;  %v574_v41 = vmul.f32 %v549_v32, %v549_v32  ;;  %v557_v45 = vadd.f32 %v556_v40, %v549_v32 }
  0xe1   :  { %v525_v38 = vadd.f32 %v524_v35, %v496_v33  ;;  %v581_v47 = vadd.f32 %v580_v44, %v574_v41 }
  0xe3   :  { %v534_v42 = vpack.c.bf16 %v525_v38, %v525_v38  ;;  %v889_v43 = vpack.c.bf16 %v525_v38, %v523_v15 }
  0xe5   :  { %893 = vst [vmem:[%s1145_s2 + $0x18] sm:$0xff] %v889_v43   ;;  %v550_v46 = vunpack.c.l.bf16 %v534_v42 }
  0xe7   :  { %v558_v48 = vadd.f32 %v557_v45, %v550_v46  ;;  %v575_v49 = vmul.f32 %v550_v46, %v550_v46 }
  0xe9   :  { %v559_v50 = vrot.slane %v558_v48, 4  ;;  %v582_v51 = vadd.f32 %v581_v47, %v575_v49 }
  0xeb   :  { %v560_v52 = vadd.f32 %v559_v50, %v558_v48  ;;  %v583_v53 = vrot.slane %v582_v51, 4 }
  0xed   :  { %v561_v54 = vrot.slane %v560_v52, 2  ;;  %v584_v55 = vadd.f32 %v583_v53, %v582_v51 }
  0xef   :  { %v562_v56 = vadd.f32 %v561_v54, %v560_v52  ;;  %v585_v57 = vrot.slane %v584_v55, 2 }
  0xf1   :  { %v563_v58 = vrot.slane %v562_v56, 1  ;;  %v586_v59 = vadd.f32 %v585_v57, %v584_v55 }
  0xf3   :  { %v564_v61 = vadd.f32 %v563_v58, %v562_v56  ;;  %v587_v62 = vrot.slane %v586_v59, 1 }
  0xf5   :  { %v565_v0 = vadd.f32 %v564_v61, %v551_v60  ;;  %v588_v1 = vadd.f32 %v587_v62, %v586_v59 }
  0xf7   :  { %566 = vst [vmem:[%s1146_s3] sm:$0x1] %v565_v0  ;;  %v589_v2 = vadd.f32 %v588_v1, %v567_v63 }
  0xf9   :  { %590 = vst [vmem:[%s1147_s4] sm:$0x1] %v589_v2 }

// kernel: discriminator_forward.9
= control target key start
LH: loop header
LB: loop body
LE: loop exit
PB: predicated region body
PF: predicated region fallthrough
CT: control target
= control target key end

     0   :  { %vm152_vm3 = vcmask 130112   ;;  %vm163_vm4 = vcmask 1041409   ;;  %vm165_vm5 = vcmask 1042434   ;;  %vm167_vm6 = vcmask 1043459   ;;  %s311_s1 = inlined_call_operand.vmem [shape: f32[1,1,128], index: 1, kind: input, shape index: {}]   ;;  %s312_s2 = inlined_call_operand.vmem [shape: f32[1,1,128], index: 2, kind: input, shape index: {}]   ;;  %s313_s4 = inlined_call_operand.vmem [shape: f32[1,128], index: 4, kind: input, shape index: {}]   ;;  %s314_s0 = inlined_call_operand.vmem [shape: bf16[64,128], index: 0, kind: input, shape index: {}]   ;;  %s315_s3 = inlined_call_operand.vmem [shape: f32[1,128], index: 3, kind: input, shape index: {}]   ;;  %s316_s5 = inlined_call_operand.vmem [shape: f32[16,128], index: 5, kind: input, shape index: {}]   ;;  %s317_s6 = inlined_call_operand.vmem [shape: f32[1,128], index: 6, kind: input, shape index: {}]   ;;  %s318_s7 = inlined_call_operand.vmem [shape: f32[4,128], index: 7, kind: output, shape index: {}]  }
   0x1   :  { %v26_v0 = vld [vmem:[%s311_s1] sm:$0x1]  ;;  %v221_v10 = vld [vmem:[%s314_s0 + $0x10] sm:$0xff]   ;;  %v220_v12 = vld [vmem:[%s314_s0 + $0x8] sm:$0xff]   ;;  %vm170_vm7 = vcmask 125952  }
   0x2   :  { %v28_v1 = vld [vmem:[%s312_s2] sm:$0x1]  ;;  %v30_v2 = vmul.f32 0.015625, %v26_v0  ;;  %v214_v15 = vunpack.c.l.bf16 %v221_v10  ;;  %v210_v17 = vunpack.c.l.bf16 %v220_v12  ;;  %v215_v19 = vunpack.c.h.bf16 %v221_v10  ;;  %v222_v24 = vld [vmem:[%s314_s0 + $0x18] sm:$0xff]  }
   0x3   :  { %v31_v3 = vmul.f32 0.015625, %v28_v1  ;;  %v205_v13 = vld [vmem:[%s314_s0] sm:$0xff]   ;;  %v211_v22 = vunpack.c.h.bf16 %v220_v12  ;;  %v219_v33 = vunpack.c.h.bf16 %v222_v24  ;;  %v218_v36 = vunpack.c.l.bf16 %v222_v24 }
   0x4   :  { %v32_v4 = vmul.f32 %v30_v2, %v30_v2  ;;  %v64_v16 = vperm.slane %v30_v2, 0  ;;  %v206_v18 = vunpack.c.l.bf16 %v205_v13  ;;  %v45_v21 = vld [vmem:[%s315_s3] sm:$0x1]  ;;  %v207_v23 = vunpack.c.h.bf16 %v205_v13 }
   0x5   :  { %v223_v35 = vld [vmem:[%s313_s4] ss:$0 sm:$0xff] }
   0x6   :  { %v33_v5 = vsub.f32 %v31_v3, %v32_v4  ;;  %v70_v26 = vsub.f32 %v214_v15, %v64_v16  ;;  %v68_v28 = vsub.f32 %v210_v17, %v64_v16  ;;  %v66_v29 = vsub.f32 %v206_v18, %v64_v16  ;;  %v113_v54 = vld [vmem:[%s316_s5] sm:$0xff] }
   0x7   :  { %v71_v30 = vsub.f32 %v215_v19, %v64_v16  ;;  %v69_v31 = vsub.f32 %v211_v22, %v64_v16  ;;  %v67_v32 = vsub.f32 %v207_v23, %v64_v16  ;;  %v73_v43 = vsub.f32 %v219_v33, %v64_v16 }
   0x8   :  { %v34_v6 = vadd.f32 1e-05, %v33_v5  ;;  %v72_v50 = vsub.f32 %v218_v36, %v64_v16  ;;  %v114_v5 = vld [vmem:[%s316_s5 + $0x8] sm:$0xff]  ;;  %v147_v17 = vlaneseq }
   0xa   :  { %225 = vrsqrt.f32 %v34_v6  ;;  %vm41_vm0 = vweird.f32 %v34_v6 }
  0x10   :  { %v226_v7 = vpop.eup %225 }
  0x11   :  { %v36_v8 = vmul.f32 %v226_v7, %v34_v6  ;;  %vm42_vm1 = vweird.f32 %v226_v7 }
  0x12   :  { %vm43_vm2 = vmor %vm41_vm0, %vm42_vm1 }
  0x13   :  { %v37_v9 = vmul.f32 %v226_v7, %v36_v8 }
  0x15   :  { %v38_v11 = vmul.f32 0.5, %v37_v9 }
  0x17   :  { %v39_v14 = vsub.f32 1.5, %v38_v11 }
  0x19   :  { %v40_v20 = vmul.f32 %v226_v7, %v39_v14 }
  0x1b   :  { %v44_v25 = vsel %vm43_vm2, %v226_v7, %v40_v20 }
  0x1c   :  { %v46_v27 = vmul.f32 %v45_v21, %v44_v25  ;;  %v148_v21 = vand.u32 127, %v147_v17 }
  0x1e   :  { %v75_v34 = vperm.slane %v46_v27, 0  ;;  %v150_v22 = vadd.s32 4294967288, %v148_v21 }
  0x20   :  { %v81_v37 = vmul.f32 %v75_v34, %v70_v26  ;;  %v79_v38 = vmul.f32 %v75_v34, %v68_v28  ;;  %v77_v39 = vmul.f32 %v75_v34, %v66_v29  ;;  %v82_v40 = vmul.f32 %v75_v34, %v71_v30 }
  0x21   :  { %v80_v41 = vmul.f32 %v75_v34, %v69_v31  ;;  %v78_v42 = vmul.f32 %v75_v34, %v67_v32  ;;  %v84_v56 = vmul.f32 %v75_v34, %v73_v43  ;;  %v83_v62 = vmul.f32 %v75_v34, %v72_v50 }
  0x22   :  { %v93_v44 = vadd.f32 %v223_v35, %v81_v37  ;;  %v91_v45 = vadd.f32 %v223_v35, %v79_v38  ;;  %v89_v46 = vadd.f32 %v223_v35, %v77_v39  ;;  %v94_v47 = vadd.f32 %v223_v35, %v82_v40 }
  0x23   :  { %v92_v48 = vadd.f32 %v223_v35, %v80_v41  ;;  %v90_v49 = vadd.f32 %v223_v35, %v78_v42  ;;  %v96_v4 = vadd.f32 %v223_v35, %v84_v56  ;;  %v95_v7 = vadd.f32 %v223_v35, %v83_v62 }
  0x24   :  { %v101_v51 = vmul.f32 0.2, %v93_v44  ;;  %v99_v52 = vmul.f32 0.2, %v91_v45  ;;  %v97_v53 = vmul.f32 0.2, %v89_v46 }
  0x25   :  { %v102_v55 = vmul.f32 0.2, %v94_v47  ;;  %v100_v60 = vmul.f32 0.2, %v92_v48  ;;  %v98_v61 = vmul.f32 0.2, %v90_v49 }
  0x26   :  { %v109_v57 = vmax.f32 %v93_v44, %v101_v51  ;;  %v107_v58 = vmax.f32 %v91_v45, %v99_v52  ;;  %v105_v59 = vmax.f32 %v89_v46, %v97_v53  ;;  %v104_v10 = vmul.f32 0.2, %v96_v4  ;;  %v224_v44 = vld [vmem:[%s317_s6] ss:$0 sm:$0xff] }
  0x27   :  { %v110_v2 = vmax.f32 %v94_v47, %v102_v55  ;;  %v108_v3 = vmax.f32 %v92_v48, %v100_v60  ;;  %v106_v6 = vmax.f32 %v90_v49, %v98_v61  ;;  %v103_v12 = vmul.f32 0.2, %v95_v7 }
  0x28   :  { %v119_v63 = vmul.f32 %v113_v54, %v109_v57  ;;  %v117_v0 = vmul.f32 %v113_v54, %v107_v58  ;;  %v115_v1 = vmul.f32 %v113_v54, %v105_v59  ;;  %v112_v13 = vmax.f32 %v96_v4, %v104_v10 }
  0x29   :  { %v120_v8 = vmul.f32 %v114_v5, %v110_v2  ;;  %v118_v9 = vmul.f32 %v114_v5, %v108_v3  ;;  %v116_v11 = vmul.f32 %v114_v5, %v106_v6  ;;  %v111_v14 = vmax.f32 %v95_v7, %v103_v12 }
  0x2a   :  { %131 = vadd.xlane.f32.xlu2 %v119_v63  ;;  %127 = vadd.xlane.f32.xlu1 %v117_v0  ;;  %v122_v15 = vmul.f32 %v114_v5, %v112_v13 }
  0x2b   :  { %123 = vadd.xlane.f32.xlu0 %v115_v1  ;;  %v121_v16 = vmul.f32 %v113_v54, %v111_v14 }
  0x32   :  { %133 = vadd.xlane.f32.xlu2 %v120_v8  ;;  %129 = vadd.xlane.f32.xlu1 %v118_v9 }
  0x33   :  { %125 = vadd.xlane.f32.xlu0 %v116_v11 }
  0x3a   :  { %137 = vadd.xlane.f32.xlu1 %v122_v15 }
  0x3b   :  { %135 = vadd.xlane.f32.xlu0 %v121_v16 }
  0x9d   :  { %v132_v18 = vpop.xlane.xlu2 %131  ;;  %v128_v19 = vpop.xlane.xlu1 %127 }
  0x9e   :  { %v124_v20 = vpop.xlane.xlu0 %123  ;;  %v154_v28 = vperm.slane %v128_v19, %v148_v21  ;;  %v157_v30 = vperm.slane %v132_v18, %v148_v21 }
  0x9f   :  { %v149_v29 = vperm.slane %v124_v20, %v148_v21 }
  0xa5   :  { %v130_v23 = vpop.xlane.xlu1 %129  ;;  %v134_v25 = vpop.xlane.xlu2 %133 }
  0xa6   :  { %v126_v24 = vpop.xlane.xlu0 %125  ;;  %v155_v26 = vperm.slane %v130_v23, %v150_v22  ;;  %v158_v31 = vperm.slane %v134_v25, %v150_v22 }
  0xa7   :  { %v151_v27 = vperm.slane %v126_v24, %v150_v22 }
  0xa8   :  { %v156_v32 = vsel %vm152_vm3, %v155_v26, %v154_v28  ;;  %v159_v35 = vsel %vm152_vm3, %v158_v31, %v157_v30 }
  0xa9   :  { %v153_v33 = vsel %vm152_vm3, %v151_v27, %v149_v29 }
  0xaa   :  { %v164_v38 = vsel %vm163_vm4, %v156_v32, %v153_v33 }
  0xab   :  { %v166_v41 = vsel %vm165_vm5, %v159_v35, %v164_v38 }
  0xad   :  { %v138_v34 = vpop.xlane.xlu1 %137 }
  0xae   :  { %v161_v36 = vperm.slane %v138_v34, %v150_v22  ;;  %v136_v37 = vpop.xlane.xlu0 %135 }
  0xaf   :  { %v160_v39 = vperm.slane %v136_v37, %v148_v21 }
  0xb1   :  { %v162_v40 = vsel %vm152_vm3, %v161_v36, %v160_v39 }
  0xb2   :  { %v168_v42 = vsel %vm167_vm6, %v162_v40, %v166_v41 }
  0xb3   :  { %v171_v43 = vsel %vm170_vm7, %v168_v42, 0.0 }
  0xb4   :  { %172 = vadd.xlane.f32.xlu2 %v171_v43 }
 0x127   :  { %v173_v45 = vpop.xlane.xlu2 %172 }
 0x128   :  { %v178_v46 = vadd.f32 %v224_v44, %v173_v45 }
 0x12a   :  { %v203_v47 = vmul.f32 -1.442695, %v178_v46 }
 0x12c   :  { %227 = vpow2.f32 %v203_v47 }
 0x132   :  { %v228_v48 = vpop.eup %227 }
 0x133   :  { %v182_v49 = vadd.f32 1.0, %v228_v48 }
 0x135   :  { %229 = vrcp.f32 %v182_v49  ;;  %v194_v53 = vand.u32 2147483648, %v182_v49  ;;  %v192_v55 = vand.u32 2147483647, %v182_v49  ;;  %vm188_vm9 = vweird.f32 %v182_v49 }
 0x137   :  { %v195_v57 = vor.u32 1.1754944e-38, %v194_v53  ;;  %vm193_vm11 = vcmp.eq.f32.partialorder %v192_v55, 8.507059e+37 }
 0x13b   :  { %v230_v50 = vpop.eup %229 }
 0x13c   :  { %v184_v51 = vmul.f32 %v230_v50, %v182_v49  ;;  %vm189_vm8 = vweird.f32 %v230_v50 }
 0x13d   :  { %vm190_vm10 = vmor %vm188_vm9, %vm189_vm8 }
 0x13e   :  { %v185_v52 = vsub.f32 1.0, %v184_v51 }
 0x140   :  { %v186_v54 = vmul.f32 %v230_v50, %v185_v52 }
 0x142   :  { %v187_v56 = vadd.f32 %v230_v50, %v186_v54 }
 0x144   :  { %v191_v58 = vsel %vm190_vm10, %v230_v50, %v187_v56 }
 0x145   :  { %v196_v59 = vsel %vm193_vm11, %v195_v57, %v191_v58 }
 0x146   :  { %198 = vst [vmem:[%s318_s7] sm:$0xf] %v196_v59 }

</bundles_post_ra>
